<compile_context>
chip_gen: v7x
topology: tpu7x:2x2x1
jax: 0.10.0
libtpu: 0.0.40
codegen_flags: <defaults>
</compile_context>

<pallas_src>
import functools
import math

import numpy as np
import jax
import jax.numpy as jnp
from jax import lax
from jax.experimental import pallas as pl
from jax.experimental.pallas import tpu as pltpu


# ----------------------------------------------------------------------------
# In-kernel helpers
# ----------------------------------------------------------------------------
def _ln(z, gamma, beta, eps=1e-5):
    mean = jnp.mean(z, axis=-1, keepdims=True)
    c = z - mean
    var = jnp.mean(c * c, axis=-1, keepdims=True)
    return c * lax.rsqrt(var + eps) * gamma + beta


def _relu(z):
    return jnp.maximum(z, 0.0)


def _dot(a, b):
    return jnp.dot(a, b, preferred_element_type=jnp.float32)


def _te_index(rc):
    if rc == 1:
        return 1
    if rc == 2:
        return 2
    if 3 <= rc <= 4:
        return 3
    return (rc + 10) // 3 - 1


# ----------------------------------------------------------------------------
# Packed-parameter layout (static; shared by the packer and the kernel)
# ----------------------------------------------------------------------------
def _rae_layout(B, S, Din, E):
    Hs = E - (E - Din) // 2
    He = round(1.5 * E)
    BS = B * S
    N1 = BS - 1
    blocks = [
        ("se_w1", Din, Hs), ("se_b1", BS, Hs),
        ("se_w2", Hs, E), ("se_b2", BS, E),
        ("enc_w1a", E, He), ("enc_w1b", E, He),
        ("enc_teb", (S - 1) * N1, He),
        ("enc_g1", N1, He), ("enc_be1", N1, He),
        ("enc_w2", He, E),
        ("enc_b2", N1, E), ("enc_g2", N1, E), ("enc_be2", N1, E),
        ("d1_w1a", E, He),
        ("d1_teb", (S - 1) * BS, He),
        ("d1_g1", BS, He), ("d1_be1", BS, He),
        ("d1_w2a", He, E), ("d1_b2a", BS, E),
        ("d1_w2b", He, E), ("d1_b2b", BS, E),
        ("cr", (S - 1) * N1, E), ("cl", (S - 1) * N1, E),
        ("d2_g", N1, E), ("d2_be", N1, E),
        ("de_w1", E, Hs), ("de_b1", BS, Hs),
        ("de_w2", Hs, Din), ("de_b2", BS, Din),
    ]
    layout = {}
    off = 0
    for name, r, c in blocks:
        layout[name] = (off, r, c)
        off += r
    return layout, off, He  # packed lane width = He (largest column count)


# ----------------------------------------------------------------------------
# Single fused kernel: scale_embedding -> encode -> decode -> descale_embedding
# ----------------------------------------------------------------------------
def rae_fused_kernel(x_ref, p_ref, o_ref, state_ref, *, S, BS, layout):
    N1 = BS - 1

    def blk(name, row_off=0, nrows=None):
        # Static slice of the packed parameter slab, loaded at the point of use
        # (nothing is held live across the unrolled recursion).
        off, r, c = layout[name]
        n = r if nrows is None else nrows
        start = off + row_off
        return p_ref[start:start + n, 0:c]

    # ---- scale_embedding: Linear -> ReLU -> Linear -> ReLU (all B*S rows) ----
    h = _relu(_dot(x_ref[...], blk("se_w1")) + blk("se_b1"))
    state_ref[...] = _relu(_dot(h, blk("se_w2")) + blk("se_b2"))

    # ---- encode recursion (per-batch length S -> 1), batch folded into rows ----
    # Pair j = (row j, row j+1); pairs crossing a batch boundary produce garbage
    # rows that are stored but never read before being rewritten in decode.
    for rc in range(1, S):
        hl = state_ref[0:N1, :]
        hr = state_ref[1:BS, :]
        pre = (_dot(hl, blk("enc_w1a")) + _dot(hr, blk("enc_w1b"))
               + blk("enc_teb", (rc - 1) * N1, N1))       # te*w + b1 pre-folded rows
        h1 = _relu(_ln(pre, blk("enc_g1"), blk("enc_be1")))
        h2 = _relu(_ln(_dot(h1, blk("enc_w2")) + blk("enc_b2"),
                       blk("enc_g2"), blk("enc_be2")))
        state_ref[0:N1, :] = h2

    # ---- decode recursion (per-batch length 1 -> S), batch folded into rows ----
    # Per-stage coefficient tables cr/cl implement head / 0.5*overlap / tail
    # selection so decoder_part2 (LN+ReLU) runs once over all target rows >= 1.
    for k, rc in enumerate(range(S, 1, -1)):
        y = state_ref[...]                                # (BS, E), garbage rows harmless
        pre = _dot(y, blk("d1_w1a")) + blk("d1_teb", k * BS, BS)
        h1 = _relu(_ln(pre, blk("d1_g1"), blk("d1_be1")))
        zl = _dot(h1, blk("d1_w2a")) + blk("d1_b2a")      # (BS, E)
        zr = _dot(h1, blk("d1_w2b")) + blk("d1_b2b")      # (BS, E)
        t = (blk("cr", k * N1, N1) * zr[0:N1, :]
             + blk("cl", k * N1, N1) * zl[1:BS, :])       # value for target rows 1..BS-1
        state_ref[1:BS, :] = _relu(_ln(t, blk("d2_g"), blk("d2_be")))
        state_ref[0:1, :] = _relu(_ln(zl[0:1, :],
                                      blk("d2_g", 0, 1), blk("d2_be", 0, 1)))

    # ---- descale_embedding: Linear -> ReLU -> Linear (all B*S rows) ----
    o = _relu(_dot(state_ref[...], blk("de_w1")) + blk("de_b1"))
    o_ref[...] = _dot(o, blk("de_w2")) + blk("de_b2")


# ----------------------------------------------------------------------------
# Parameter construction (deterministic, PyTorch-Linear-style uniform init)
# ----------------------------------------------------------------------------
def _linear_params(key, fan_in, fan_out):
    kw, kb = jax.random.split(key)
    bound = 1.0 / math.sqrt(fan_in)
    w = jax.random.uniform(kw, (fan_in, fan_out), jnp.float32, -bound, bound)
    b = jax.random.uniform(kb, (1, fan_out), jnp.float32, -bound, bound)
    return w, b


def make_rae_params(key, input_size, embedding_size, max_sequence_len):
    tes = (max_sequence_len + 10) // 3
    hls_scale = embedding_size - (embedding_size - input_size) // 2
    hls_enc = round(1.5 * embedding_size)
    keys = jax.random.split(key, 8)
    p = {}
    p["se_w1"], p["se_b1"] = _linear_params(keys[0], input_size, hls_scale)
    p["se_w2"], p["se_b2"] = _linear_params(keys[1], hls_scale, embedding_size)
    p["de_w1"], p["de_b1"] = _linear_params(keys[2], embedding_size, hls_scale)
    p["de_w2"], p["de_b2"] = _linear_params(keys[3], hls_scale, input_size)
    p["enc_w1"], p["enc_b1"] = _linear_params(keys[4], 2 * embedding_size + tes, hls_enc)
    p["enc_g1"] = jnp.ones((1, hls_enc), jnp.float32)
    p["enc_be1"] = jnp.zeros((1, hls_enc), jnp.float32)
    p["enc_w2"], p["enc_b2"] = _linear_params(keys[5], hls_enc, embedding_size)
    p["enc_g2"] = jnp.ones((1, embedding_size), jnp.float32)
    p["enc_be2"] = jnp.zeros((1, embedding_size), jnp.float32)
    p["d1_w1"], p["d1_b1"] = _linear_params(keys[6], embedding_size + tes, hls_enc)
    p["d1_g1"] = jnp.ones((1, hls_enc), jnp.float32)
    p["d1_be1"] = jnp.zeros((1, hls_enc), jnp.float32)
    p["d1_w2"], p["d1_b2"] = _linear_params(keys[7], hls_enc, 2 * embedding_size)
    p["d2_g"] = jnp.ones((1, embedding_size), jnp.float32)
    p["d2_be"] = jnp.zeros((1, embedding_size), jnp.float32)
    return p, tes


# ----------------------------------------------------------------------------
# One-time parameter packing: split/fold weights, pre-broadcast row vectors,
# build the per-stage decode coefficient tables, concat into one (rows, He) slab.
# ----------------------------------------------------------------------------
def pack_rae_params(p, B, S, Din, E):
    layout, total_rows, W = _rae_layout(B, S, Din, E)
    BS = B * S
    N1 = BS - 1

    def bc(row, n):
        row = jnp.reshape(jnp.asarray(row, jnp.float32), (1, -1))
        return jnp.broadcast_to(row, (n, row.shape[1]))

    # Encoder first layer: split [left | right | timestep] and fold te+bias into
    # one pre-broadcast bias block per encode recursion (rc = 1 .. S-1).
    enc_w1a = p["enc_w1"][:E, :]
    enc_w1b = p["enc_w1"][E:2 * E, :]
    enc_wte = p["enc_w1"][2 * E:, :]
    enc_teb = jnp.concatenate(
        [bc(rc * enc_wte[0] + enc_wte[_te_index(rc)] + p["enc_b1"][0], N1)
         for rc in range(1, S)], axis=0)

    # Decoder part1 first layer: split [state | timestep], fold te+bias per
    # decode recursion in kernel order (rc = S, S-1, ..., 2).
    d1_w1a = p["d1_w1"][:E, :]
    d1_wte = p["d1_w1"][E:, :]
    d1_teb = jnp.concatenate(
        [bc(rc * d1_wte[0] + d1_wte[_te_index(rc)] + p["d1_b1"][0], BS)
         for rc in range(S, 1, -1)], axis=0)

    # Decode re-assembly coefficients: for stage k (current per-batch length
    # L = k+1) and source row j (pos = j mod S), target row j+1 gets
    #   0.5*zr[j] + 0.5*zl[j+1]  (middle),  zr[j]  (tail, pos==L-1),
    #   zl[j+1]                  (head of next batch item, pos==S-1).
    cr = np.zeros(((S - 1) * N1, E), np.float32)
    cl = np.zeros(((S - 1) * N1, E), np.float32)
    for k in range(S - 1):
        L = k + 1
        for j in range(N1):
            pos = j % S
            if pos < L - 1:
                cr[k * N1 + j, :] = 0.5
                cl[k * N1 + j, :] = 0.5
            elif pos == L - 1:
                cr[k * N1 + j, :] = 1.0
            elif pos == S - 1:
                cl[k * N1 + j, :] = 1.0

    arrays = {
        "se_w1": p["se_w1"], "se_b1": bc(p["se_b1"], BS),
        "se_w2": p["se_w2"], "se_b2": bc(p["se_b2"], BS),
        "enc_w1a": enc_w1a, "enc_w1b": enc_w1b, "enc_teb": enc_teb,
        "enc_g1": bc(p["enc_g1"], N1), "enc_be1": bc(p["enc_be1"], N1),
        "enc_w2": p["enc_w2"], "enc_b2": bc(p["enc_b2"], N1),
        "enc_g2": bc(p["enc_g2"], N1), "enc_be2": bc(p["enc_be2"], N1),
        "d1_w1a": d1_w1a, "d1_teb": d1_teb,
        "d1_g1": bc(p["d1_g1"], BS), "d1_be1": bc(p["d1_be1"], BS),
        "d1_w2a": p["d1_w2"][:, :E], "d1_b2a": bc(p["d1_b2"][:, :E], BS),
        "d1_w2b": p["d1_w2"][:, E:], "d1_b2b": bc(p["d1_b2"][:, E:], BS),
        "cr": jnp.asarray(cr), "cl": jnp.asarray(cl),
        "d2_g": bc(p["d2_g"], N1), "d2_be": bc(p["d2_be"], N1),
        "de_w1": p["de_w1"], "de_b1": bc(p["de_b1"], BS),
        "de_w2": p["de_w2"], "de_b2": bc(p["de_b2"], BS),
    }
    pieces = []
    for name, (off, r, c) in layout.items():
        a = jnp.asarray(arrays[name], jnp.float32)
        assert a.shape == (r, c), (name, a.shape, (r, c))
        pieces.append(jnp.pad(a, ((0, 0), (0, W - c))))
    packed = jnp.concatenate(pieces, axis=0)
    assert packed.shape == (total_rows, W)
    return packed


# ----------------------------------------------------------------------------
# Forward builder: one pallas_call, batch folded into rows
# ----------------------------------------------------------------------------
def build_rae_forward(B, S, Din, E):
    assert S >= 2, "RAE decode needs S >= 2 (S == 1 is undefined in the PyTorch reference too)."
    layout, total_rows, W = _rae_layout(B, S, Din, E)
    BS = B * S
    kernel = functools.partial(rae_fused_kernel, S=S, BS=BS, layout=layout)
    vmem = pl.BlockSpec(memory_space=pltpu.MemorySpace.VMEM)
    call = pl.pallas_call(
        kernel,
        out_shape=jax.ShapeDtypeStruct((BS, Din), jnp.float32),
        in_specs=[vmem, vmem],
        out_specs=vmem,
        scratch_shapes=[pltpu.VMEM((BS, E), jnp.float32)],
    )

    @jax.jit
    def forward(x, packed):
        o = call(x.reshape(BS, Din), packed)
        return o.reshape(B, S, Din)

    return forward


# ----------------------------------------------------------------------------
# Pure-JAX reference (mirrors the PyTorch module) for a correctness self-check.
# ----------------------------------------------------------------------------
def rae_reference(x, p, tes, E):
    B, S, _ = x.shape
    prec = lax.Precision.HIGHEST

    def lin(z, w, b):
        return jnp.dot(z, w, precision=prec) + b

    def ln(z, g, b):
        mean = jnp.mean(z, axis=-1, keepdims=True)
        var = jnp.mean((z - mean) ** 2, axis=-1, keepdims=True)
        return (z - mean) / jnp.sqrt(var + 1e-5) * g + b

    def te(length, rc):
        enc = jnp.zeros((B, length, tes), jnp.float32)
        enc = enc.at[:, :, 0].set(float(rc))
        return enc.at[:, :, _te_index(rc)].set(1.0)

    h = jnp.maximum(lin(x, p["se_w1"], p["se_b1"]), 0.0)
    h = jnp.maximum(lin(h, p["se_w2"], p["se_b2"]), 0.0)

    for rc in range(1, S):
        L = h.shape[1]
        hc = jnp.concatenate([h[:, :-1], h[:, 1:], te(L - 1, rc)], axis=2)
        z = jnp.maximum(ln(lin(hc, p["enc_w1"], p["enc_b1"]), p["enc_g1"], p["enc_be1"]), 0.0)
        h = jnp.maximum(ln(lin(z, p["enc_w2"], p["enc_b2"]), p["enc_g2"], p["enc_be2"]), 0.0)
    rc_final = S

    def d1(y, rc):
        yc = jnp.concatenate([y, te(y.shape[1], rc)], axis=2)
        z = jnp.maximum(ln(lin(yc, p["d1_w1"], p["d1_b1"]), p["d1_g1"], p["d1_be1"]), 0.0)
        return lin(z, p["d1_w2"], p["d1_b2"])

    def d2(y):
        return jnp.maximum(ln(y, p["d2_g"], p["d2_be"]), 0.0)

    y = d2(d1(h, rc_final).reshape(B, 2, E))
    for rc in range(rc_final - 1, 1, -1):
        z = d1(y, rc)
        overlap = 0.5 * (z[:, :-1, E:] + z[:, 1:, :E])
        y = d2(jnp.concatenate([z[:, 0:1, :E], overlap, z[:, -1:, E:]], axis=1))

    o = jnp.maximum(lin(y, p["de_w1"], p["de_b1"]), 0.0)
    return lin(o, p["de_w2"], p["de_b2"])


# ----------------------------------------------------------------------------
# Driver
# ----------------------------------------------------------------------------
if __name__ == "__main__":
    batch = 2
    input_size = 6
    embedding_size = 16
    max_sequence_len = 8
    seq_len = 8  # == max_sequence_len so the timestep one-hot index stays in range

    key = jax.random.PRNGKey(0)
    kx, kp = jax.random.split(key)
    params, tes = make_rae_params(kp, input_size, embedding_size, max_sequence_len)
    x = jax.random.normal(kx, (batch, seq_len, input_size), jnp.float32)

    packed = pack_rae_params(params, batch, seq_len, input_size, embedding_size)
    forward = build_rae_forward(batch, seq_len, input_size, embedding_size)
    out = jax.block_until_ready(forward(x, packed))
    assert out.shape == (batch, seq_len, input_size)

    # Self-check vs. plain-JAX mirror of the PyTorch module (loose tolerance:
    # the two paths may use different f32 matmul algorithms on TPU).
    ref = jax.block_until_ready(
        jax.jit(functools.partial(rae_reference, tes=tes, E=embedding_size))(x, params))
    assert float(jnp.max(jnp.abs(out - ref))) < 5e-2

    print("KERNEL_OK")
</pallas_src>

<mosaic_0001>
module attributes {stable_mosaic.version = 11 : i64} {
  func.func @rae_fused_kernel(%arg0: memref<16x6xf32, #tpu.memory_space<vmem>>, %arg1: memref<824x24xf32, #tpu.memory_space<vmem>>, %arg2: memref<16x6xf32, #tpu.memory_space<vmem>>, %arg3: memref<16x16xf32, #tpu.memory_space<vmem>>) attributes {dimension_semantics = [], scalar_prefetch = 0 : i64, scratch_operands = 1 : i64, tpu.core_type = #tpu.core_type<tc>} {
    %c0 = arith.constant 0 : index
    %c0_0 = arith.constant 0 : index
    %0 = vector.load %arg0[%c0, %c0_0] : memref<16x6xf32, #tpu.memory_space<vmem>>, vector<16x6xf32>
    %c0_1 = arith.constant 0 : index
    %c0_2 = arith.constant 0 : index
    %1 = vector.load %arg1[%c0_1, %c0_2] : memref<824x24xf32, #tpu.memory_space<vmem>>, vector<6x11xf32>
    %cst = arith.constant dense<0.000000e+00> : vector<16x11xf32>
    %2 = tpu.matmul %0, %1, %cst {dimension_numbers = #tpu.dot_dimension_numbers<[1], [0], [0], [1], [0, 0, 1, 1], [], []>} : vector<16x6xf32>, vector<6x11xf32>, vector<16x11xf32> -> vector<16x11xf32>
    %c6 = arith.constant 6 : index
    %c0_3 = arith.constant 0 : index
    %3 = vector.load %arg1[%c6, %c0_3] : memref<824x24xf32, #tpu.memory_space<vmem>>, vector<16x11xf32>
    %4 = arith.addf %2, %3 : vector<16x11xf32>
    %cst_4 = arith.constant 0.000000e+00 : f32
    %5 = vector.broadcast %cst_4 : f32 to vector<16x11xf32>
    %6 = arith.maximumf %4, %5 : vector<16x11xf32>
    %c22 = arith.constant 22 : index
    %c0_5 = arith.constant 0 : index
    %7 = vector.load %arg1[%c22, %c0_5] : memref<824x24xf32, #tpu.memory_space<vmem>>, vector<11x16xf32>
    %cst_6 = arith.constant dense<0.000000e+00> : vector<16x16xf32>
    %8 = tpu.matmul %6, %7, %cst_6 {dimension_numbers = #tpu.dot_dimension_numbers<[1], [0], [0], [1], [0, 0, 1, 1], [], []>} : vector<16x11xf32>, vector<11x16xf32>, vector<16x16xf32> -> vector<16x16xf32>
    %c33 = arith.constant 33 : index
    %c0_7 = arith.constant 0 : index
    %9 = vector.load %arg1[%c33, %c0_7] : memref<824x24xf32, #tpu.memory_space<vmem>>, vector<16x16xf32>
    %10 = arith.addf %8, %9 : vector<16x16xf32>
    %cst_8 = arith.constant 0.000000e+00 : f32
    %11 = vector.broadcast %cst_8 : f32 to vector<16x16xf32>
    %12 = arith.maximumf %10, %11 : vector<16x16xf32>
    %c0_9 = arith.constant 0 : index
    %c0_10 = arith.constant 0 : index
    %13 = vector.load %arg3[%c0_9, %c0_10] : memref<16x16xf32, #tpu.memory_space<vmem>>, vector<16x16xf32>
    tpu.vector_store %arg3[%c0_9, %c0_10], %12 {strides = array<i32>} : memref<16x16xf32, #tpu.memory_space<vmem>>, vector<16x16xf32>,
    %c0_11 = arith.constant 0 : index
    %c0_12 = arith.constant 0 : index
    %14 = vector.load %arg3[%c0_11, %c0_12] : memref<16x16xf32, #tpu.memory_space<vmem>>, vector<15x16xf32>
    %c1 = arith.constant 1 : index
    %c0_13 = arith.constant 0 : index
    %15 = vector.load %arg3[%c1, %c0_13] : memref<16x16xf32, #tpu.memory_space<vmem>>, vector<15x16xf32>
    %c49 = arith.constant 49 : index
    %c0_14 = arith.constant 0 : index
    %16 = vector.load %arg1[%c49, %c0_14] : memref<824x24xf32, #tpu.memory_space<vmem>>, vector<16x24xf32>
    %cst_15 = arith.constant dense<0.000000e+00> : vector<15x24xf32>
    %17 = tpu.matmul %14, %16, %cst_15 {dimension_numbers = #tpu.dot_dimension_numbers<[1], [0], [0], [1], [0, 0, 1, 1], [], []>} : vector<15x16xf32>, vector<16x24xf32>, vector<15x24xf32> -> vector<15x24xf32>
    %c65 = arith.constant 65 : index
    %c0_16 = arith.constant 0 : index
    %18 = vector.load %arg1[%c65, %c0_16] : memref<824x24xf32, #tpu.memory_space<vmem>>, vector<16x24xf32>
    %cst_17 = arith.constant dense<0.000000e+00> : vector<15x24xf32>
    %19 = tpu.matmul %15, %18, %cst_17 {dimension_numbers = #tpu.dot_dimension_numbers<[1], [0], [0], [1], [0, 0, 1, 1], [], []>} : vector<15x16xf32>, vector<16x24xf32>, vector<15x24xf32> -> vector<15x24xf32>
    %20 = arith.addf %17, %19 : vector<15x24xf32>
    %c81 = arith.constant 81 : index
    %c0_18 = arith.constant 0 : index
    %21 = vector.load %arg1[%c81, %c0_18] : memref<824x24xf32, #tpu.memory_space<vmem>>, vector<15x24xf32>
    %22 = arith.addf %20, %21 : vector<15x24xf32>
    %c186 = arith.constant 186 : index
    %c0_19 = arith.constant 0 : index
    %23 = vector.load %arg1[%c186, %c0_19] : memref<824x24xf32, #tpu.memory_space<vmem>>, vector<15x24xf32>
    %c201 = arith.constant 201 : index
    %c0_20 = arith.constant 0 : index
    %24 = vector.load %arg1[%c201, %c0_20] : memref<824x24xf32, #tpu.memory_space<vmem>>, vector<15x24xf32>
    %cst_21 = arith.constant dense<0.000000e+00> : vector<15xf32>
    %25 = vector.multi_reduction <add>, %22, %cst_21 [1] : vector<15x24xf32> to vector<15xf32>
    %26 = vector.shape_cast %25 : vector<15xf32> to vector<15x1xf32>
    %cst_22 = arith.constant 2.400000e+01 : f32
    %27 = vector.broadcast %cst_22 : f32 to vector<15x1xf32>
    %28 = arith.divf %26, %27 : vector<15x1xf32>
    %29 = vector.broadcast %28 : vector<15x1xf32> to vector<15x24xf32>
    %30 = arith.subf %22, %29 : vector<15x24xf32>
    %31 = arith.mulf %30, %30 : vector<15x24xf32>
    %cst_23 = arith.constant dense<0.000000e+00> : vector<15xf32>
    %32 = vector.multi_reduction <add>, %31, %cst_23 [1] : vector<15x24xf32> to vector<15xf32>
    %33 = vector.shape_cast %32 : vector<15xf32> to vector<15x1xf32>
    %cst_24 = arith.constant 2.400000e+01 : f32
    %34 = vector.broadcast %cst_24 : f32 to vector<15x1xf32>
    %35 = arith.divf %33, %34 : vector<15x1xf32>
    %cst_25 = arith.constant 9.99999974E-6 : f32
    %36 = vector.broadcast %cst_25 : f32 to vector<15x1xf32>
    %37 = arith.addf %35, %36 : vector<15x1xf32>
    %38 = math.rsqrt %37 : vector<15x1xf32>
    %39 = vector.broadcast %38 : vector<15x1xf32> to vector<15x24xf32>
    %40 = arith.mulf %30, %39 : vector<15x24xf32>
    %41 = arith.mulf %40, %23 : vector<15x24xf32>
    %42 = arith.addf %41, %24 : vector<15x24xf32>
    %cst_26 = arith.constant 0.000000e+00 : f32
    %43 = vector.broadcast %cst_26 : f32 to vector<15x24xf32>
    %44 = arith.maximumf %42, %43 : vector<15x24xf32>
    %c216 = arith.constant 216 : index
    %c0_27 = arith.constant 0 : index
    %45 = vector.load %arg1[%c216, %c0_27] : memref<824x24xf32, #tpu.memory_space<vmem>>, vector<24x16xf32>
    %cst_28 = arith.constant dense<0.000000e+00> : vector<15x16xf32>
    %46 = tpu.matmul %44, %45, %cst_28 {dimension_numbers = #tpu.dot_dimension_numbers<[1], [0], [0], [1], [0, 0, 1, 1], [], []>} : vector<15x24xf32>, vector<24x16xf32>, vector<15x16xf32> -> vector<15x16xf32>
    %c240 = arith.constant 240 : index
    %c0_29 = arith.constant 0 : index
    %47 = vector.load %arg1[%c240, %c0_29] : memref<824x24xf32, #tpu.memory_space<vmem>>, vector<15x16xf32>
    %48 = arith.addf %46, %47 : vector<15x16xf32>
    %c255 = arith.constant 255 : index
    %c0_30 = arith.constant 0 : index
    %49 = vector.load %arg1[%c255, %c0_30] : memref<824x24xf32, #tpu.memory_space<vmem>>, vector<15x16xf32>
    %c270 = arith.constant 270 : index
    %c0_31 = arith.constant 0 : index
    %50 = vector.load %arg1[%c270, %c0_31] : memref<824x24xf32, #tpu.memory_space<vmem>>, vector<15x16xf32>
    %cst_32 = arith.constant dense<0.000000e+00> : vector<15xf32>
    %51 = vector.multi_reduction <add>, %48, %cst_32 [1] : vector<15x16xf32> to vector<15xf32>
    %52 = vector.shape_cast %51 : vector<15xf32> to vector<15x1xf32>
    %cst_33 = arith.constant 1.600000e+01 : f32
    %53 = vector.broadcast %cst_33 : f32 to vector<15x1xf32>
    %54 = arith.divf %52, %53 : vector<15x1xf32>
    %55 = vector.broadcast %54 : vector<15x1xf32> to vector<15x16xf32>
    %56 = arith.subf %48, %55 : vector<15x16xf32>
    %57 = arith.mulf %56, %56 : vector<15x16xf32>
    %cst_34 = arith.constant dense<0.000000e+00> : vector<15xf32>
    %58 = vector.multi_reduction <add>, %57, %cst_34 [1] : vector<15x16xf32> to vector<15xf32>
    %59 = vector.shape_cast %58 : vector<15xf32> to vector<15x1xf32>
    %cst_35 = arith.constant 1.600000e+01 : f32
    %60 = vector.broadcast %cst_35 : f32 to vector<15x1xf32>
    %61 = arith.divf %59, %60 : vector<15x1xf32>
    %cst_36 = arith.constant 9.99999974E-6 : f32
    %62 = vector.broadcast %cst_36 : f32 to vector<15x1xf32>
    %63 = arith.addf %61, %62 : vector<15x1xf32>
    %64 = math.rsqrt %63 : vector<15x1xf32>
    %65 = vector.broadcast %64 : vector<15x1xf32> to vector<15x16xf32>
    %66 = arith.mulf %56, %65 : vector<15x16xf32>
    %67 = arith.mulf %66, %49 : vector<15x16xf32>
    %68 = arith.addf %67, %50 : vector<15x16xf32>
    %cst_37 = arith.constant 0.000000e+00 : f32
    %69 = vector.broadcast %cst_37 : f32 to vector<15x16xf32>
    %70 = arith.maximumf %68, %69 : vector<15x16xf32>
    %c0_38 = arith.constant 0 : index
    %c0_39 = arith.constant 0 : index
    %71 = vector.load %arg3[%c0_38, %c0_39] : memref<16x16xf32, #tpu.memory_space<vmem>>, vector<15x16xf32>
    tpu.vector_store %arg3[%c0_38, %c0_39], %70 {strides = array<i32>} : memref<16x16xf32, #tpu.memory_space<vmem>>, vector<15x16xf32>,
    %c0_40 = arith.constant 0 : index
    %c0_41 = arith.constant 0 : index
    %72 = vector.load %arg3[%c0_40, %c0_41] : memref<16x16xf32, #tpu.memory_space<vmem>>, vector<15x16xf32>
    %c1_42 = arith.constant 1 : index
    %c0_43 = arith.constant 0 : index
    %73 = vector.load %arg3[%c1_42, %c0_43] : memref<16x16xf32, #tpu.memory_space<vmem>>, vector<15x16xf32>
    %c49_44 = arith.constant 49 : index
    %c0_45 = arith.constant 0 : index
    %74 = vector.load %arg1[%c49_44, %c0_45] : memref<824x24xf32, #tpu.memory_space<vmem>>, vector<16x24xf32>
    %cst_46 = arith.constant dense<0.000000e+00> : vector<15x24xf32>
    %75 = tpu.matmul %72, %74, %cst_46 {dimension_numbers = #tpu.dot_dimension_numbers<[1], [0], [0], [1], [0, 0, 1, 1], [], []>} : vector<15x16xf32>, vector<16x24xf32>, vector<15x24xf32> -> vector<15x24xf32>
    %c65_47 = arith.constant 65 : index
    %c0_48 = arith.constant 0 : index
    %76 = vector.load %arg1[%c65_47, %c0_48] : memref<824x24xf32, #tpu.memory_space<vmem>>, vector<16x24xf32>
    %cst_49 = arith.constant dense<0.000000e+00> : vector<15x24xf32>
    %77 = tpu.matmul %73, %76, %cst_49 {dimension_numbers = #tpu.dot_dimension_numbers<[1], [0], [0], [1], [0, 0, 1, 1], [], []>} : vector<15x16xf32>, vector<16x24xf32>, vector<15x24xf32> -> vector<15x24xf32>
    %78 = arith.addf %75, %77 : vector<15x24xf32>
    %c96 = arith.constant 96 : index
    %c0_50 = arith.constant 0 : index
    %79 = vector.load %arg1[%c96, %c0_50] : memref<824x24xf32, #tpu.memory_space<vmem>>, vector<15x24xf32>
    %80 = arith.addf %78, %79 : vector<15x24xf32>
    %c186_51 = arith.constant 186 : index
    %c0_52 = arith.constant 0 : index
    %81 = vector.load %arg1[%c186_51, %c0_52] : memref<824x24xf32, #tpu.memory_space<vmem>>, vector<15x24xf32>
    %c201_53 = arith.constant 201 : index
    %c0_54 = arith.constant 0 : index
    %82 = vector.load %arg1[%c201_53, %c0_54] : memref<824x24xf32, #tpu.memory_space<vmem>>, vector<15x24xf32>
    %cst_55 = arith.constant dense<0.000000e+00> : vector<15xf32>
    %83 = vector.multi_reduction <add>, %80, %cst_55 [1] : vector<15x24xf32> to vector<15xf32>
    %84 = vector.shape_cast %83 : vector<15xf32> to vector<15x1xf32>
    %cst_56 = arith.constant 2.400000e+01 : f32
    %85 = vector.broadcast %cst_56 : f32 to vector<15x1xf32>
    %86 = arith.divf %84, %85 : vector<15x1xf32>
    %87 = vector.broadcast %86 : vector<15x1xf32> to vector<15x24xf32>
    %88 = arith.subf %80, %87 : vector<15x24xf32>
    %89 = arith.mulf %88, %88 : vector<15x24xf32>
    %cst_57 = arith.constant dense<0.000000e+00> : vector<15xf32>
    %90 = vector.multi_reduction <add>, %89, %cst_57 [1] : vector<15x24xf32> to vector<15xf32>
    %91 = vector.shape_cast %90 : vector<15xf32> to vector<15x1xf32>
    %cst_58 = arith.constant 2.400000e+01 : f32
    %92 = vector.broadcast %cst_58 : f32 to vector<15x1xf32>
    %93 = arith.divf %91, %92 : vector<15x1xf32>
    %cst_59 = arith.constant 9.99999974E-6 : f32
    %94 = vector.broadcast %cst_59 : f32 to vector<15x1xf32>
    %95 = arith.addf %93, %94 : vector<15x1xf32>
    %96 = math.rsqrt %95 : vector<15x1xf32>
    %97 = vector.broadcast %96 : vector<15x1xf32> to vector<15x24xf32>
    %98 = arith.mulf %88, %97 : vector<15x24xf32>
    %99 = arith.mulf %98, %81 : vector<15x24xf32>
    %100 = arith.addf %99, %82 : vector<15x24xf32>
    %cst_60 = arith.constant 0.000000e+00 : f32
    %101 = vector.broadcast %cst_60 : f32 to vector<15x24xf32>
    %102 = arith.maximumf %100, %101 : vector<15x24xf32>
    %c216_61 = arith.constant 216 : index
    %c0_62 = arith.constant 0 : index
    %103 = vector.load %arg1[%c216_61, %c0_62] : memref<824x24xf32, #tpu.memory_space<vmem>>, vector<24x16xf32>
    %cst_63 = arith.constant dense<0.000000e+00> : vector<15x16xf32>
    %104 = tpu.matmul %102, %103, %cst_63 {dimension_numbers = #tpu.dot_dimension_numbers<[1], [0], [0], [1], [0, 0, 1, 1], [], []>} : vector<15x24xf32>, vector<24x16xf32>, vector<15x16xf32> -> vector<15x16xf32>
    %c240_64 = arith.constant 240 : index
    %c0_65 = arith.constant 0 : index
    %105 = vector.load %arg1[%c240_64, %c0_65] : memref<824x24xf32, #tpu.memory_space<vmem>>, vector<15x16xf32>
    %106 = arith.addf %104, %105 : vector<15x16xf32>
    %c255_66 = arith.constant 255 : index
    %c0_67 = arith.constant 0 : index
    %107 = vector.load %arg1[%c255_66, %c0_67] : memref<824x24xf32, #tpu.memory_space<vmem>>, vector<15x16xf32>
    %c270_68 = arith.constant 270 : index
    %c0_69 = arith.constant 0 : index
    %108 = vector.load %arg1[%c270_68, %c0_69] : memref<824x24xf32, #tpu.memory_space<vmem>>, vector<15x16xf32>
    %cst_70 = arith.constant dense<0.000000e+00> : vector<15xf32>
    %109 = vector.multi_reduction <add>, %106, %cst_70 [1] : vector<15x16xf32> to vector<15xf32>
    %110 = vector.shape_cast %109 : vector<15xf32> to vector<15x1xf32>
    %cst_71 = arith.constant 1.600000e+01 : f32
    %111 = vector.broadcast %cst_71 : f32 to vector<15x1xf32>
    %112 = arith.divf %110, %111 : vector<15x1xf32>
    %113 = vector.broadcast %112 : vector<15x1xf32> to vector<15x16xf32>
    %114 = arith.subf %106, %113 : vector<15x16xf32>
    %115 = arith.mulf %114, %114 : vector<15x16xf32>
    %cst_72 = arith.constant dense<0.000000e+00> : vector<15xf32>
    %116 = vector.multi_reduction <add>, %115, %cst_72 [1] : vector<15x16xf32> to vector<15xf32>
    %117 = vector.shape_cast %116 : vector<15xf32> to vector<15x1xf32>
    %cst_73 = arith.constant 1.600000e+01 : f32
    %118 = vector.broadcast %cst_73 : f32 to vector<15x1xf32>
    %119 = arith.divf %117, %118 : vector<15x1xf32>
    %cst_74 = arith.constant 9.99999974E-6 : f32
    %120 = vector.broadcast %cst_74 : f32 to vector<15x1xf32>
    %121 = arith.addf %119, %120 : vector<15x1xf32>
    %122 = math.rsqrt %121 : vector<15x1xf32>
    %123 = vector.broadcast %122 : vector<15x1xf32> to vector<15x16xf32>
    %124 = arith.mulf %114, %123 : vector<15x16xf32>
    %125 = arith.mulf %124, %107 : vector<15x16xf32>
    %126 = arith.addf %125, %108 : vector<15x16xf32>
    %cst_75 = arith.constant 0.000000e+00 : f32
    %127 = vector.broadcast %cst_75 : f32 to vector<15x16xf32>
    %128 = arith.maximumf %126, %127 : vector<15x16xf32>
    %c0_76 = arith.constant 0 : index
    %c0_77 = arith.constant 0 : index
    %129 = vector.load %arg3[%c0_76, %c0_77] : memref<16x16xf32, #tpu.memory_space<vmem>>, vector<15x16xf32>
    tpu.vector_store %arg3[%c0_76, %c0_77], %128 {strides = array<i32>} : memref<16x16xf32, #tpu.memory_space<vmem>>, vector<15x16xf32>,
    %c0_78 = arith.constant 0 : index
    %c0_79 = arith.constant 0 : index
    %130 = vector.load %arg3[%c0_78, %c0_79] : memref<16x16xf32, #tpu.memory_space<vmem>>, vector<15x16xf32>
    %c1_80 = arith.constant 1 : index
    %c0_81 = arith.constant 0 : index
    %131 = vector.load %arg3[%c1_80, %c0_81] : memref<16x16xf32, #tpu.memory_space<vmem>>, vector<15x16xf32>
    %c49_82 = arith.constant 49 : index
    %c0_83 = arith.constant 0 : index
    %132 = vector.load %arg1[%c49_82, %c0_83] : memref<824x24xf32, #tpu.memory_space<vmem>>, vector<16x24xf32>
    %cst_84 = arith.constant dense<0.000000e+00> : vector<15x24xf32>
    %133 = tpu.matmul %130, %132, %cst_84 {dimension_numbers = #tpu.dot_dimension_numbers<[1], [0], [0], [1], [0, 0, 1, 1], [], []>} : vector<15x16xf32>, vector<16x24xf32>, vector<15x24xf32> -> vector<15x24xf32>
    %c65_85 = arith.constant 65 : index
    %c0_86 = arith.constant 0 : index
    %134 = vector.load %arg1[%c65_85, %c0_86] : memref<824x24xf32, #tpu.memory_space<vmem>>, vector<16x24xf32>
    %cst_87 = arith.constant dense<0.000000e+00> : vector<15x24xf32>
    %135 = tpu.matmul %131, %134, %cst_87 {dimension_numbers = #tpu.dot_dimension_numbers<[1], [0], [0], [1], [0, 0, 1, 1], [], []>} : vector<15x16xf32>, vector<16x24xf32>, vector<15x24xf32> -> vector<15x24xf32>
    %136 = arith.addf %133, %135 : vector<15x24xf32>
    %c111 = arith.constant 111 : index
    %c0_88 = arith.constant 0 : index
    %137 = vector.load %arg1[%c111, %c0_88] : memref<824x24xf32, #tpu.memory_space<vmem>>, vector<15x24xf32>
    %138 = arith.addf %136, %137 : vector<15x24xf32>
    %c186_89 = arith.constant 186 : index
    %c0_90 = arith.constant 0 : index
    %139 = vector.load %arg1[%c186_89, %c0_90] : memref<824x24xf32, #tpu.memory_space<vmem>>, vector<15x24xf32>
    %c201_91 = arith.constant 201 : index
    %c0_92 = arith.constant 0 : index
    %140 = vector.load %arg1[%c201_91, %c0_92] : memref<824x24xf32, #tpu.memory_space<vmem>>, vector<15x24xf32>
    %cst_93 = arith.constant dense<0.000000e+00> : vector<15xf32>
    %141 = vector.multi_reduction <add>, %138, %cst_93 [1] : vector<15x24xf32> to vector<15xf32>
    %142 = vector.shape_cast %141 : vector<15xf32> to vector<15x1xf32>
    %cst_94 = arith.constant 2.400000e+01 : f32
    %143 = vector.broadcast %cst_94 : f32 to vector<15x1xf32>
    %144 = arith.divf %142, %143 : vector<15x1xf32>
    %145 = vector.broadcast %144 : vector<15x1xf32> to vector<15x24xf32>
    %146 = arith.subf %138, %145 : vector<15x24xf32>
    %147 = arith.mulf %146, %146 : vector<15x24xf32>
    %cst_95 = arith.constant dense<0.000000e+00> : vector<15xf32>
    %148 = vector.multi_reduction <add>, %147, %cst_95 [1] : vector<15x24xf32> to vector<15xf32>
    %149 = vector.shape_cast %148 : vector<15xf32> to vector<15x1xf32>
    %cst_96 = arith.constant 2.400000e+01 : f32
    %150 = vector.broadcast %cst_96 : f32 to vector<15x1xf32>
    %151 = arith.divf %149, %150 : vector<15x1xf32>
    %cst_97 = arith.constant 9.99999974E-6 : f32
    %152 = vector.broadcast %cst_97 : f32 to vector<15x1xf32>
    %153 = arith.addf %151, %152 : vector<15x1xf32>
    %154 = math.rsqrt %153 : vector<15x1xf32>
    %155 = vector.broadcast %154 : vector<15x1xf32> to vector<15x24xf32>
    %156 = arith.mulf %146, %155 : vector<15x24xf32>
    %157 = arith.mulf %156, %139 : vector<15x24xf32>
    %158 = arith.addf %157, %140 : vector<15x24xf32>
    %cst_98 = arith.constant 0.000000e+00 : f32
    %159 = vector.broadcast %cst_98 : f32 to vector<15x24xf32>
    %160 = arith.maximumf %158, %159 : vector<15x24xf32>
    %c216_99 = arith.constant 216 : index
    %c0_100 = arith.constant 0 : index
    %161 = vector.load %arg1[%c216_99, %c0_100] : memref<824x24xf32, #tpu.memory_space<vmem>>, vector<24x16xf32>
    %cst_101 = arith.constant dense<0.000000e+00> : vector<15x16xf32>
    %162 = tpu.matmul %160, %161, %cst_101 {dimension_numbers = #tpu.dot_dimension_numbers<[1], [0], [0], [1], [0, 0, 1, 1], [], []>} : vector<15x24xf32>, vector<24x16xf32>, vector<15x16xf32> -> vector<15x16xf32>
    %c240_102 = arith.constant 240 : index
    %c0_103 = arith.constant 0 : index
    %163 = vector.load %arg1[%c240_102, %c0_103] : memref<824x24xf32, #tpu.memory_space<vmem>>, vector<15x16xf32>
    %164 = arith.addf %162, %163 : vector<15x16xf32>
    %c255_104 = arith.constant 255 : index
    %c0_105 = arith.constant 0 : index
    %165 = vector.load %arg1[%c255_104, %c0_105] : memref<824x24xf32, #tpu.memory_space<vmem>>, vector<15x16xf32>
    %c270_106 = arith.constant 270 : index
    %c0_107 = arith.constant 0 : index
    %166 = vector.load %arg1[%c270_106, %c0_107] : memref<824x24xf32, #tpu.memory_space<vmem>>, vector<15x16xf32>
    %cst_108 = arith.constant dense<0.000000e+00> : vector<15xf32>
    %167 = vector.multi_reduction <add>, %164, %cst_108 [1] : vector<15x16xf32> to vector<15xf32>
    %168 = vector.shape_cast %167 : vector<15xf32> to vector<15x1xf32>
    %cst_109 = arith.constant 1.600000e+01 : f32
    %169 = vector.broadcast %cst_109 : f32 to vector<15x1xf32>
    %170 = arith.divf %168, %169 : vector<15x1xf32>
    %171 = vector.broadcast %170 : vector<15x1xf32> to vector<15x16xf32>
    %172 = arith.subf %164, %171 : vector<15x16xf32>
    %173 = arith.mulf %172, %172 : vector<15x16xf32>
    %cst_110 = arith.constant dense<0.000000e+00> : vector<15xf32>
    %174 = vector.multi_reduction <add>, %173, %cst_110 [1] : vector<15x16xf32> to vector<15xf32>
    %175 = vector.shape_cast %174 : vector<15xf32> to vector<15x1xf32>
    %cst_111 = arith.constant 1.600000e+01 : f32
    %176 = vector.broadcast %cst_111 : f32 to vector<15x1xf32>
    %177 = arith.divf %175, %176 : vector<15x1xf32>
    %cst_112 = arith.constant 9.99999974E-6 : f32
    %178 = vector.broadcast %cst_112 : f32 to vector<15x1xf32>
    %179 = arith.addf %177, %178 : vector<15x1xf32>
    %180 = math.rsqrt %179 : vector<15x1xf32>
    %181 = vector.broadcast %180 : vector<15x1xf32> to vector<15x16xf32>
    %182 = arith.mulf %172, %181 : vector<15x16xf32>
    %183 = arith.mulf %182, %165 : vector<15x16xf32>
    %184 = arith.addf %183, %166 : vector<15x16xf32>
    %cst_113 = arith.constant 0.000000e+00 : f32
    %185 = vector.broadcast %cst_113 : f32 to vector<15x16xf32>
    %186 = arith.maximumf %184, %185 : vector<15x16xf32>
    %c0_114 = arith.constant 0 : index
    %c0_115 = arith.constant 0 : index
    %187 = vector.load %arg3[%c0_114, %c0_115] : memref<16x16xf32, #tpu.memory_space<vmem>>, vector<15x16xf32>
    tpu.vector_store %arg3[%c0_114, %c0_115], %186 {strides = array<i32>} : memref<16x16xf32, #tpu.memory_space<vmem>>, vector<15x16xf32>,
    %c0_116 = arith.constant 0 : index
    %c0_117 = arith.constant 0 : index
    %188 = vector.load %arg3[%c0_116, %c0_117] : memref<16x16xf32, #tpu.memory_space<vmem>>, vector<15x16xf32>
    %c1_118 = arith.constant 1 : index
    %c0_119 = arith.constant 0 : index
    %189 = vector.load %arg3[%c1_118, %c0_119] : memref<16x16xf32, #tpu.memory_space<vmem>>, vector<15x16xf32>
    %c49_120 = arith.constant 49 : index
    %c0_121 = arith.constant 0 : index
    %190 = vector.load %arg1[%c49_120, %c0_121] : memref<824x24xf32, #tpu.memory_space<vmem>>, vector<16x24xf32>
    %cst_122 = arith.constant dense<0.000000e+00> : vector<15x24xf32>
    %191 = tpu.matmul %188, %190, %cst_122 {dimension_numbers = #tpu.dot_dimension_numbers<[1], [0], [0], [1], [0, 0, 1, 1], [], []>} : vector<15x16xf32>, vector<16x24xf32>, vector<15x24xf32> -> vector<15x24xf32>
    %c65_123 = arith.constant 65 : index
    %c0_124 = arith.constant 0 : index
    %192 = vector.load %arg1[%c65_123, %c0_124] : memref<824x24xf32, #tpu.memory_space<vmem>>, vector<16x24xf32>
    %cst_125 = arith.constant dense<0.000000e+00> : vector<15x24xf32>
    %193 = tpu.matmul %189, %192, %cst_125 {dimension_numbers = #tpu.dot_dimension_numbers<[1], [0], [0], [1], [0, 0, 1, 1], [], []>} : vector<15x16xf32>, vector<16x24xf32>, vector<15x24xf32> -> vector<15x24xf32>
    %194 = arith.addf %191, %193 : vector<15x24xf32>
    %c126 = arith.constant 126 : index
    %c0_126 = arith.constant 0 : index
    %195 = vector.load %arg1[%c126, %c0_126] : memref<824x24xf32, #tpu.memory_space<vmem>>, vector<15x24xf32>
    %196 = arith.addf %194, %195 : vector<15x24xf32>
    %c186_127 = arith.constant 186 : index
    %c0_128 = arith.constant 0 : index
    %197 = vector.load %arg1[%c186_127, %c0_128] : memref<824x24xf32, #tpu.memory_space<vmem>>, vector<15x24xf32>
    %c201_129 = arith.constant 201 : index
    %c0_130 = arith.constant 0 : index
    %198 = vector.load %arg1[%c201_129, %c0_130] : memref<824x24xf32, #tpu.memory_space<vmem>>, vector<15x24xf32>
    %cst_131 = arith.constant dense<0.000000e+00> : vector<15xf32>
    %199 = vector.multi_reduction <add>, %196, %cst_131 [1] : vector<15x24xf32> to vector<15xf32>
    %200 = vector.shape_cast %199 : vector<15xf32> to vector<15x1xf32>
    %cst_132 = arith.constant 2.400000e+01 : f32
    %201 = vector.broadcast %cst_132 : f32 to vector<15x1xf32>
    %202 = arith.divf %200, %201 : vector<15x1xf32>
    %203 = vector.broadcast %202 : vector<15x1xf32> to vector<15x24xf32>
    %204 = arith.subf %196, %203 : vector<15x24xf32>
    %205 = arith.mulf %204, %204 : vector<15x24xf32>
    %cst_133 = arith.constant dense<0.000000e+00> : vector<15xf32>
    %206 = vector.multi_reduction <add>, %205, %cst_133 [1] : vector<15x24xf32> to vector<15xf32>
    %207 = vector.shape_cast %206 : vector<15xf32> to vector<15x1xf32>
    %cst_134 = arith.constant 2.400000e+01 : f32
    %208 = vector.broadcast %cst_134 : f32 to vector<15x1xf32>
    %209 = arith.divf %207, %208 : vector<15x1xf32>
    %cst_135 = arith.constant 9.99999974E-6 : f32
    %210 = vector.broadcast %cst_135 : f32 to vector<15x1xf32>
    %211 = arith.addf %209, %210 : vector<15x1xf32>
    %212 = math.rsqrt %211 : vector<15x1xf32>
    %213 = vector.broadcast %212 : vector<15x1xf32> to vector<15x24xf32>
    %214 = arith.mulf %204, %213 : vector<15x24xf32>
    %215 = arith.mulf %214, %197 : vector<15x24xf32>
    %216 = arith.addf %215, %198 : vector<15x24xf32>
    %cst_136 = arith.constant 0.000000e+00 : f32
    %217 = vector.broadcast %cst_136 : f32 to vector<15x24xf32>
    %218 = arith.maximumf %216, %217 : vector<15x24xf32>
    %c216_137 = arith.constant 216 : index
    %c0_138 = arith.constant 0 : index
    %219 = vector.load %arg1[%c216_137, %c0_138] : memref<824x24xf32, #tpu.memory_space<vmem>>, vector<24x16xf32>
    %cst_139 = arith.constant dense<0.000000e+00> : vector<15x16xf32>
    %220 = tpu.matmul %218, %219, %cst_139 {dimension_numbers = #tpu.dot_dimension_numbers<[1], [0], [0], [1], [0, 0, 1, 1], [], []>} : vector<15x24xf32>, vector<24x16xf32>, vector<15x16xf32> -> vector<15x16xf32>
    %c240_140 = arith.constant 240 : index
    %c0_141 = arith.constant 0 : index
    %221 = vector.load %arg1[%c240_140, %c0_141] : memref<824x24xf32, #tpu.memory_space<vmem>>, vector<15x16xf32>
    %222 = arith.addf %220, %221 : vector<15x16xf32>
    %c255_142 = arith.constant 255 : index
    %c0_143 = arith.constant 0 : index
    %223 = vector.load %arg1[%c255_142, %c0_143] : memref<824x24xf32, #tpu.memory_space<vmem>>, vector<15x16xf32>
    %c270_144 = arith.constant 270 : index
    %c0_145 = arith.constant 0 : index
    %224 = vector.load %arg1[%c270_144, %c0_145] : memref<824x24xf32, #tpu.memory_space<vmem>>, vector<15x16xf32>
    %cst_146 = arith.constant dense<0.000000e+00> : vector<15xf32>
    %225 = vector.multi_reduction <add>, %222, %cst_146 [1] : vector<15x16xf32> to vector<15xf32>
    %226 = vector.shape_cast %225 : vector<15xf32> to vector<15x1xf32>
    %cst_147 = arith.constant 1.600000e+01 : f32
    %227 = vector.broadcast %cst_147 : f32 to vector<15x1xf32>
    %228 = arith.divf %226, %227 : vector<15x1xf32>
    %229 = vector.broadcast %228 : vector<15x1xf32> to vector<15x16xf32>
    %230 = arith.subf %222, %229 : vector<15x16xf32>
    %231 = arith.mulf %230, %230 : vector<15x16xf32>
    %cst_148 = arith.constant dense<0.000000e+00> : vector<15xf32>
    %232 = vector.multi_reduction <add>, %231, %cst_148 [1] : vector<15x16xf32> to vector<15xf32>
    %233 = vector.shape_cast %232 : vector<15xf32> to vector<15x1xf32>
    %cst_149 = arith.constant 1.600000e+01 : f32
    %234 = vector.broadcast %cst_149 : f32 to vector<15x1xf32>
    %235 = arith.divf %233, %234 : vector<15x1xf32>
    %cst_150 = arith.constant 9.99999974E-6 : f32
    %236 = vector.broadcast %cst_150 : f32 to vector<15x1xf32>
    %237 = arith.addf %235, %236 : vector<15x1xf32>
    %238 = math.rsqrt %237 : vector<15x1xf32>
    %239 = vector.broadcast %238 : vector<15x1xf32> to vector<15x16xf32>
    %240 = arith.mulf %230, %239 : vector<15x16xf32>
    %241 = arith.mulf %240, %223 : vector<15x16xf32>
    %242 = arith.addf %241, %224 : vector<15x16xf32>
    %cst_151 = arith.constant 0.000000e+00 : f32
    %243 = vector.broadcast %cst_151 : f32 to vector<15x16xf32>
    %244 = arith.maximumf %242, %243 : vector<15x16xf32>
    %c0_152 = arith.constant 0 : index
    %c0_153 = arith.constant 0 : index
    %245 = vector.load %arg3[%c0_152, %c0_153] : memref<16x16xf32, #tpu.memory_space<vmem>>, vector<15x16xf32>
    tpu.vector_store %arg3[%c0_152, %c0_153], %244 {strides = array<i32>} : memref<16x16xf32, #tpu.memory_space<vmem>>, vector<15x16xf32>,
    %c0_154 = arith.constant 0 : index
    %c0_155 = arith.constant 0 : index
    %246 = vector.load %arg3[%c0_154, %c0_155] : memref<16x16xf32, #tpu.memory_space<vmem>>, vector<15x16xf32>
    %c1_156 = arith.constant 1 : index
    %c0_157 = arith.constant 0 : index
    %247 = vector.load %arg3[%c1_156, %c0_157] : memref<16x16xf32, #tpu.memory_space<vmem>>, vector<15x16xf32>
    %c49_158 = arith.constant 49 : index
    %c0_159 = arith.constant 0 : index
    %248 = vector.load %arg1[%c49_158, %c0_159] : memref<824x24xf32, #tpu.memory_space<vmem>>, vector<16x24xf32>
    %cst_160 = arith.constant dense<0.000000e+00> : vector<15x24xf32>
    %249 = tpu.matmul %246, %248, %cst_160 {dimension_numbers = #tpu.dot_dimension_numbers<[1], [0], [0], [1], [0, 0, 1, 1], [], []>} : vector<15x16xf32>, vector<16x24xf32>, vector<15x24xf32> -> vector<15x24xf32>
    %c65_161 = arith.constant 65 : index
    %c0_162 = arith.constant 0 : index
    %250 = vector.load %arg1[%c65_161, %c0_162] : memref<824x24xf32, #tpu.memory_space<vmem>>, vector<16x24xf32>
    %cst_163 = arith.constant dense<0.000000e+00> : vector<15x24xf32>
    %251 = tpu.matmul %247, %250, %cst_163 {dimension_numbers = #tpu.dot_dimension_numbers<[1], [0], [0], [1], [0, 0, 1, 1], [], []>} : vector<15x16xf32>, vector<16x24xf32>, vector<15x24xf32> -> vector<15x24xf32>
    %252 = arith.addf %249, %251 : vector<15x24xf32>
    %c141 = arith.constant 141 : index
    %c0_164 = arith.constant 0 : index
    %253 = vector.load %arg1[%c141, %c0_164] : memref<824x24xf32, #tpu.memory_space<vmem>>, vector<15x24xf32>
    %254 = arith.addf %252, %253 : vector<15x24xf32>
    %c186_165 = arith.constant 186 : index
    %c0_166 = arith.constant 0 : index
    %255 = vector.load %arg1[%c186_165, %c0_166] : memref<824x24xf32, #tpu.memory_space<vmem>>, vector<15x24xf32>
    %c201_167 = arith.constant 201 : index
    %c0_168 = arith.constant 0 : index
    %256 = vector.load %arg1[%c201_167, %c0_168] : memref<824x24xf32, #tpu.memory_space<vmem>>, vector<15x24xf32>
    %cst_169 = arith.constant dense<0.000000e+00> : vector<15xf32>
    %257 = vector.multi_reduction <add>, %254, %cst_169 [1] : vector<15x24xf32> to vector<15xf32>
    %258 = vector.shape_cast %257 : vector<15xf32> to vector<15x1xf32>
    %cst_170 = arith.constant 2.400000e+01 : f32
    %259 = vector.broadcast %cst_170 : f32 to vector<15x1xf32>
    %260 = arith.divf %258, %259 : vector<15x1xf32>
    %261 = vector.broadcast %260 : vector<15x1xf32> to vector<15x24xf32>
    %262 = arith.subf %254, %261 : vector<15x24xf32>
    %263 = arith.mulf %262, %262 : vector<15x24xf32>
    %cst_171 = arith.constant dense<0.000000e+00> : vector<15xf32>
    %264 = vector.multi_reduction <add>, %263, %cst_171 [1] : vector<15x24xf32> to vector<15xf32>
    %265 = vector.shape_cast %264 : vector<15xf32> to vector<15x1xf32>
    %cst_172 = arith.constant 2.400000e+01 : f32
    %266 = vector.broadcast %cst_172 : f32 to vector<15x1xf32>
    %267 = arith.divf %265, %266 : vector<15x1xf32>
    %cst_173 = arith.constant 9.99999974E-6 : f32
    %268 = vector.broadcast %cst_173 : f32 to vector<15x1xf32>
    %269 = arith.addf %267, %268 : vector<15x1xf32>
    %270 = math.rsqrt %269 : vector<15x1xf32>
    %271 = vector.broadcast %270 : vector<15x1xf32> to vector<15x24xf32>
    %272 = arith.mulf %262, %271 : vector<15x24xf32>
    %273 = arith.mulf %272, %255 : vector<15x24xf32>
    %274 = arith.addf %273, %256 : vector<15x24xf32>
    %cst_174 = arith.constant 0.000000e+00 : f32
    %275 = vector.broadcast %cst_174 : f32 to vector<15x24xf32>
    %276 = arith.maximumf %274, %275 : vector<15x24xf32>
    %c216_175 = arith.constant 216 : index
    %c0_176 = arith.constant 0 : index
    %277 = vector.load %arg1[%c216_175, %c0_176] : memref<824x24xf32, #tpu.memory_space<vmem>>, vector<24x16xf32>
    %cst_177 = arith.constant dense<0.000000e+00> : vector<15x16xf32>
    %278 = tpu.matmul %276, %277, %cst_177 {dimension_numbers = #tpu.dot_dimension_numbers<[1], [0], [0], [1], [0, 0, 1, 1], [], []>} : vector<15x24xf32>, vector<24x16xf32>, vector<15x16xf32> -> vector<15x16xf32>
    %c240_178 = arith.constant 240 : index
    %c0_179 = arith.constant 0 : index
    %279 = vector.load %arg1[%c240_178, %c0_179] : memref<824x24xf32, #tpu.memory_space<vmem>>, vector<15x16xf32>
    %280 = arith.addf %278, %279 : vector<15x16xf32>
    %c255_180 = arith.constant 255 : index
    %c0_181 = arith.constant 0 : index
    %281 = vector.load %arg1[%c255_180, %c0_181] : memref<824x24xf32, #tpu.memory_space<vmem>>, vector<15x16xf32>
    %c270_182 = arith.constant 270 : index
    %c0_183 = arith.constant 0 : index
    %282 = vector.load %arg1[%c270_182, %c0_183] : memref<824x24xf32, #tpu.memory_space<vmem>>, vector<15x16xf32>
    %cst_184 = arith.constant dense<0.000000e+00> : vector<15xf32>
    %283 = vector.multi_reduction <add>, %280, %cst_184 [1] : vector<15x16xf32> to vector<15xf32>
    %284 = vector.shape_cast %283 : vector<15xf32> to vector<15x1xf32>
    %cst_185 = arith.constant 1.600000e+01 : f32
    %285 = vector.broadcast %cst_185 : f32 to vector<15x1xf32>
    %286 = arith.divf %284, %285 : vector<15x1xf32>
    %287 = vector.broadcast %286 : vector<15x1xf32> to vector<15x16xf32>
    %288 = arith.subf %280, %287 : vector<15x16xf32>
    %289 = arith.mulf %288, %288 : vector<15x16xf32>
    %cst_186 = arith.constant dense<0.000000e+00> : vector<15xf32>
    %290 = vector.multi_reduction <add>, %289, %cst_186 [1] : vector<15x16xf32> to vector<15xf32>
    %291 = vector.shape_cast %290 : vector<15xf32> to vector<15x1xf32>
    %cst_187 = arith.constant 1.600000e+01 : f32
    %292 = vector.broadcast %cst_187 : f32 to vector<15x1xf32>
    %293 = arith.divf %291, %292 : vector<15x1xf32>
    %cst_188 = arith.constant 9.99999974E-6 : f32
    %294 = vector.broadcast %cst_188 : f32 to vector<15x1xf32>
    %295 = arith.addf %293, %294 : vector<15x1xf32>
    %296 = math.rsqrt %295 : vector<15x1xf32>
    %297 = vector.broadcast %296 : vector<15x1xf32> to vector<15x16xf32>
    %298 = arith.mulf %288, %297 : vector<15x16xf32>
    %299 = arith.mulf %298, %281 : vector<15x16xf32>
    %300 = arith.addf %299, %282 : vector<15x16xf32>
    %cst_189 = arith.constant 0.000000e+00 : f32
    %301 = vector.broadcast %cst_189 : f32 to vector<15x16xf32>
    %302 = arith.maximumf %300, %301 : vector<15x16xf32>
    %c0_190 = arith.constant 0 : index
    %c0_191 = arith.constant 0 : index
    %303 = vector.load %arg3[%c0_190, %c0_191] : memref<16x16xf32, #tpu.memory_space<vmem>>, vector<15x16xf32>
    tpu.vector_store %arg3[%c0_190, %c0_191], %302 {strides = array<i32>} : memref<16x16xf32, #tpu.memory_space<vmem>>, vector<15x16xf32>,
    %c0_192 = arith.constant 0 : index
    %c0_193 = arith.constant 0 : index
    %304 = vector.load %arg3[%c0_192, %c0_193] : memref<16x16xf32, #tpu.memory_space<vmem>>, vector<15x16xf32>
    %c1_194 = arith.constant 1 : index
    %c0_195 = arith.constant 0 : index
    %305 = vector.load %arg3[%c1_194, %c0_195] : memref<16x16xf32, #tpu.memory_space<vmem>>, vector<15x16xf32>
    %c49_196 = arith.constant 49 : index
    %c0_197 = arith.constant 0 : index
    %306 = vector.load %arg1[%c49_196, %c0_197] : memref<824x24xf32, #tpu.memory_space<vmem>>, vector<16x24xf32>
    %cst_198 = arith.constant dense<0.000000e+00> : vector<15x24xf32>
    %307 = tpu.matmul %304, %306, %cst_198 {dimension_numbers = #tpu.dot_dimension_numbers<[1], [0], [0], [1], [0, 0, 1, 1], [], []>} : vector<15x16xf32>, vector<16x24xf32>, vector<15x24xf32> -> vector<15x24xf32>
    %c65_199 = arith.constant 65 : index
    %c0_200 = arith.constant 0 : index
    %308 = vector.load %arg1[%c65_199, %c0_200] : memref<824x24xf32, #tpu.memory_space<vmem>>, vector<16x24xf32>
    %cst_201 = arith.constant dense<0.000000e+00> : vector<15x24xf32>
    %309 = tpu.matmul %305, %308, %cst_201 {dimension_numbers = #tpu.dot_dimension_numbers<[1], [0], [0], [1], [0, 0, 1, 1], [], []>} : vector<15x16xf32>, vector<16x24xf32>, vector<15x24xf32> -> vector<15x24xf32>
    %310 = arith.addf %307, %309 : vector<15x24xf32>
    %c156 = arith.constant 156 : index
    %c0_202 = arith.constant 0 : index
    %311 = vector.load %arg1[%c156, %c0_202] : memref<824x24xf32, #tpu.memory_space<vmem>>, vector<15x24xf32>
    %312 = arith.addf %310, %311 : vector<15x24xf32>
    %c186_203 = arith.constant 186 : index
    %c0_204 = arith.constant 0 : index
    %313 = vector.load %arg1[%c186_203, %c0_204] : memref<824x24xf32, #tpu.memory_space<vmem>>, vector<15x24xf32>
    %c201_205 = arith.constant 201 : index
    %c0_206 = arith.constant 0 : index
    %314 = vector.load %arg1[%c201_205, %c0_206] : memref<824x24xf32, #tpu.memory_space<vmem>>, vector<15x24xf32>
    %cst_207 = arith.constant dense<0.000000e+00> : vector<15xf32>
    %315 = vector.multi_reduction <add>, %312, %cst_207 [1] : vector<15x24xf32> to vector<15xf32>
    %316 = vector.shape_cast %315 : vector<15xf32> to vector<15x1xf32>
    %cst_208 = arith.constant 2.400000e+01 : f32
    %317 = vector.broadcast %cst_208 : f32 to vector<15x1xf32>
    %318 = arith.divf %316, %317 : vector<15x1xf32>
    %319 = vector.broadcast %318 : vector<15x1xf32> to vector<15x24xf32>
    %320 = arith.subf %312, %319 : vector<15x24xf32>
    %321 = arith.mulf %320, %320 : vector<15x24xf32>
    %cst_209 = arith.constant dense<0.000000e+00> : vector<15xf32>
    %322 = vector.multi_reduction <add>, %321, %cst_209 [1] : vector<15x24xf32> to vector<15xf32>
    %323 = vector.shape_cast %322 : vector<15xf32> to vector<15x1xf32>
    %cst_210 = arith.constant 2.400000e+01 : f32
    %324 = vector.broadcast %cst_210 : f32 to vector<15x1xf32>
    %325 = arith.divf %323, %324 : vector<15x1xf32>
    %cst_211 = arith.constant 9.99999974E-6 : f32
    %326 = vector.broadcast %cst_211 : f32 to vector<15x1xf32>
    %327 = arith.addf %325, %326 : vector<15x1xf32>
    %328 = math.rsqrt %327 : vector<15x1xf32>
    %329 = vector.broadcast %328 : vector<15x1xf32> to vector<15x24xf32>
    %330 = arith.mulf %320, %329 : vector<15x24xf32>
    %331 = arith.mulf %330, %313 : vector<15x24xf32>
    %332 = arith.addf %331, %314 : vector<15x24xf32>
    %cst_212 = arith.constant 0.000000e+00 : f32
    %333 = vector.broadcast %cst_212 : f32 to vector<15x24xf32>
    %334 = arith.maximumf %332, %333 : vector<15x24xf32>
    %c216_213 = arith.constant 216 : index
    %c0_214 = arith.constant 0 : index
    %335 = vector.load %arg1[%c216_213, %c0_214] : memref<824x24xf32, #tpu.memory_space<vmem>>, vector<24x16xf32>
    %cst_215 = arith.constant dense<0.000000e+00> : vector<15x16xf32>
    %336 = tpu.matmul %334, %335, %cst_215 {dimension_numbers = #tpu.dot_dimension_numbers<[1], [0], [0], [1], [0, 0, 1, 1], [], []>} : vector<15x24xf32>, vector<24x16xf32>, vector<15x16xf32> -> vector<15x16xf32>
    %c240_216 = arith.constant 240 : index
    %c0_217 = arith.constant 0 : index
    %337 = vector.load %arg1[%c240_216, %c0_217] : memref<824x24xf32, #tpu.memory_space<vmem>>, vector<15x16xf32>
    %338 = arith.addf %336, %337 : vector<15x16xf32>
    %c255_218 = arith.constant 255 : index
    %c0_219 = arith.constant 0 : index
    %339 = vector.load %arg1[%c255_218, %c0_219] : memref<824x24xf32, #tpu.memory_space<vmem>>, vector<15x16xf32>
    %c270_220 = arith.constant 270 : index
    %c0_221 = arith.constant 0 : index
    %340 = vector.load %arg1[%c270_220, %c0_221] : memref<824x24xf32, #tpu.memory_space<vmem>>, vector<15x16xf32>
    %cst_222 = arith.constant dense<0.000000e+00> : vector<15xf32>
    %341 = vector.multi_reduction <add>, %338, %cst_222 [1] : vector<15x16xf32> to vector<15xf32>
    %342 = vector.shape_cast %341 : vector<15xf32> to vector<15x1xf32>
    %cst_223 = arith.constant 1.600000e+01 : f32
    %343 = vector.broadcast %cst_223 : f32 to vector<15x1xf32>
    %344 = arith.divf %342, %343 : vector<15x1xf32>
    %345 = vector.broadcast %344 : vector<15x1xf32> to vector<15x16xf32>
    %346 = arith.subf %338, %345 : vector<15x16xf32>
    %347 = arith.mulf %346, %346 : vector<15x16xf32>
    %cst_224 = arith.constant dense<0.000000e+00> : vector<15xf32>
    %348 = vector.multi_reduction <add>, %347, %cst_224 [1] : vector<15x16xf32> to vector<15xf32>
    %349 = vector.shape_cast %348 : vector<15xf32> to vector<15x1xf32>
    %cst_225 = arith.constant 1.600000e+01 : f32
    %350 = vector.broadcast %cst_225 : f32 to vector<15x1xf32>
    %351 = arith.divf %349, %350 : vector<15x1xf32>
    %cst_226 = arith.constant 9.99999974E-6 : f32
    %352 = vector.broadcast %cst_226 : f32 to vector<15x1xf32>
    %353 = arith.addf %351, %352 : vector<15x1xf32>
    %354 = math.rsqrt %353 : vector<15x1xf32>
    %355 = vector.broadcast %354 : vector<15x1xf32> to vector<15x16xf32>
    %356 = arith.mulf %346, %355 : vector<15x16xf32>
    %357 = arith.mulf %356, %339 : vector<15x16xf32>
    %358 = arith.addf %357, %340 : vector<15x16xf32>
    %cst_227 = arith.constant 0.000000e+00 : f32
    %359 = vector.broadcast %cst_227 : f32 to vector<15x16xf32>
    %360 = arith.maximumf %358, %359 : vector<15x16xf32>
    %c0_228 = arith.constant 0 : index
    %c0_229 = arith.constant 0 : index
    %361 = vector.load %arg3[%c0_228, %c0_229] : memref<16x16xf32, #tpu.memory_space<vmem>>, vector<15x16xf32>
    tpu.vector_store %arg3[%c0_228, %c0_229], %360 {strides = array<i32>} : memref<16x16xf32, #tpu.memory_space<vmem>>, vector<15x16xf32>,
    %c0_230 = arith.constant 0 : index
    %c0_231 = arith.constant 0 : index
    %362 = vector.load %arg3[%c0_230, %c0_231] : memref<16x16xf32, #tpu.memory_space<vmem>>, vector<15x16xf32>
    %c1_232 = arith.constant 1 : index
    %c0_233 = arith.constant 0 : index
    %363 = vector.load %arg3[%c1_232, %c0_233] : memref<16x16xf32, #tpu.memory_space<vmem>>, vector<15x16xf32>
    %c49_234 = arith.constant 49 : index
    %c0_235 = arith.constant 0 : index
    %364 = vector.load %arg1[%c49_234, %c0_235] : memref<824x24xf32, #tpu.memory_space<vmem>>, vector<16x24xf32>
    %cst_236 = arith.constant dense<0.000000e+00> : vector<15x24xf32>
    %365 = tpu.matmul %362, %364, %cst_236 {dimension_numbers = #tpu.dot_dimension_numbers<[1], [0], [0], [1], [0, 0, 1, 1], [], []>} : vector<15x16xf32>, vector<16x24xf32>, vector<15x24xf32> -> vector<15x24xf32>
    %c65_237 = arith.constant 65 : index
    %c0_238 = arith.constant 0 : index
    %366 = vector.load %arg1[%c65_237, %c0_238] : memref<824x24xf32, #tpu.memory_space<vmem>>, vector<16x24xf32>
    %cst_239 = arith.constant dense<0.000000e+00> : vector<15x24xf32>
    %367 = tpu.matmul %363, %366, %cst_239 {dimension_numbers = #tpu.dot_dimension_numbers<[1], [0], [0], [1], [0, 0, 1, 1], [], []>} : vector<15x16xf32>, vector<16x24xf32>, vector<15x24xf32> -> vector<15x24xf32>
    %368 = arith.addf %365, %367 : vector<15x24xf32>
    %c171 = arith.constant 171 : index
    %c0_240 = arith.constant 0 : index
    %369 = vector.load %arg1[%c171, %c0_240] : memref<824x24xf32, #tpu.memory_space<vmem>>, vector<15x24xf32>
    %370 = arith.addf %368, %369 : vector<15x24xf32>
    %c186_241 = arith.constant 186 : index
    %c0_242 = arith.constant 0 : index
    %371 = vector.load %arg1[%c186_241, %c0_242] : memref<824x24xf32, #tpu.memory_space<vmem>>, vector<15x24xf32>
    %c201_243 = arith.constant 201 : index
    %c0_244 = arith.constant 0 : index
    %372 = vector.load %arg1[%c201_243, %c0_244] : memref<824x24xf32, #tpu.memory_space<vmem>>, vector<15x24xf32>
    %cst_245 = arith.constant dense<0.000000e+00> : vector<15xf32>
    %373 = vector.multi_reduction <add>, %370, %cst_245 [1] : vector<15x24xf32> to vector<15xf32>
    %374 = vector.shape_cast %373 : vector<15xf32> to vector<15x1xf32>
    %cst_246 = arith.constant 2.400000e+01 : f32
    %375 = vector.broadcast %cst_246 : f32 to vector<15x1xf32>
    %376 = arith.divf %374, %375 : vector<15x1xf32>
    %377 = vector.broadcast %376 : vector<15x1xf32> to vector<15x24xf32>
    %378 = arith.subf %370, %377 : vector<15x24xf32>
    %379 = arith.mulf %378, %378 : vector<15x24xf32>
    %cst_247 = arith.constant dense<0.000000e+00> : vector<15xf32>
    %380 = vector.multi_reduction <add>, %379, %cst_247 [1] : vector<15x24xf32> to vector<15xf32>
    %381 = vector.shape_cast %380 : vector<15xf32> to vector<15x1xf32>
    %cst_248 = arith.constant 2.400000e+01 : f32
    %382 = vector.broadcast %cst_248 : f32 to vector<15x1xf32>
    %383 = arith.divf %381, %382 : vector<15x1xf32>
    %cst_249 = arith.constant 9.99999974E-6 : f32
    %384 = vector.broadcast %cst_249 : f32 to vector<15x1xf32>
    %385 = arith.addf %383, %384 : vector<15x1xf32>
    %386 = math.rsqrt %385 : vector<15x1xf32>
    %387 = vector.broadcast %386 : vector<15x1xf32> to vector<15x24xf32>
    %388 = arith.mulf %378, %387 : vector<15x24xf32>
    %389 = arith.mulf %388, %371 : vector<15x24xf32>
    %390 = arith.addf %389, %372 : vector<15x24xf32>
    %cst_250 = arith.constant 0.000000e+00 : f32
    %391 = vector.broadcast %cst_250 : f32 to vector<15x24xf32>
    %392 = arith.maximumf %390, %391 : vector<15x24xf32>
    %c216_251 = arith.constant 216 : index
    %c0_252 = arith.constant 0 : index
    %393 = vector.load %arg1[%c216_251, %c0_252] : memref<824x24xf32, #tpu.memory_space<vmem>>, vector<24x16xf32>
    %cst_253 = arith.constant dense<0.000000e+00> : vector<15x16xf32>
    %394 = tpu.matmul %392, %393, %cst_253 {dimension_numbers = #tpu.dot_dimension_numbers<[1], [0], [0], [1], [0, 0, 1, 1], [], []>} : vector<15x24xf32>, vector<24x16xf32>, vector<15x16xf32> -> vector<15x16xf32>
    %c240_254 = arith.constant 240 : index
    %c0_255 = arith.constant 0 : index
    %395 = vector.load %arg1[%c240_254, %c0_255] : memref<824x24xf32, #tpu.memory_space<vmem>>, vector<15x16xf32>
    %396 = arith.addf %394, %395 : vector<15x16xf32>
    %c255_256 = arith.constant 255 : index
    %c0_257 = arith.constant 0 : index
    %397 = vector.load %arg1[%c255_256, %c0_257] : memref<824x24xf32, #tpu.memory_space<vmem>>, vector<15x16xf32>
    %c270_258 = arith.constant 270 : index
    %c0_259 = arith.constant 0 : index
    %398 = vector.load %arg1[%c270_258, %c0_259] : memref<824x24xf32, #tpu.memory_space<vmem>>, vector<15x16xf32>
    %cst_260 = arith.constant dense<0.000000e+00> : vector<15xf32>
    %399 = vector.multi_reduction <add>, %396, %cst_260 [1] : vector<15x16xf32> to vector<15xf32>
    %400 = vector.shape_cast %399 : vector<15xf32> to vector<15x1xf32>
    %cst_261 = arith.constant 1.600000e+01 : f32
    %401 = vector.broadcast %cst_261 : f32 to vector<15x1xf32>
    %402 = arith.divf %400, %401 : vector<15x1xf32>
    %403 = vector.broadcast %402 : vector<15x1xf32> to vector<15x16xf32>
    %404 = arith.subf %396, %403 : vector<15x16xf32>
    %405 = arith.mulf %404, %404 : vector<15x16xf32>
    %cst_262 = arith.constant dense<0.000000e+00> : vector<15xf32>
    %406 = vector.multi_reduction <add>, %405, %cst_262 [1] : vector<15x16xf32> to vector<15xf32>
    %407 = vector.shape_cast %406 : vector<15xf32> to vector<15x1xf32>
    %cst_263 = arith.constant 1.600000e+01 : f32
    %408 = vector.broadcast %cst_263 : f32 to vector<15x1xf32>
    %409 = arith.divf %407, %408 : vector<15x1xf32>
    %cst_264 = arith.constant 9.99999974E-6 : f32
    %410 = vector.broadcast %cst_264 : f32 to vector<15x1xf32>
    %411 = arith.addf %409, %410 : vector<15x1xf32>
    %412 = math.rsqrt %411 : vector<15x1xf32>
    %413 = vector.broadcast %412 : vector<15x1xf32> to vector<15x16xf32>
    %414 = arith.mulf %404, %413 : vector<15x16xf32>
    %415 = arith.mulf %414, %397 : vector<15x16xf32>
    %416 = arith.addf %415, %398 : vector<15x16xf32>
    %cst_265 = arith.constant 0.000000e+00 : f32
    %417 = vector.broadcast %cst_265 : f32 to vector<15x16xf32>
    %418 = arith.maximumf %416, %417 : vector<15x16xf32>
    %c0_266 = arith.constant 0 : index
    %c0_267 = arith.constant 0 : index
    %419 = vector.load %arg3[%c0_266, %c0_267] : memref<16x16xf32, #tpu.memory_space<vmem>>, vector<15x16xf32>
    tpu.vector_store %arg3[%c0_266, %c0_267], %418 {strides = array<i32>} : memref<16x16xf32, #tpu.memory_space<vmem>>, vector<15x16xf32>,
    %c0_268 = arith.constant 0 : index
    %c0_269 = arith.constant 0 : index
    %420 = vector.load %arg3[%c0_268, %c0_269] : memref<16x16xf32, #tpu.memory_space<vmem>>, vector<16x16xf32>
    %c285 = arith.constant 285 : index
    %c0_270 = arith.constant 0 : index
    %421 = vector.load %arg1[%c285, %c0_270] : memref<824x24xf32, #tpu.memory_space<vmem>>, vector<16x24xf32>
    %cst_271 = arith.constant dense<0.000000e+00> : vector<16x24xf32>
    %422 = tpu.matmul %420, %421, %cst_271 {dimension_numbers = #tpu.dot_dimension_numbers<[1], [0], [0], [1], [0, 0, 1, 1], [], []>} : vector<16x16xf32>, vector<16x24xf32>, vector<16x24xf32> -> vector<16x24xf32>
    %c301 = arith.constant 301 : index
    %c0_272 = arith.constant 0 : index
    %423 = vector.load %arg1[%c301, %c0_272] : memref<824x24xf32, #tpu.memory_space<vmem>>, vector<16x24xf32>
    %424 = arith.addf %422, %423 : vector<16x24xf32>
    %c413 = arith.constant 413 : index
    %c0_273 = arith.constant 0 : index
    %425 = vector.load %arg1[%c413, %c0_273] : memref<824x24xf32, #tpu.memory_space<vmem>>, vector<16x24xf32>
    %c429 = arith.constant 429 : index
    %c0_274 = arith.constant 0 : index
    %426 = vector.load %arg1[%c429, %c0_274] : memref<824x24xf32, #tpu.memory_space<vmem>>, vector<16x24xf32>
    %cst_275 = arith.constant dense<0.000000e+00> : vector<16xf32>
    %427 = vector.multi_reduction <add>, %424, %cst_275 [1] : vector<16x24xf32> to vector<16xf32>
    %428 = vector.shape_cast %427 : vector<16xf32> to vector<16x1xf32>
    %cst_276 = arith.constant 2.400000e+01 : f32
    %429 = vector.broadcast %cst_276 : f32 to vector<16x1xf32>
    %430 = arith.divf %428, %429 : vector<16x1xf32>
    %431 = vector.broadcast %430 : vector<16x1xf32> to vector<16x24xf32>
    %432 = arith.subf %424, %431 : vector<16x24xf32>
    %433 = arith.mulf %432, %432 : vector<16x24xf32>
    %cst_277 = arith.constant dense<0.000000e+00> : vector<16xf32>
    %434 = vector.multi_reduction <add>, %433, %cst_277 [1] : vector<16x24xf32> to vector<16xf32>
    %435 = vector.shape_cast %434 : vector<16xf32> to vector<16x1xf32>
    %cst_278 = arith.constant 2.400000e+01 : f32
    %436 = vector.broadcast %cst_278 : f32 to vector<16x1xf32>
    %437 = arith.divf %435, %436 : vector<16x1xf32>
    %cst_279 = arith.constant 9.99999974E-6 : f32
    %438 = vector.broadcast %cst_279 : f32 to vector<16x1xf32>
    %439 = arith.addf %437, %438 : vector<16x1xf32>
    %440 = math.rsqrt %439 : vector<16x1xf32>
    %441 = vector.broadcast %440 : vector<16x1xf32> to vector<16x24xf32>
    %442 = arith.mulf %432, %441 : vector<16x24xf32>
    %443 = arith.mulf %442, %425 : vector<16x24xf32>
    %444 = arith.addf %443, %426 : vector<16x24xf32>
    %cst_280 = arith.constant 0.000000e+00 : f32
    %445 = vector.broadcast %cst_280 : f32 to vector<16x24xf32>
    %446 = arith.maximumf %444, %445 : vector<16x24xf32>
    %c445 = arith.constant 445 : index
    %c0_281 = arith.constant 0 : index
    %447 = vector.load %arg1[%c445, %c0_281] : memref<824x24xf32, #tpu.memory_space<vmem>>, vector<24x16xf32>
    %cst_282 = arith.constant dense<0.000000e+00> : vector<16x16xf32>
    %448 = tpu.matmul %446, %447, %cst_282 {dimension_numbers = #tpu.dot_dimension_numbers<[1], [0], [0], [1], [0, 0, 1, 1], [], []>} : vector<16x24xf32>, vector<24x16xf32>, vector<16x16xf32> -> vector<16x16xf32>
    %c469 = arith.constant 469 : index
    %c0_283 = arith.constant 0 : index
    %449 = vector.load %arg1[%c469, %c0_283] : memref<824x24xf32, #tpu.memory_space<vmem>>, vector<16x16xf32>
    %450 = arith.addf %448, %449 : vector<16x16xf32>
    %c485 = arith.constant 485 : index
    %c0_284 = arith.constant 0 : index
    %451 = vector.load %arg1[%c485, %c0_284] : memref<824x24xf32, #tpu.memory_space<vmem>>, vector<24x16xf32>
    %cst_285 = arith.constant dense<0.000000e+00> : vector<16x16xf32>
    %452 = tpu.matmul %446, %451, %cst_285 {dimension_numbers = #tpu.dot_dimension_numbers<[1], [0], [0], [1], [0, 0, 1, 1], [], []>} : vector<16x24xf32>, vector<24x16xf32>, vector<16x16xf32> -> vector<16x16xf32>
    %c509 = arith.constant 509 : index
    %c0_286 = arith.constant 0 : index
    %453 = vector.load %arg1[%c509, %c0_286] : memref<824x24xf32, #tpu.memory_space<vmem>>, vector<16x16xf32>
    %454 = arith.addf %452, %453 : vector<16x16xf32>
    %c525 = arith.constant 525 : index
    %c0_287 = arith.constant 0 : index
    %455 = vector.load %arg1[%c525, %c0_287] : memref<824x24xf32, #tpu.memory_space<vmem>>, vector<15x16xf32>
    %456 = vector.extract_strided_slice %454 {offsets = [0, 0], sizes = [15, 16], strides = [1, 1]} : vector<16x16xf32> to vector<15x16xf32>
    %457 = arith.mulf %455, %456 : vector<15x16xf32>
    %c630 = arith.constant 630 : index
    %c0_288 = arith.constant 0 : index
    %458 = vector.load %arg1[%c630, %c0_288] : memref<824x24xf32, #tpu.memory_space<vmem>>, vector<15x16xf32>
    %459 = vector.extract_strided_slice %450 {offsets = [1, 0], sizes = [15, 16], strides = [1, 1]} : vector<16x16xf32> to vector<15x16xf32>
    %460 = arith.mulf %458, %459 : vector<15x16xf32>
    %461 = arith.addf %457, %460 : vector<15x16xf32>
    %c735 = arith.constant 735 : index
    %c0_289 = arith.constant 0 : index
    %462 = vector.load %arg1[%c735, %c0_289] : memref<824x24xf32, #tpu.memory_space<vmem>>, vector<15x16xf32>
    %c750 = arith.constant 750 : index
    %c0_290 = arith.constant 0 : index
    %463 = vector.load %arg1[%c750, %c0_290] : memref<824x24xf32, #tpu.memory_space<vmem>>, vector<15x16xf32>
    %cst_291 = arith.constant dense<0.000000e+00> : vector<15xf32>
    %464 = vector.multi_reduction <add>, %461, %cst_291 [1] : vector<15x16xf32> to vector<15xf32>
    %465 = vector.shape_cast %464 : vector<15xf32> to vector<15x1xf32>
    %cst_292 = arith.constant 1.600000e+01 : f32
    %466 = vector.broadcast %cst_292 : f32 to vector<15x1xf32>
    %467 = arith.divf %465, %466 : vector<15x1xf32>
    %468 = vector.broadcast %467 : vector<15x1xf32> to vector<15x16xf32>
    %469 = arith.subf %461, %468 : vector<15x16xf32>
    %470 = arith.mulf %469, %469 : vector<15x16xf32>
    %cst_293 = arith.constant dense<0.000000e+00> : vector<15xf32>
    %471 = vector.multi_reduction <add>, %470, %cst_293 [1] : vector<15x16xf32> to vector<15xf32>
    %472 = vector.shape_cast %471 : vector<15xf32> to vector<15x1xf32>
    %cst_294 = arith.constant 1.600000e+01 : f32
    %473 = vector.broadcast %cst_294 : f32 to vector<15x1xf32>
    %474 = arith.divf %472, %473 : vector<15x1xf32>
    %cst_295 = arith.constant 9.99999974E-6 : f32
    %475 = vector.broadcast %cst_295 : f32 to vector<15x1xf32>
    %476 = arith.addf %474, %475 : vector<15x1xf32>
    %477 = math.rsqrt %476 : vector<15x1xf32>
    %478 = vector.broadcast %477 : vector<15x1xf32> to vector<15x16xf32>
    %479 = arith.mulf %469, %478 : vector<15x16xf32>
    %480 = arith.mulf %479, %462 : vector<15x16xf32>
    %481 = arith.addf %480, %463 : vector<15x16xf32>
    %cst_296 = arith.constant 0.000000e+00 : f32
    %482 = vector.broadcast %cst_296 : f32 to vector<15x16xf32>
    %483 = arith.maximumf %481, %482 : vector<15x16xf32>
    %c1_297 = arith.constant 1 : index
    %c0_298 = arith.constant 0 : index
    %484 = vector.load %arg3[%c1_297, %c0_298] : memref<16x16xf32, #tpu.memory_space<vmem>>, vector<15x16xf32>
    tpu.vector_store %arg3[%c1_297, %c0_298], %483 {strides = array<i32>} : memref<16x16xf32, #tpu.memory_space<vmem>>, vector<15x16xf32>,
    %485 = vector.extract_strided_slice %450 {offsets = [0, 0], sizes = [1, 16], strides = [1, 1]} : vector<16x16xf32> to vector<1x16xf32>
    %c735_299 = arith.constant 735 : index
    %c0_300 = arith.constant 0 : index
    %486 = vector.load %arg1[%c735_299, %c0_300] : memref<824x24xf32, #tpu.memory_space<vmem>>, vector<1x16xf32>
    %c750_301 = arith.constant 750 : index
    %c0_302 = arith.constant 0 : index
    %487 = vector.load %arg1[%c750_301, %c0_302] : memref<824x24xf32, #tpu.memory_space<vmem>>, vector<1x16xf32>
    %cst_303 = arith.constant dense<0.000000e+00> : vector<1xf32>
    %488 = vector.multi_reduction <add>, %485, %cst_303 [1] : vector<1x16xf32> to vector<1xf32>
    %489 = vector.shape_cast %488 : vector<1xf32> to vector<1x1xf32>
    %cst_304 = arith.constant 1.600000e+01 : f32
    %490 = vector.broadcast %cst_304 : f32 to vector<1x1xf32>
    %491 = arith.divf %489, %490 : vector<1x1xf32>
    %492 = vector.broadcast %491 : vector<1x1xf32> to vector<1x16xf32>
    %493 = arith.subf %485, %492 : vector<1x16xf32>
    %494 = arith.mulf %493, %493 : vector<1x16xf32>
    %cst_305 = arith.constant dense<0.000000e+00> : vector<1xf32>
    %495 = vector.multi_reduction <add>, %494, %cst_305 [1] : vector<1x16xf32> to vector<1xf32>
    %496 = vector.shape_cast %495 : vector<1xf32> to vector<1x1xf32>
    %cst_306 = arith.constant 1.600000e+01 : f32
    %497 = vector.broadcast %cst_306 : f32 to vector<1x1xf32>
    %498 = arith.divf %496, %497 : vector<1x1xf32>
    %cst_307 = arith.constant 9.99999974E-6 : f32
    %499 = vector.broadcast %cst_307 : f32 to vector<1x1xf32>
    %500 = arith.addf %498, %499 : vector<1x1xf32>
    %501 = math.rsqrt %500 : vector<1x1xf32>
    %502 = vector.broadcast %501 : vector<1x1xf32> to vector<1x16xf32>
    %503 = arith.mulf %493, %502 : vector<1x16xf32>
    %504 = arith.mulf %503, %486 : vector<1x16xf32>
    %505 = arith.addf %504, %487 : vector<1x16xf32>
    %cst_308 = arith.constant 0.000000e+00 : f32
    %506 = vector.broadcast %cst_308 : f32 to vector<1x16xf32>
    %507 = arith.maximumf %505, %506 : vector<1x16xf32>
    %c0_309 = arith.constant 0 : index
    %c0_310 = arith.constant 0 : index
    %508 = vector.load %arg3[%c0_309, %c0_310] : memref<16x16xf32, #tpu.memory_space<vmem>>, vector<1x16xf32>
    tpu.vector_store %arg3[%c0_309, %c0_310], %507 {strides = array<i32>} : memref<16x16xf32, #tpu.memory_space<vmem>>, vector<1x16xf32>,
    %c0_311 = arith.constant 0 : index
    %c0_312 = arith.constant 0 : index
    %509 = vector.load %arg3[%c0_311, %c0_312] : memref<16x16xf32, #tpu.memory_space<vmem>>, vector<16x16xf32>
    %c285_313 = arith.constant 285 : index
    %c0_314 = arith.constant 0 : index
    %510 = vector.load %arg1[%c285_313, %c0_314] : memref<824x24xf32, #tpu.memory_space<vmem>>, vector<16x24xf32>
    %cst_315 = arith.constant dense<0.000000e+00> : vector<16x24xf32>
    %511 = tpu.matmul %509, %510, %cst_315 {dimension_numbers = #tpu.dot_dimension_numbers<[1], [0], [0], [1], [0, 0, 1, 1], [], []>} : vector<16x16xf32>, vector<16x24xf32>, vector<16x24xf32> -> vector<16x24xf32>
    %c317 = arith.constant 317 : index
    %c0_316 = arith.constant 0 : index
    %512 = vector.load %arg1[%c317, %c0_316] : memref<824x24xf32, #tpu.memory_space<vmem>>, vector<16x24xf32>
    %513 = arith.addf %511, %512 : vector<16x24xf32>
    %c413_317 = arith.constant 413 : index
    %c0_318 = arith.constant 0 : index
    %514 = vector.load %arg1[%c413_317, %c0_318] : memref<824x24xf32, #tpu.memory_space<vmem>>, vector<16x24xf32>
    %c429_319 = arith.constant 429 : index
    %c0_320 = arith.constant 0 : index
    %515 = vector.load %arg1[%c429_319, %c0_320] : memref<824x24xf32, #tpu.memory_space<vmem>>, vector<16x24xf32>
    %cst_321 = arith.constant dense<0.000000e+00> : vector<16xf32>
    %516 = vector.multi_reduction <add>, %513, %cst_321 [1] : vector<16x24xf32> to vector<16xf32>
    %517 = vector.shape_cast %516 : vector<16xf32> to vector<16x1xf32>
    %cst_322 = arith.constant 2.400000e+01 : f32
    %518 = vector.broadcast %cst_322 : f32 to vector<16x1xf32>
    %519 = arith.divf %517, %518 : vector<16x1xf32>
    %520 = vector.broadcast %519 : vector<16x1xf32> to vector<16x24xf32>
    %521 = arith.subf %513, %520 : vector<16x24xf32>
    %522 = arith.mulf %521, %521 : vector<16x24xf32>
    %cst_323 = arith.constant dense<0.000000e+00> : vector<16xf32>
    %523 = vector.multi_reduction <add>, %522, %cst_323 [1] : vector<16x24xf32> to vector<16xf32>
    %524 = vector.shape_cast %523 : vector<16xf32> to vector<16x1xf32>
    %cst_324 = arith.constant 2.400000e+01 : f32
    %525 = vector.broadcast %cst_324 : f32 to vector<16x1xf32>
    %526 = arith.divf %524, %525 : vector<16x1xf32>
    %cst_325 = arith.constant 9.99999974E-6 : f32
    %527 = vector.broadcast %cst_325 : f32 to vector<16x1xf32>
    %528 = arith.addf %526, %527 : vector<16x1xf32>
    %529 = math.rsqrt %528 : vector<16x1xf32>
    %530 = vector.broadcast %529 : vector<16x1xf32> to vector<16x24xf32>
    %531 = arith.mulf %521, %530 : vector<16x24xf32>
    %532 = arith.mulf %531, %514 : vector<16x24xf32>
    %533 = arith.addf %532, %515 : vector<16x24xf32>
    %cst_326 = arith.constant 0.000000e+00 : f32
    %534 = vector.broadcast %cst_326 : f32 to vector<16x24xf32>
    %535 = arith.maximumf %533, %534 : vector<16x24xf32>
    %c445_327 = arith.constant 445 : index
    %c0_328 = arith.constant 0 : index
    %536 = vector.load %arg1[%c445_327, %c0_328] : memref<824x24xf32, #tpu.memory_space<vmem>>, vector<24x16xf32>
    %cst_329 = arith.constant dense<0.000000e+00> : vector<16x16xf32>
    %537 = tpu.matmul %535, %536, %cst_329 {dimension_numbers = #tpu.dot_dimension_numbers<[1], [0], [0], [1], [0, 0, 1, 1], [], []>} : vector<16x24xf32>, vector<24x16xf32>, vector<16x16xf32> -> vector<16x16xf32>
    %c469_330 = arith.constant 469 : index
    %c0_331 = arith.constant 0 : index
    %538 = vector.load %arg1[%c469_330, %c0_331] : memref<824x24xf32, #tpu.memory_space<vmem>>, vector<16x16xf32>
    %539 = arith.addf %537, %538 : vector<16x16xf32>
    %c485_332 = arith.constant 485 : index
    %c0_333 = arith.constant 0 : index
    %540 = vector.load %arg1[%c485_332, %c0_333] : memref<824x24xf32, #tpu.memory_space<vmem>>, vector<24x16xf32>
    %cst_334 = arith.constant dense<0.000000e+00> : vector<16x16xf32>
    %541 = tpu.matmul %535, %540, %cst_334 {dimension_numbers = #tpu.dot_dimension_numbers<[1], [0], [0], [1], [0, 0, 1, 1], [], []>} : vector<16x24xf32>, vector<24x16xf32>, vector<16x16xf32> -> vector<16x16xf32>
    %c509_335 = arith.constant 509 : index
    %c0_336 = arith.constant 0 : index
    %542 = vector.load %arg1[%c509_335, %c0_336] : memref<824x24xf32, #tpu.memory_space<vmem>>, vector<16x16xf32>
    %543 = arith.addf %541, %542 : vector<16x16xf32>
    %c540 = arith.constant 540 : index
    %c0_337 = arith.constant 0 : index
    %544 = vector.load %arg1[%c540, %c0_337] : memref<824x24xf32, #tpu.memory_space<vmem>>, vector<15x16xf32>
    %545 = vector.extract_strided_slice %543 {offsets = [0, 0], sizes = [15, 16], strides = [1, 1]} : vector<16x16xf32> to vector<15x16xf32>
    %546 = arith.mulf %544, %545 : vector<15x16xf32>
    %c645 = arith.constant 645 : index
    %c0_338 = arith.constant 0 : index
    %547 = vector.load %arg1[%c645, %c0_338] : memref<824x24xf32, #tpu.memory_space<vmem>>, vector<15x16xf32>
    %548 = vector.extract_strided_slice %539 {offsets = [1, 0], sizes = [15, 16], strides = [1, 1]} : vector<16x16xf32> to vector<15x16xf32>
    %549 = arith.mulf %547, %548 : vector<15x16xf32>
    %550 = arith.addf %546, %549 : vector<15x16xf32>
    %c735_339 = arith.constant 735 : index
    %c0_340 = arith.constant 0 : index
    %551 = vector.load %arg1[%c735_339, %c0_340] : memref<824x24xf32, #tpu.memory_space<vmem>>, vector<15x16xf32>
    %c750_341 = arith.constant 750 : index
    %c0_342 = arith.constant 0 : index
    %552 = vector.load %arg1[%c750_341, %c0_342] : memref<824x24xf32, #tpu.memory_space<vmem>>, vector<15x16xf32>
    %cst_343 = arith.constant dense<0.000000e+00> : vector<15xf32>
    %553 = vector.multi_reduction <add>, %550, %cst_343 [1] : vector<15x16xf32> to vector<15xf32>
    %554 = vector.shape_cast %553 : vector<15xf32> to vector<15x1xf32>
    %cst_344 = arith.constant 1.600000e+01 : f32
    %555 = vector.broadcast %cst_344 : f32 to vector<15x1xf32>
    %556 = arith.divf %554, %555 : vector<15x1xf32>
    %557 = vector.broadcast %556 : vector<15x1xf32> to vector<15x16xf32>
    %558 = arith.subf %550, %557 : vector<15x16xf32>
    %559 = arith.mulf %558, %558 : vector<15x16xf32>
    %cst_345 = arith.constant dense<0.000000e+00> : vector<15xf32>
    %560 = vector.multi_reduction <add>, %559, %cst_345 [1] : vector<15x16xf32> to vector<15xf32>
    %561 = vector.shape_cast %560 : vector<15xf32> to vector<15x1xf32>
    %cst_346 = arith.constant 1.600000e+01 : f32
    %562 = vector.broadcast %cst_346 : f32 to vector<15x1xf32>
    %563 = arith.divf %561, %562 : vector<15x1xf32>
    %cst_347 = arith.constant 9.99999974E-6 : f32
    %564 = vector.broadcast %cst_347 : f32 to vector<15x1xf32>
    %565 = arith.addf %563, %564 : vector<15x1xf32>
    %566 = math.rsqrt %565 : vector<15x1xf32>
    %567 = vector.broadcast %566 : vector<15x1xf32> to vector<15x16xf32>
    %568 = arith.mulf %558, %567 : vector<15x16xf32>
    %569 = arith.mulf %568, %551 : vector<15x16xf32>
    %570 = arith.addf %569, %552 : vector<15x16xf32>
    %cst_348 = arith.constant 0.000000e+00 : f32
    %571 = vector.broadcast %cst_348 : f32 to vector<15x16xf32>
    %572 = arith.maximumf %570, %571 : vector<15x16xf32>
    %c1_349 = arith.constant 1 : index
    %c0_350 = arith.constant 0 : index
    %573 = vector.load %arg3[%c1_349, %c0_350] : memref<16x16xf32, #tpu.memory_space<vmem>>, vector<15x16xf32>
    tpu.vector_store %arg3[%c1_349, %c0_350], %572 {strides = array<i32>} : memref<16x16xf32, #tpu.memory_space<vmem>>, vector<15x16xf32>,
    %574 = vector.extract_strided_slice %539 {offsets = [0, 0], sizes = [1, 16], strides = [1, 1]} : vector<16x16xf32> to vector<1x16xf32>
    %c735_351 = arith.constant 735 : index
    %c0_352 = arith.constant 0 : index
    %575 = vector.load %arg1[%c735_351, %c0_352] : memref<824x24xf32, #tpu.memory_space<vmem>>, vector<1x16xf32>
    %c750_353 = arith.constant 750 : index
    %c0_354 = arith.constant 0 : index
    %576 = vector.load %arg1[%c750_353, %c0_354] : memref<824x24xf32, #tpu.memory_space<vmem>>, vector<1x16xf32>
    %cst_355 = arith.constant dense<0.000000e+00> : vector<1xf32>
    %577 = vector.multi_reduction <add>, %574, %cst_355 [1] : vector<1x16xf32> to vector<1xf32>
    %578 = vector.shape_cast %577 : vector<1xf32> to vector<1x1xf32>
    %cst_356 = arith.constant 1.600000e+01 : f32
    %579 = vector.broadcast %cst_356 : f32 to vector<1x1xf32>
    %580 = arith.divf %578, %579 : vector<1x1xf32>
    %581 = vector.broadcast %580 : vector<1x1xf32> to vector<1x16xf32>
    %582 = arith.subf %574, %581 : vector<1x16xf32>
    %583 = arith.mulf %582, %582 : vector<1x16xf32>
    %cst_357 = arith.constant dense<0.000000e+00> : vector<1xf32>
    %584 = vector.multi_reduction <add>, %583, %cst_357 [1] : vector<1x16xf32> to vector<1xf32>
    %585 = vector.shape_cast %584 : vector<1xf32> to vector<1x1xf32>
    %cst_358 = arith.constant 1.600000e+01 : f32
    %586 = vector.broadcast %cst_358 : f32 to vector<1x1xf32>
    %587 = arith.divf %585, %586 : vector<1x1xf32>
    %cst_359 = arith.constant 9.99999974E-6 : f32
    %588 = vector.broadcast %cst_359 : f32 to vector<1x1xf32>
    %589 = arith.addf %587, %588 : vector<1x1xf32>
    %590 = math.rsqrt %589 : vector<1x1xf32>
    %591 = vector.broadcast %590 : vector<1x1xf32> to vector<1x16xf32>
    %592 = arith.mulf %582, %591 : vector<1x16xf32>
    %593 = arith.mulf %592, %575 : vector<1x16xf32>
    %594 = arith.addf %593, %576 : vector<1x16xf32>
    %cst_360 = arith.constant 0.000000e+00 : f32
    %595 = vector.broadcast %cst_360 : f32 to vector<1x16xf32>
    %596 = arith.maximumf %594, %595 : vector<1x16xf32>
    %c0_361 = arith.constant 0 : index
    %c0_362 = arith.constant 0 : index
    %597 = vector.load %arg3[%c0_361, %c0_362] : memref<16x16xf32, #tpu.memory_space<vmem>>, vector<1x16xf32>
    tpu.vector_store %arg3[%c0_361, %c0_362], %596 {strides = array<i32>} : memref<16x16xf32, #tpu.memory_space<vmem>>, vector<1x16xf32>,
    %c0_363 = arith.constant 0 : index
    %c0_364 = arith.constant 0 : index
    %598 = vector.load %arg3[%c0_363, %c0_364] : memref<16x16xf32, #tpu.memory_space<vmem>>, vector<16x16xf32>
    %c285_365 = arith.constant 285 : index
    %c0_366 = arith.constant 0 : index
    %599 = vector.load %arg1[%c285_365, %c0_366] : memref<824x24xf32, #tpu.memory_space<vmem>>, vector<16x24xf32>
    %cst_367 = arith.constant dense<0.000000e+00> : vector<16x24xf32>
    %600 = tpu.matmul %598, %599, %cst_367 {dimension_numbers = #tpu.dot_dimension_numbers<[1], [0], [0], [1], [0, 0, 1, 1], [], []>} : vector<16x16xf32>, vector<16x24xf32>, vector<16x24xf32> -> vector<16x24xf32>
    %c333 = arith.constant 333 : index
    %c0_368 = arith.constant 0 : index
    %601 = vector.load %arg1[%c333, %c0_368] : memref<824x24xf32, #tpu.memory_space<vmem>>, vector<16x24xf32>
    %602 = arith.addf %600, %601 : vector<16x24xf32>
    %c413_369 = arith.constant 413 : index
    %c0_370 = arith.constant 0 : index
    %603 = vector.load %arg1[%c413_369, %c0_370] : memref<824x24xf32, #tpu.memory_space<vmem>>, vector<16x24xf32>
    %c429_371 = arith.constant 429 : index
    %c0_372 = arith.constant 0 : index
    %604 = vector.load %arg1[%c429_371, %c0_372] : memref<824x24xf32, #tpu.memory_space<vmem>>, vector<16x24xf32>
    %cst_373 = arith.constant dense<0.000000e+00> : vector<16xf32>
    %605 = vector.multi_reduction <add>, %602, %cst_373 [1] : vector<16x24xf32> to vector<16xf32>
    %606 = vector.shape_cast %605 : vector<16xf32> to vector<16x1xf32>
    %cst_374 = arith.constant 2.400000e+01 : f32
    %607 = vector.broadcast %cst_374 : f32 to vector<16x1xf32>
    %608 = arith.divf %606, %607 : vector<16x1xf32>
    %609 = vector.broadcast %608 : vector<16x1xf32> to vector<16x24xf32>
    %610 = arith.subf %602, %609 : vector<16x24xf32>
    %611 = arith.mulf %610, %610 : vector<16x24xf32>
    %cst_375 = arith.constant dense<0.000000e+00> : vector<16xf32>
    %612 = vector.multi_reduction <add>, %611, %cst_375 [1] : vector<16x24xf32> to vector<16xf32>
    %613 = vector.shape_cast %612 : vector<16xf32> to vector<16x1xf32>
    %cst_376 = arith.constant 2.400000e+01 : f32
    %614 = vector.broadcast %cst_376 : f32 to vector<16x1xf32>
    %615 = arith.divf %613, %614 : vector<16x1xf32>
    %cst_377 = arith.constant 9.99999974E-6 : f32
    %616 = vector.broadcast %cst_377 : f32 to vector<16x1xf32>
    %617 = arith.addf %615, %616 : vector<16x1xf32>
    %618 = math.rsqrt %617 : vector<16x1xf32>
    %619 = vector.broadcast %618 : vector<16x1xf32> to vector<16x24xf32>
    %620 = arith.mulf %610, %619 : vector<16x24xf32>
    %621 = arith.mulf %620, %603 : vector<16x24xf32>
    %622 = arith.addf %621, %604 : vector<16x24xf32>
    %cst_378 = arith.constant 0.000000e+00 : f32
    %623 = vector.broadcast %cst_378 : f32 to vector<16x24xf32>
    %624 = arith.maximumf %622, %623 : vector<16x24xf32>
    %c445_379 = arith.constant 445 : index
    %c0_380 = arith.constant 0 : index
    %625 = vector.load %arg1[%c445_379, %c0_380] : memref<824x24xf32, #tpu.memory_space<vmem>>, vector<24x16xf32>
    %cst_381 = arith.constant dense<0.000000e+00> : vector<16x16xf32>
    %626 = tpu.matmul %624, %625, %cst_381 {dimension_numbers = #tpu.dot_dimension_numbers<[1], [0], [0], [1], [0, 0, 1, 1], [], []>} : vector<16x24xf32>, vector<24x16xf32>, vector<16x16xf32> -> vector<16x16xf32>
    %c469_382 = arith.constant 469 : index
    %c0_383 = arith.constant 0 : index
    %627 = vector.load %arg1[%c469_382, %c0_383] : memref<824x24xf32, #tpu.memory_space<vmem>>, vector<16x16xf32>
    %628 = arith.addf %626, %627 : vector<16x16xf32>
    %c485_384 = arith.constant 485 : index
    %c0_385 = arith.constant 0 : index
    %629 = vector.load %arg1[%c485_384, %c0_385] : memref<824x24xf32, #tpu.memory_space<vmem>>, vector<24x16xf32>
    %cst_386 = arith.constant dense<0.000000e+00> : vector<16x16xf32>
    %630 = tpu.matmul %624, %629, %cst_386 {dimension_numbers = #tpu.dot_dimension_numbers<[1], [0], [0], [1], [0, 0, 1, 1], [], []>} : vector<16x24xf32>, vector<24x16xf32>, vector<16x16xf32> -> vector<16x16xf32>
    %c509_387 = arith.constant 509 : index
    %c0_388 = arith.constant 0 : index
    %631 = vector.load %arg1[%c509_387, %c0_388] : memref<824x24xf32, #tpu.memory_space<vmem>>, vector<16x16xf32>
    %632 = arith.addf %630, %631 : vector<16x16xf32>
    %c555 = arith.constant 555 : index
    %c0_389 = arith.constant 0 : index
    %633 = vector.load %arg1[%c555, %c0_389] : memref<824x24xf32, #tpu.memory_space<vmem>>, vector<15x16xf32>
    %634 = vector.extract_strided_slice %632 {offsets = [0, 0], sizes = [15, 16], strides = [1, 1]} : vector<16x16xf32> to vector<15x16xf32>
    %635 = arith.mulf %633, %634 : vector<15x16xf32>
    %c660 = arith.constant 660 : index
    %c0_390 = arith.constant 0 : index
    %636 = vector.load %arg1[%c660, %c0_390] : memref<824x24xf32, #tpu.memory_space<vmem>>, vector<15x16xf32>
    %637 = vector.extract_strided_slice %628 {offsets = [1, 0], sizes = [15, 16], strides = [1, 1]} : vector<16x16xf32> to vector<15x16xf32>
    %638 = arith.mulf %636, %637 : vector<15x16xf32>
    %639 = arith.addf %635, %638 : vector<15x16xf32>
    %c735_391 = arith.constant 735 : index
    %c0_392 = arith.constant 0 : index
    %640 = vector.load %arg1[%c735_391, %c0_392] : memref<824x24xf32, #tpu.memory_space<vmem>>, vector<15x16xf32>
    %c750_393 = arith.constant 750 : index
    %c0_394 = arith.constant 0 : index
    %641 = vector.load %arg1[%c750_393, %c0_394] : memref<824x24xf32, #tpu.memory_space<vmem>>, vector<15x16xf32>
    %cst_395 = arith.constant dense<0.000000e+00> : vector<15xf32>
    %642 = vector.multi_reduction <add>, %639, %cst_395 [1] : vector<15x16xf32> to vector<15xf32>
    %643 = vector.shape_cast %642 : vector<15xf32> to vector<15x1xf32>
    %cst_396 = arith.constant 1.600000e+01 : f32
    %644 = vector.broadcast %cst_396 : f32 to vector<15x1xf32>
    %645 = arith.divf %643, %644 : vector<15x1xf32>
    %646 = vector.broadcast %645 : vector<15x1xf32> to vector<15x16xf32>
    %647 = arith.subf %639, %646 : vector<15x16xf32>
    %648 = arith.mulf %647, %647 : vector<15x16xf32>
    %cst_397 = arith.constant dense<0.000000e+00> : vector<15xf32>
    %649 = vector.multi_reduction <add>, %648, %cst_397 [1] : vector<15x16xf32> to vector<15xf32>
    %650 = vector.shape_cast %649 : vector<15xf32> to vector<15x1xf32>
    %cst_398 = arith.constant 1.600000e+01 : f32
    %651 = vector.broadcast %cst_398 : f32 to vector<15x1xf32>
    %652 = arith.divf %650, %651 : vector<15x1xf32>
    %cst_399 = arith.constant 9.99999974E-6 : f32
    %653 = vector.broadcast %cst_399 : f32 to vector<15x1xf32>
    %654 = arith.addf %652, %653 : vector<15x1xf32>
    %655 = math.rsqrt %654 : vector<15x1xf32>
    %656 = vector.broadcast %655 : vector<15x1xf32> to vector<15x16xf32>
    %657 = arith.mulf %647, %656 : vector<15x16xf32>
    %658 = arith.mulf %657, %640 : vector<15x16xf32>
    %659 = arith.addf %658, %641 : vector<15x16xf32>
    %cst_400 = arith.constant 0.000000e+00 : f32
    %660 = vector.broadcast %cst_400 : f32 to vector<15x16xf32>
    %661 = arith.maximumf %659, %660 : vector<15x16xf32>
    %c1_401 = arith.constant 1 : index
    %c0_402 = arith.constant 0 : index
    %662 = vector.load %arg3[%c1_401, %c0_402] : memref<16x16xf32, #tpu.memory_space<vmem>>, vector<15x16xf32>
    tpu.vector_store %arg3[%c1_401, %c0_402], %661 {strides = array<i32>} : memref<16x16xf32, #tpu.memory_space<vmem>>, vector<15x16xf32>,
    %663 = vector.extract_strided_slice %628 {offsets = [0, 0], sizes = [1, 16], strides = [1, 1]} : vector<16x16xf32> to vector<1x16xf32>
    %c735_403 = arith.constant 735 : index
    %c0_404 = arith.constant 0 : index
    %664 = vector.load %arg1[%c735_403, %c0_404] : memref<824x24xf32, #tpu.memory_space<vmem>>, vector<1x16xf32>
    %c750_405 = arith.constant 750 : index
    %c0_406 = arith.constant 0 : index
    %665 = vector.load %arg1[%c750_405, %c0_406] : memref<824x24xf32, #tpu.memory_space<vmem>>, vector<1x16xf32>
    %cst_407 = arith.constant dense<0.000000e+00> : vector<1xf32>
    %666 = vector.multi_reduction <add>, %663, %cst_407 [1] : vector<1x16xf32> to vector<1xf32>
    %667 = vector.shape_cast %666 : vector<1xf32> to vector<1x1xf32>
    %cst_408 = arith.constant 1.600000e+01 : f32
    %668 = vector.broadcast %cst_408 : f32 to vector<1x1xf32>
    %669 = arith.divf %667, %668 : vector<1x1xf32>
    %670 = vector.broadcast %669 : vector<1x1xf32> to vector<1x16xf32>
    %671 = arith.subf %663, %670 : vector<1x16xf32>
    %672 = arith.mulf %671, %671 : vector<1x16xf32>
    %cst_409 = arith.constant dense<0.000000e+00> : vector<1xf32>
    %673 = vector.multi_reduction <add>, %672, %cst_409 [1] : vector<1x16xf32> to vector<1xf32>
    %674 = vector.shape_cast %673 : vector<1xf32> to vector<1x1xf32>
    %cst_410 = arith.constant 1.600000e+01 : f32
    %675 = vector.broadcast %cst_410 : f32 to vector<1x1xf32>
    %676 = arith.divf %674, %675 : vector<1x1xf32>
    %cst_411 = arith.constant 9.99999974E-6 : f32
    %677 = vector.broadcast %cst_411 : f32 to vector<1x1xf32>
    %678 = arith.addf %676, %677 : vector<1x1xf32>
    %679 = math.rsqrt %678 : vector<1x1xf32>
    %680 = vector.broadcast %679 : vector<1x1xf32> to vector<1x16xf32>
    %681 = arith.mulf %671, %680 : vector<1x16xf32>
    %682 = arith.mulf %681, %664 : vector<1x16xf32>
    %683 = arith.addf %682, %665 : vector<1x16xf32>
    %cst_412 = arith.constant 0.000000e+00 : f32
    %684 = vector.broadcast %cst_412 : f32 to vector<1x16xf32>
    %685 = arith.maximumf %683, %684 : vector<1x16xf32>
    %c0_413 = arith.constant 0 : index
    %c0_414 = arith.constant 0 : index
    %686 = vector.load %arg3[%c0_413, %c0_414] : memref<16x16xf32, #tpu.memory_space<vmem>>, vector<1x16xf32>
    tpu.vector_store %arg3[%c0_413, %c0_414], %685 {strides = array<i32>} : memref<16x16xf32, #tpu.memory_space<vmem>>, vector<1x16xf32>,
    %c0_415 = arith.constant 0 : index
    %c0_416 = arith.constant 0 : index
    %687 = vector.load %arg3[%c0_415, %c0_416] : memref<16x16xf32, #tpu.memory_space<vmem>>, vector<16x16xf32>
    %c285_417 = arith.constant 285 : index
    %c0_418 = arith.constant 0 : index
    %688 = vector.load %arg1[%c285_417, %c0_418] : memref<824x24xf32, #tpu.memory_space<vmem>>, vector<16x24xf32>
    %cst_419 = arith.constant dense<0.000000e+00> : vector<16x24xf32>
    %689 = tpu.matmul %687, %688, %cst_419 {dimension_numbers = #tpu.dot_dimension_numbers<[1], [0], [0], [1], [0, 0, 1, 1], [], []>} : vector<16x16xf32>, vector<16x24xf32>, vector<16x24xf32> -> vector<16x24xf32>
    %c349 = arith.constant 349 : index
    %c0_420 = arith.constant 0 : index
    %690 = vector.load %arg1[%c349, %c0_420] : memref<824x24xf32, #tpu.memory_space<vmem>>, vector<16x24xf32>
    %691 = arith.addf %689, %690 : vector<16x24xf32>
    %c413_421 = arith.constant 413 : index
    %c0_422 = arith.constant 0 : index
    %692 = vector.load %arg1[%c413_421, %c0_422] : memref<824x24xf32, #tpu.memory_space<vmem>>, vector<16x24xf32>
    %c429_423 = arith.constant 429 : index
    %c0_424 = arith.constant 0 : index
    %693 = vector.load %arg1[%c429_423, %c0_424] : memref<824x24xf32, #tpu.memory_space<vmem>>, vector<16x24xf32>
    %cst_425 = arith.constant dense<0.000000e+00> : vector<16xf32>
    %694 = vector.multi_reduction <add>, %691, %cst_425 [1] : vector<16x24xf32> to vector<16xf32>
    %695 = vector.shape_cast %694 : vector<16xf32> to vector<16x1xf32>
    %cst_426 = arith.constant 2.400000e+01 : f32
    %696 = vector.broadcast %cst_426 : f32 to vector<16x1xf32>
    %697 = arith.divf %695, %696 : vector<16x1xf32>
    %698 = vector.broadcast %697 : vector<16x1xf32> to vector<16x24xf32>
    %699 = arith.subf %691, %698 : vector<16x24xf32>
    %700 = arith.mulf %699, %699 : vector<16x24xf32>
    %cst_427 = arith.constant dense<0.000000e+00> : vector<16xf32>
    %701 = vector.multi_reduction <add>, %700, %cst_427 [1] : vector<16x24xf32> to vector<16xf32>
    %702 = vector.shape_cast %701 : vector<16xf32> to vector<16x1xf32>
    %cst_428 = arith.constant 2.400000e+01 : f32
    %703 = vector.broadcast %cst_428 : f32 to vector<16x1xf32>
    %704 = arith.divf %702, %703 : vector<16x1xf32>
    %cst_429 = arith.constant 9.99999974E-6 : f32
    %705 = vector.broadcast %cst_429 : f32 to vector<16x1xf32>
    %706 = arith.addf %704, %705 : vector<16x1xf32>
    %707 = math.rsqrt %706 : vector<16x1xf32>
    %708 = vector.broadcast %707 : vector<16x1xf32> to vector<16x24xf32>
    %709 = arith.mulf %699, %708 : vector<16x24xf32>
    %710 = arith.mulf %709, %692 : vector<16x24xf32>
    %711 = arith.addf %710, %693 : vector<16x24xf32>
    %cst_430 = arith.constant 0.000000e+00 : f32
    %712 = vector.broadcast %cst_430 : f32 to vector<16x24xf32>
    %713 = arith.maximumf %711, %712 : vector<16x24xf32>
    %c445_431 = arith.constant 445 : index
    %c0_432 = arith.constant 0 : index
    %714 = vector.load %arg1[%c445_431, %c0_432] : memref<824x24xf32, #tpu.memory_space<vmem>>, vector<24x16xf32>
    %cst_433 = arith.constant dense<0.000000e+00> : vector<16x16xf32>
    %715 = tpu.matmul %713, %714, %cst_433 {dimension_numbers = #tpu.dot_dimension_numbers<[1], [0], [0], [1], [0, 0, 1, 1], [], []>} : vector<16x24xf32>, vector<24x16xf32>, vector<16x16xf32> -> vector<16x16xf32>
    %c469_434 = arith.constant 469 : index
    %c0_435 = arith.constant 0 : index
    %716 = vector.load %arg1[%c469_434, %c0_435] : memref<824x24xf32, #tpu.memory_space<vmem>>, vector<16x16xf32>
    %717 = arith.addf %715, %716 : vector<16x16xf32>
    %c485_436 = arith.constant 485 : index
    %c0_437 = arith.constant 0 : index
    %718 = vector.load %arg1[%c485_436, %c0_437] : memref<824x24xf32, #tpu.memory_space<vmem>>, vector<24x16xf32>
    %cst_438 = arith.constant dense<0.000000e+00> : vector<16x16xf32>
    %719 = tpu.matmul %713, %718, %cst_438 {dimension_numbers = #tpu.dot_dimension_numbers<[1], [0], [0], [1], [0, 0, 1, 1], [], []>} : vector<16x24xf32>, vector<24x16xf32>, vector<16x16xf32> -> vector<16x16xf32>
    %c509_439 = arith.constant 509 : index
    %c0_440 = arith.constant 0 : index
    %720 = vector.load %arg1[%c509_439, %c0_440] : memref<824x24xf32, #tpu.memory_space<vmem>>, vector<16x16xf32>
    %721 = arith.addf %719, %720 : vector<16x16xf32>
    %c570 = arith.constant 570 : index
    %c0_441 = arith.constant 0 : index
    %722 = vector.load %arg1[%c570, %c0_441] : memref<824x24xf32, #tpu.memory_space<vmem>>, vector<15x16xf32>
    %723 = vector.extract_strided_slice %721 {offsets = [0, 0], sizes = [15, 16], strides = [1, 1]} : vector<16x16xf32> to vector<15x16xf32>
    %724 = arith.mulf %722, %723 : vector<15x16xf32>
    %c675 = arith.constant 675 : index
    %c0_442 = arith.constant 0 : index
    %725 = vector.load %arg1[%c675, %c0_442] : memref<824x24xf32, #tpu.memory_space<vmem>>, vector<15x16xf32>
    %726 = vector.extract_strided_slice %717 {offsets = [1, 0], sizes = [15, 16], strides = [1, 1]} : vector<16x16xf32> to vector<15x16xf32>
    %727 = arith.mulf %725, %726 : vector<15x16xf32>
    %728 = arith.addf %724, %727 : vector<15x16xf32>
    %c735_443 = arith.constant 735 : index
    %c0_444 = arith.constant 0 : index
    %729 = vector.load %arg1[%c735_443, %c0_444] : memref<824x24xf32, #tpu.memory_space<vmem>>, vector<15x16xf32>
    %c750_445 = arith.constant 750 : index
    %c0_446 = arith.constant 0 : index
    %730 = vector.load %arg1[%c750_445, %c0_446] : memref<824x24xf32, #tpu.memory_space<vmem>>, vector<15x16xf32>
    %cst_447 = arith.constant dense<0.000000e+00> : vector<15xf32>
    %731 = vector.multi_reduction <add>, %728, %cst_447 [1] : vector<15x16xf32> to vector<15xf32>
    %732 = vector.shape_cast %731 : vector<15xf32> to vector<15x1xf32>
    %cst_448 = arith.constant 1.600000e+01 : f32
    %733 = vector.broadcast %cst_448 : f32 to vector<15x1xf32>
    %734 = arith.divf %732, %733 : vector<15x1xf32>
    %735 = vector.broadcast %734 : vector<15x1xf32> to vector<15x16xf32>
    %736 = arith.subf %728, %735 : vector<15x16xf32>
    %737 = arith.mulf %736, %736 : vector<15x16xf32>
    %cst_449 = arith.constant dense<0.000000e+00> : vector<15xf32>
    %738 = vector.multi_reduction <add>, %737, %cst_449 [1] : vector<15x16xf32> to vector<15xf32>
    %739 = vector.shape_cast %738 : vector<15xf32> to vector<15x1xf32>
    %cst_450 = arith.constant 1.600000e+01 : f32
    %740 = vector.broadcast %cst_450 : f32 to vector<15x1xf32>
    %741 = arith.divf %739, %740 : vector<15x1xf32>
    %cst_451 = arith.constant 9.99999974E-6 : f32
    %742 = vector.broadcast %cst_451 : f32 to vector<15x1xf32>
    %743 = arith.addf %741, %742 : vector<15x1xf32>
    %744 = math.rsqrt %743 : vector<15x1xf32>
    %745 = vector.broadcast %744 : vector<15x1xf32> to vector<15x16xf32>
    %746 = arith.mulf %736, %745 : vector<15x16xf32>
    %747 = arith.mulf %746, %729 : vector<15x16xf32>
    %748 = arith.addf %747, %730 : vector<15x16xf32>
    %cst_452 = arith.constant 0.000000e+00 : f32
    %749 = vector.broadcast %cst_452 : f32 to vector<15x16xf32>
    %750 = arith.maximumf %748, %749 : vector<15x16xf32>
    %c1_453 = arith.constant 1 : index
    %c0_454 = arith.constant 0 : index
    %751 = vector.load %arg3[%c1_453, %c0_454] : memref<16x16xf32, #tpu.memory_space<vmem>>, vector<15x16xf32>
    tpu.vector_store %arg3[%c1_453, %c0_454], %750 {strides = array<i32>} : memref<16x16xf32, #tpu.memory_space<vmem>>, vector<15x16xf32>,
    %752 = vector.extract_strided_slice %717 {offsets = [0, 0], sizes = [1, 16], strides = [1, 1]} : vector<16x16xf32> to vector<1x16xf32>
    %c735_455 = arith.constant 735 : index
    %c0_456 = arith.constant 0 : index
    %753 = vector.load %arg1[%c735_455, %c0_456] : memref<824x24xf32, #tpu.memory_space<vmem>>, vector<1x16xf32>
    %c750_457 = arith.constant 750 : index
    %c0_458 = arith.constant 0 : index
    %754 = vector.load %arg1[%c750_457, %c0_458] : memref<824x24xf32, #tpu.memory_space<vmem>>, vector<1x16xf32>
    %cst_459 = arith.constant dense<0.000000e+00> : vector<1xf32>
    %755 = vector.multi_reduction <add>, %752, %cst_459 [1] : vector<1x16xf32> to vector<1xf32>
    %756 = vector.shape_cast %755 : vector<1xf32> to vector<1x1xf32>
    %cst_460 = arith.constant 1.600000e+01 : f32
    %757 = vector.broadcast %cst_460 : f32 to vector<1x1xf32>
    %758 = arith.divf %756, %757 : vector<1x1xf32>
    %759 = vector.broadcast %758 : vector<1x1xf32> to vector<1x16xf32>
    %760 = arith.subf %752, %759 : vector<1x16xf32>
    %761 = arith.mulf %760, %760 : vector<1x16xf32>
    %cst_461 = arith.constant dense<0.000000e+00> : vector<1xf32>
    %762 = vector.multi_reduction <add>, %761, %cst_461 [1] : vector<1x16xf32> to vector<1xf32>
    %763 = vector.shape_cast %762 : vector<1xf32> to vector<1x1xf32>
    %cst_462 = arith.constant 1.600000e+01 : f32
    %764 = vector.broadcast %cst_462 : f32 to vector<1x1xf32>
    %765 = arith.divf %763, %764 : vector<1x1xf32>
    %cst_463 = arith.constant 9.99999974E-6 : f32
    %766 = vector.broadcast %cst_463 : f32 to vector<1x1xf32>
    %767 = arith.addf %765, %766 : vector<1x1xf32>
    %768 = math.rsqrt %767 : vector<1x1xf32>
    %769 = vector.broadcast %768 : vector<1x1xf32> to vector<1x16xf32>
    %770 = arith.mulf %760, %769 : vector<1x16xf32>
    %771 = arith.mulf %770, %753 : vector<1x16xf32>
    %772 = arith.addf %771, %754 : vector<1x16xf32>
    %cst_464 = arith.constant 0.000000e+00 : f32
    %773 = vector.broadcast %cst_464 : f32 to vector<1x16xf32>
    %774 = arith.maximumf %772, %773 : vector<1x16xf32>
    %c0_465 = arith.constant 0 : index
    %c0_466 = arith.constant 0 : index
    %775 = vector.load %arg3[%c0_465, %c0_466] : memref<16x16xf32, #tpu.memory_space<vmem>>, vector<1x16xf32>
    tpu.vector_store %arg3[%c0_465, %c0_466], %774 {strides = array<i32>} : memref<16x16xf32, #tpu.memory_space<vmem>>, vector<1x16xf32>,
    %c0_467 = arith.constant 0 : index
    %c0_468 = arith.constant 0 : index
    %776 = vector.load %arg3[%c0_467, %c0_468] : memref<16x16xf32, #tpu.memory_space<vmem>>, vector<16x16xf32>
    %c285_469 = arith.constant 285 : index
    %c0_470 = arith.constant 0 : index
    %777 = vector.load %arg1[%c285_469, %c0_470] : memref<824x24xf32, #tpu.memory_space<vmem>>, vector<16x24xf32>
    %cst_471 = arith.constant dense<0.000000e+00> : vector<16x24xf32>
    %778 = tpu.matmul %776, %777, %cst_471 {dimension_numbers = #tpu.dot_dimension_numbers<[1], [0], [0], [1], [0, 0, 1, 1], [], []>} : vector<16x16xf32>, vector<16x24xf32>, vector<16x24xf32> -> vector<16x24xf32>
    %c365 = arith.constant 365 : index
    %c0_472 = arith.constant 0 : index
    %779 = vector.load %arg1[%c365, %c0_472] : memref<824x24xf32, #tpu.memory_space<vmem>>, vector<16x24xf32>
    %780 = arith.addf %778, %779 : vector<16x24xf32>
    %c413_473 = arith.constant 413 : index
    %c0_474 = arith.constant 0 : index
    %781 = vector.load %arg1[%c413_473, %c0_474] : memref<824x24xf32, #tpu.memory_space<vmem>>, vector<16x24xf32>
    %c429_475 = arith.constant 429 : index
    %c0_476 = arith.constant 0 : index
    %782 = vector.load %arg1[%c429_475, %c0_476] : memref<824x24xf32, #tpu.memory_space<vmem>>, vector<16x24xf32>
    %cst_477 = arith.constant dense<0.000000e+00> : vector<16xf32>
    %783 = vector.multi_reduction <add>, %780, %cst_477 [1] : vector<16x24xf32> to vector<16xf32>
    %784 = vector.shape_cast %783 : vector<16xf32> to vector<16x1xf32>
    %cst_478 = arith.constant 2.400000e+01 : f32
    %785 = vector.broadcast %cst_478 : f32 to vector<16x1xf32>
    %786 = arith.divf %784, %785 : vector<16x1xf32>
    %787 = vector.broadcast %786 : vector<16x1xf32> to vector<16x24xf32>
    %788 = arith.subf %780, %787 : vector<16x24xf32>
    %789 = arith.mulf %788, %788 : vector<16x24xf32>
    %cst_479 = arith.constant dense<0.000000e+00> : vector<16xf32>
    %790 = vector.multi_reduction <add>, %789, %cst_479 [1] : vector<16x24xf32> to vector<16xf32>
    %791 = vector.shape_cast %790 : vector<16xf32> to vector<16x1xf32>
    %cst_480 = arith.constant 2.400000e+01 : f32
    %792 = vector.broadcast %cst_480 : f32 to vector<16x1xf32>
    %793 = arith.divf %791, %792 : vector<16x1xf32>
    %cst_481 = arith.constant 9.99999974E-6 : f32
    %794 = vector.broadcast %cst_481 : f32 to vector<16x1xf32>
    %795 = arith.addf %793, %794 : vector<16x1xf32>
    %796 = math.rsqrt %795 : vector<16x1xf32>
    %797 = vector.broadcast %796 : vector<16x1xf32> to vector<16x24xf32>
    %798 = arith.mulf %788, %797 : vector<16x24xf32>
    %799 = arith.mulf %798, %781 : vector<16x24xf32>
    %800 = arith.addf %799, %782 : vector<16x24xf32>
    %cst_482 = arith.constant 0.000000e+00 : f32
    %801 = vector.broadcast %cst_482 : f32 to vector<16x24xf32>
    %802 = arith.maximumf %800, %801 : vector<16x24xf32>
    %c445_483 = arith.constant 445 : index
    %c0_484 = arith.constant 0 : index
    %803 = vector.load %arg1[%c445_483, %c0_484] : memref<824x24xf32, #tpu.memory_space<vmem>>, vector<24x16xf32>
    %cst_485 = arith.constant dense<0.000000e+00> : vector<16x16xf32>
    %804 = tpu.matmul %802, %803, %cst_485 {dimension_numbers = #tpu.dot_dimension_numbers<[1], [0], [0], [1], [0, 0, 1, 1], [], []>} : vector<16x24xf32>, vector<24x16xf32>, vector<16x16xf32> -> vector<16x16xf32>
    %c469_486 = arith.constant 469 : index
    %c0_487 = arith.constant 0 : index
    %805 = vector.load %arg1[%c469_486, %c0_487] : memref<824x24xf32, #tpu.memory_space<vmem>>, vector<16x16xf32>
    %806 = arith.addf %804, %805 : vector<16x16xf32>
    %c485_488 = arith.constant 485 : index
    %c0_489 = arith.constant 0 : index
    %807 = vector.load %arg1[%c485_488, %c0_489] : memref<824x24xf32, #tpu.memory_space<vmem>>, vector<24x16xf32>
    %cst_490 = arith.constant dense<0.000000e+00> : vector<16x16xf32>
    %808 = tpu.matmul %802, %807, %cst_490 {dimension_numbers = #tpu.dot_dimension_numbers<[1], [0], [0], [1], [0, 0, 1, 1], [], []>} : vector<16x24xf32>, vector<24x16xf32>, vector<16x16xf32> -> vector<16x16xf32>
    %c509_491 = arith.constant 509 : index
    %c0_492 = arith.constant 0 : index
    %809 = vector.load %arg1[%c509_491, %c0_492] : memref<824x24xf32, #tpu.memory_space<vmem>>, vector<16x16xf32>
    %810 = arith.addf %808, %809 : vector<16x16xf32>
    %c585 = arith.constant 585 : index
    %c0_493 = arith.constant 0 : index
    %811 = vector.load %arg1[%c585, %c0_493] : memref<824x24xf32, #tpu.memory_space<vmem>>, vector<15x16xf32>
    %812 = vector.extract_strided_slice %810 {offsets = [0, 0], sizes = [15, 16], strides = [1, 1]} : vector<16x16xf32> to vector<15x16xf32>
    %813 = arith.mulf %811, %812 : vector<15x16xf32>
    %c690 = arith.constant 690 : index
    %c0_494 = arith.constant 0 : index
    %814 = vector.load %arg1[%c690, %c0_494] : memref<824x24xf32, #tpu.memory_space<vmem>>, vector<15x16xf32>
    %815 = vector.extract_strided_slice %806 {offsets = [1, 0], sizes = [15, 16], strides = [1, 1]} : vector<16x16xf32> to vector<15x16xf32>
    %816 = arith.mulf %814, %815 : vector<15x16xf32>
    %817 = arith.addf %813, %816 : vector<15x16xf32>
    %c735_495 = arith.constant 735 : index
    %c0_496 = arith.constant 0 : index
    %818 = vector.load %arg1[%c735_495, %c0_496] : memref<824x24xf32, #tpu.memory_space<vmem>>, vector<15x16xf32>
    %c750_497 = arith.constant 750 : index
    %c0_498 = arith.constant 0 : index
    %819 = vector.load %arg1[%c750_497, %c0_498] : memref<824x24xf32, #tpu.memory_space<vmem>>, vector<15x16xf32>
    %cst_499 = arith.constant dense<0.000000e+00> : vector<15xf32>
    %820 = vector.multi_reduction <add>, %817, %cst_499 [1] : vector<15x16xf32> to vector<15xf32>
    %821 = vector.shape_cast %820 : vector<15xf32> to vector<15x1xf32>
    %cst_500 = arith.constant 1.600000e+01 : f32
    %822 = vector.broadcast %cst_500 : f32 to vector<15x1xf32>
    %823 = arith.divf %821, %822 : vector<15x1xf32>
    %824 = vector.broadcast %823 : vector<15x1xf32> to vector<15x16xf32>
    %825 = arith.subf %817, %824 : vector<15x16xf32>
    %826 = arith.mulf %825, %825 : vector<15x16xf32>
    %cst_501 = arith.constant dense<0.000000e+00> : vector<15xf32>
    %827 = vector.multi_reduction <add>, %826, %cst_501 [1] : vector<15x16xf32> to vector<15xf32>
    %828 = vector.shape_cast %827 : vector<15xf32> to vector<15x1xf32>
    %cst_502 = arith.constant 1.600000e+01 : f32
    %829 = vector.broadcast %cst_502 : f32 to vector<15x1xf32>
    %830 = arith.divf %828, %829 : vector<15x1xf32>
    %cst_503 = arith.constant 9.99999974E-6 : f32
    %831 = vector.broadcast %cst_503 : f32 to vector<15x1xf32>
    %832 = arith.addf %830, %831 : vector<15x1xf32>
    %833 = math.rsqrt %832 : vector<15x1xf32>
    %834 = vector.broadcast %833 : vector<15x1xf32> to vector<15x16xf32>
    %835 = arith.mulf %825, %834 : vector<15x16xf32>
    %836 = arith.mulf %835, %818 : vector<15x16xf32>
    %837 = arith.addf %836, %819 : vector<15x16xf32>
    %cst_504 = arith.constant 0.000000e+00 : f32
    %838 = vector.broadcast %cst_504 : f32 to vector<15x16xf32>
    %839 = arith.maximumf %837, %838 : vector<15x16xf32>
    %c1_505 = arith.constant 1 : index
    %c0_506 = arith.constant 0 : index
    %840 = vector.load %arg3[%c1_505, %c0_506] : memref<16x16xf32, #tpu.memory_space<vmem>>, vector<15x16xf32>
    tpu.vector_store %arg3[%c1_505, %c0_506], %839 {strides = array<i32>} : memref<16x16xf32, #tpu.memory_space<vmem>>, vector<15x16xf32>,
    %841 = vector.extract_strided_slice %806 {offsets = [0, 0], sizes = [1, 16], strides = [1, 1]} : vector<16x16xf32> to vector<1x16xf32>
    %c735_507 = arith.constant 735 : index
    %c0_508 = arith.constant 0 : index
    %842 = vector.load %arg1[%c735_507, %c0_508] : memref<824x24xf32, #tpu.memory_space<vmem>>, vector<1x16xf32>
    %c750_509 = arith.constant 750 : index
    %c0_510 = arith.constant 0 : index
    %843 = vector.load %arg1[%c750_509, %c0_510] : memref<824x24xf32, #tpu.memory_space<vmem>>, vector<1x16xf32>
    %cst_511 = arith.constant dense<0.000000e+00> : vector<1xf32>
    %844 = vector.multi_reduction <add>, %841, %cst_511 [1] : vector<1x16xf32> to vector<1xf32>
    %845 = vector.shape_cast %844 : vector<1xf32> to vector<1x1xf32>
    %cst_512 = arith.constant 1.600000e+01 : f32
    %846 = vector.broadcast %cst_512 : f32 to vector<1x1xf32>
    %847 = arith.divf %845, %846 : vector<1x1xf32>
    %848 = vector.broadcast %847 : vector<1x1xf32> to vector<1x16xf32>
    %849 = arith.subf %841, %848 : vector<1x16xf32>
    %850 = arith.mulf %849, %849 : vector<1x16xf32>
    %cst_513 = arith.constant dense<0.000000e+00> : vector<1xf32>
    %851 = vector.multi_reduction <add>, %850, %cst_513 [1] : vector<1x16xf32> to vector<1xf32>
    %852 = vector.shape_cast %851 : vector<1xf32> to vector<1x1xf32>
    %cst_514 = arith.constant 1.600000e+01 : f32
    %853 = vector.broadcast %cst_514 : f32 to vector<1x1xf32>
    %854 = arith.divf %852, %853 : vector<1x1xf32>
    %cst_515 = arith.constant 9.99999974E-6 : f32
    %855 = vector.broadcast %cst_515 : f32 to vector<1x1xf32>
    %856 = arith.addf %854, %855 : vector<1x1xf32>
    %857 = math.rsqrt %856 : vector<1x1xf32>
    %858 = vector.broadcast %857 : vector<1x1xf32> to vector<1x16xf32>
    %859 = arith.mulf %849, %858 : vector<1x16xf32>
    %860 = arith.mulf %859, %842 : vector<1x16xf32>
    %861 = arith.addf %860, %843 : vector<1x16xf32>
    %cst_516 = arith.constant 0.000000e+00 : f32
    %862 = vector.broadcast %cst_516 : f32 to vector<1x16xf32>
    %863 = arith.maximumf %861, %862 : vector<1x16xf32>
    %c0_517 = arith.constant 0 : index
    %c0_518 = arith.constant 0 : index
    %864 = vector.load %arg3[%c0_517, %c0_518] : memref<16x16xf32, #tpu.memory_space<vmem>>, vector<1x16xf32>
    tpu.vector_store %arg3[%c0_517, %c0_518], %863 {strides = array<i32>} : memref<16x16xf32, #tpu.memory_space<vmem>>, vector<1x16xf32>,
    %c0_519 = arith.constant 0 : index
    %c0_520 = arith.constant 0 : index
    %865 = vector.load %arg3[%c0_519, %c0_520] : memref<16x16xf32, #tpu.memory_space<vmem>>, vector<16x16xf32>
    %c285_521 = arith.constant 285 : index
    %c0_522 = arith.constant 0 : index
    %866 = vector.load %arg1[%c285_521, %c0_522] : memref<824x24xf32, #tpu.memory_space<vmem>>, vector<16x24xf32>
    %cst_523 = arith.constant dense<0.000000e+00> : vector<16x24xf32>
    %867 = tpu.matmul %865, %866, %cst_523 {dimension_numbers = #tpu.dot_dimension_numbers<[1], [0], [0], [1], [0, 0, 1, 1], [], []>} : vector<16x16xf32>, vector<16x24xf32>, vector<16x24xf32> -> vector<16x24xf32>
    %c381 = arith.constant 381 : index
    %c0_524 = arith.constant 0 : index
    %868 = vector.load %arg1[%c381, %c0_524] : memref<824x24xf32, #tpu.memory_space<vmem>>, vector<16x24xf32>
    %869 = arith.addf %867, %868 : vector<16x24xf32>
    %c413_525 = arith.constant 413 : index
    %c0_526 = arith.constant 0 : index
    %870 = vector.load %arg1[%c413_525, %c0_526] : memref<824x24xf32, #tpu.memory_space<vmem>>, vector<16x24xf32>
    %c429_527 = arith.constant 429 : index
    %c0_528 = arith.constant 0 : index
    %871 = vector.load %arg1[%c429_527, %c0_528] : memref<824x24xf32, #tpu.memory_space<vmem>>, vector<16x24xf32>
    %cst_529 = arith.constant dense<0.000000e+00> : vector<16xf32>
    %872 = vector.multi_reduction <add>, %869, %cst_529 [1] : vector<16x24xf32> to vector<16xf32>
    %873 = vector.shape_cast %872 : vector<16xf32> to vector<16x1xf32>
    %cst_530 = arith.constant 2.400000e+01 : f32
    %874 = vector.broadcast %cst_530 : f32 to vector<16x1xf32>
    %875 = arith.divf %873, %874 : vector<16x1xf32>
    %876 = vector.broadcast %875 : vector<16x1xf32> to vector<16x24xf32>
    %877 = arith.subf %869, %876 : vector<16x24xf32>
    %878 = arith.mulf %877, %877 : vector<16x24xf32>
    %cst_531 = arith.constant dense<0.000000e+00> : vector<16xf32>
    %879 = vector.multi_reduction <add>, %878, %cst_531 [1] : vector<16x24xf32> to vector<16xf32>
    %880 = vector.shape_cast %879 : vector<16xf32> to vector<16x1xf32>
    %cst_532 = arith.constant 2.400000e+01 : f32
    %881 = vector.broadcast %cst_532 : f32 to vector<16x1xf32>
    %882 = arith.divf %880, %881 : vector<16x1xf32>
    %cst_533 = arith.constant 9.99999974E-6 : f32
    %883 = vector.broadcast %cst_533 : f32 to vector<16x1xf32>
    %884 = arith.addf %882, %883 : vector<16x1xf32>
    %885 = math.rsqrt %884 : vector<16x1xf32>
    %886 = vector.broadcast %885 : vector<16x1xf32> to vector<16x24xf32>
    %887 = arith.mulf %877, %886 : vector<16x24xf32>
    %888 = arith.mulf %887, %870 : vector<16x24xf32>
    %889 = arith.addf %888, %871 : vector<16x24xf32>
    %cst_534 = arith.constant 0.000000e+00 : f32
    %890 = vector.broadcast %cst_534 : f32 to vector<16x24xf32>
    %891 = arith.maximumf %889, %890 : vector<16x24xf32>
    %c445_535 = arith.constant 445 : index
    %c0_536 = arith.constant 0 : index
    %892 = vector.load %arg1[%c445_535, %c0_536] : memref<824x24xf32, #tpu.memory_space<vmem>>, vector<24x16xf32>
    %cst_537 = arith.constant dense<0.000000e+00> : vector<16x16xf32>
    %893 = tpu.matmul %891, %892, %cst_537 {dimension_numbers = #tpu.dot_dimension_numbers<[1], [0], [0], [1], [0, 0, 1, 1], [], []>} : vector<16x24xf32>, vector<24x16xf32>, vector<16x16xf32> -> vector<16x16xf32>
    %c469_538 = arith.constant 469 : index
    %c0_539 = arith.constant 0 : index
    %894 = vector.load %arg1[%c469_538, %c0_539] : memref<824x24xf32, #tpu.memory_space<vmem>>, vector<16x16xf32>
    %895 = arith.addf %893, %894 : vector<16x16xf32>
    %c485_540 = arith.constant 485 : index
    %c0_541 = arith.constant 0 : index
    %896 = vector.load %arg1[%c485_540, %c0_541] : memref<824x24xf32, #tpu.memory_space<vmem>>, vector<24x16xf32>
    %cst_542 = arith.constant dense<0.000000e+00> : vector<16x16xf32>
    %897 = tpu.matmul %891, %896, %cst_542 {dimension_numbers = #tpu.dot_dimension_numbers<[1], [0], [0], [1], [0, 0, 1, 1], [], []>} : vector<16x24xf32>, vector<24x16xf32>, vector<16x16xf32> -> vector<16x16xf32>
    %c509_543 = arith.constant 509 : index
    %c0_544 = arith.constant 0 : index
    %898 = vector.load %arg1[%c509_543, %c0_544] : memref<824x24xf32, #tpu.memory_space<vmem>>, vector<16x16xf32>
    %899 = arith.addf %897, %898 : vector<16x16xf32>
    %c600 = arith.constant 600 : index
    %c0_545 = arith.constant 0 : index
    %900 = vector.load %arg1[%c600, %c0_545] : memref<824x24xf32, #tpu.memory_space<vmem>>, vector<15x16xf32>
    %901 = vector.extract_strided_slice %899 {offsets = [0, 0], sizes = [15, 16], strides = [1, 1]} : vector<16x16xf32> to vector<15x16xf32>
    %902 = arith.mulf %900, %901 : vector<15x16xf32>
    %c705 = arith.constant 705 : index
    %c0_546 = arith.constant 0 : index
    %903 = vector.load %arg1[%c705, %c0_546] : memref<824x24xf32, #tpu.memory_space<vmem>>, vector<15x16xf32>
    %904 = vector.extract_strided_slice %895 {offsets = [1, 0], sizes = [15, 16], strides = [1, 1]} : vector<16x16xf32> to vector<15x16xf32>
    %905 = arith.mulf %903, %904 : vector<15x16xf32>
    %906 = arith.addf %902, %905 : vector<15x16xf32>
    %c735_547 = arith.constant 735 : index
    %c0_548 = arith.constant 0 : index
    %907 = vector.load %arg1[%c735_547, %c0_548] : memref<824x24xf32, #tpu.memory_space<vmem>>, vector<15x16xf32>
    %c750_549 = arith.constant 750 : index
    %c0_550 = arith.constant 0 : index
    %908 = vector.load %arg1[%c750_549, %c0_550] : memref<824x24xf32, #tpu.memory_space<vmem>>, vector<15x16xf32>
    %cst_551 = arith.constant dense<0.000000e+00> : vector<15xf32>
    %909 = vector.multi_reduction <add>, %906, %cst_551 [1] : vector<15x16xf32> to vector<15xf32>
    %910 = vector.shape_cast %909 : vector<15xf32> to vector<15x1xf32>
    %cst_552 = arith.constant 1.600000e+01 : f32
    %911 = vector.broadcast %cst_552 : f32 to vector<15x1xf32>
    %912 = arith.divf %910, %911 : vector<15x1xf32>
    %913 = vector.broadcast %912 : vector<15x1xf32> to vector<15x16xf32>
    %914 = arith.subf %906, %913 : vector<15x16xf32>
    %915 = arith.mulf %914, %914 : vector<15x16xf32>
    %cst_553 = arith.constant dense<0.000000e+00> : vector<15xf32>
    %916 = vector.multi_reduction <add>, %915, %cst_553 [1] : vector<15x16xf32> to vector<15xf32>
    %917 = vector.shape_cast %916 : vector<15xf32> to vector<15x1xf32>
    %cst_554 = arith.constant 1.600000e+01 : f32
    %918 = vector.broadcast %cst_554 : f32 to vector<15x1xf32>
    %919 = arith.divf %917, %918 : vector<15x1xf32>
    %cst_555 = arith.constant 9.99999974E-6 : f32
    %920 = vector.broadcast %cst_555 : f32 to vector<15x1xf32>
    %921 = arith.addf %919, %920 : vector<15x1xf32>
    %922 = math.rsqrt %921 : vector<15x1xf32>
    %923 = vector.broadcast %922 : vector<15x1xf32> to vector<15x16xf32>
    %924 = arith.mulf %914, %923 : vector<15x16xf32>
    %925 = arith.mulf %924, %907 : vector<15x16xf32>
    %926 = arith.addf %925, %908 : vector<15x16xf32>
    %cst_556 = arith.constant 0.000000e+00 : f32
    %927 = vector.broadcast %cst_556 : f32 to vector<15x16xf32>
    %928 = arith.maximumf %926, %927 : vector<15x16xf32>
    %c1_557 = arith.constant 1 : index
    %c0_558 = arith.constant 0 : index
    %929 = vector.load %arg3[%c1_557, %c0_558] : memref<16x16xf32, #tpu.memory_space<vmem>>, vector<15x16xf32>
    tpu.vector_store %arg3[%c1_557, %c0_558], %928 {strides = array<i32>} : memref<16x16xf32, #tpu.memory_space<vmem>>, vector<15x16xf32>,
    %930 = vector.extract_strided_slice %895 {offsets = [0, 0], sizes = [1, 16], strides = [1, 1]} : vector<16x16xf32> to vector<1x16xf32>
    %c735_559 = arith.constant 735 : index
    %c0_560 = arith.constant 0 : index
    %931 = vector.load %arg1[%c735_559, %c0_560] : memref<824x24xf32, #tpu.memory_space<vmem>>, vector<1x16xf32>
    %c750_561 = arith.constant 750 : index
    %c0_562 = arith.constant 0 : index
    %932 = vector.load %arg1[%c750_561, %c0_562] : memref<824x24xf32, #tpu.memory_space<vmem>>, vector<1x16xf32>
    %cst_563 = arith.constant dense<0.000000e+00> : vector<1xf32>
    %933 = vector.multi_reduction <add>, %930, %cst_563 [1] : vector<1x16xf32> to vector<1xf32>
    %934 = vector.shape_cast %933 : vector<1xf32> to vector<1x1xf32>
    %cst_564 = arith.constant 1.600000e+01 : f32
    %935 = vector.broadcast %cst_564 : f32 to vector<1x1xf32>
    %936 = arith.divf %934, %935 : vector<1x1xf32>
    %937 = vector.broadcast %936 : vector<1x1xf32> to vector<1x16xf32>
    %938 = arith.subf %930, %937 : vector<1x16xf32>
    %939 = arith.mulf %938, %938 : vector<1x16xf32>
    %cst_565 = arith.constant dense<0.000000e+00> : vector<1xf32>
    %940 = vector.multi_reduction <add>, %939, %cst_565 [1] : vector<1x16xf32> to vector<1xf32>
    %941 = vector.shape_cast %940 : vector<1xf32> to vector<1x1xf32>
    %cst_566 = arith.constant 1.600000e+01 : f32
    %942 = vector.broadcast %cst_566 : f32 to vector<1x1xf32>
    %943 = arith.divf %941, %942 : vector<1x1xf32>
    %cst_567 = arith.constant 9.99999974E-6 : f32
    %944 = vector.broadcast %cst_567 : f32 to vector<1x1xf32>
    %945 = arith.addf %943, %944 : vector<1x1xf32>
    %946 = math.rsqrt %945 : vector<1x1xf32>
    %947 = vector.broadcast %946 : vector<1x1xf32> to vector<1x16xf32>
    %948 = arith.mulf %938, %947 : vector<1x16xf32>
    %949 = arith.mulf %948, %931 : vector<1x16xf32>
    %950 = arith.addf %949, %932 : vector<1x16xf32>
    %cst_568 = arith.constant 0.000000e+00 : f32
    %951 = vector.broadcast %cst_568 : f32 to vector<1x16xf32>
    %952 = arith.maximumf %950, %951 : vector<1x16xf32>
    %c0_569 = arith.constant 0 : index
    %c0_570 = arith.constant 0 : index
    %953 = vector.load %arg3[%c0_569, %c0_570] : memref<16x16xf32, #tpu.memory_space<vmem>>, vector<1x16xf32>
    tpu.vector_store %arg3[%c0_569, %c0_570], %952 {strides = array<i32>} : memref<16x16xf32, #tpu.memory_space<vmem>>, vector<1x16xf32>,
    %c0_571 = arith.constant 0 : index
    %c0_572 = arith.constant 0 : index
    %954 = vector.load %arg3[%c0_571, %c0_572] : memref<16x16xf32, #tpu.memory_space<vmem>>, vector<16x16xf32>
    %c285_573 = arith.constant 285 : index
    %c0_574 = arith.constant 0 : index
    %955 = vector.load %arg1[%c285_573, %c0_574] : memref<824x24xf32, #tpu.memory_space<vmem>>, vector<16x24xf32>
    %cst_575 = arith.constant dense<0.000000e+00> : vector<16x24xf32>
    %956 = tpu.matmul %954, %955, %cst_575 {dimension_numbers = #tpu.dot_dimension_numbers<[1], [0], [0], [1], [0, 0, 1, 1], [], []>} : vector<16x16xf32>, vector<16x24xf32>, vector<16x24xf32> -> vector<16x24xf32>
    %c397 = arith.constant 397 : index
    %c0_576 = arith.constant 0 : index
    %957 = vector.load %arg1[%c397, %c0_576] : memref<824x24xf32, #tpu.memory_space<vmem>>, vector<16x24xf32>
    %958 = arith.addf %956, %957 : vector<16x24xf32>
    %c413_577 = arith.constant 413 : index
    %c0_578 = arith.constant 0 : index
    %959 = vector.load %arg1[%c413_577, %c0_578] : memref<824x24xf32, #tpu.memory_space<vmem>>, vector<16x24xf32>
    %c429_579 = arith.constant 429 : index
    %c0_580 = arith.constant 0 : index
    %960 = vector.load %arg1[%c429_579, %c0_580] : memref<824x24xf32, #tpu.memory_space<vmem>>, vector<16x24xf32>
    %cst_581 = arith.constant dense<0.000000e+00> : vector<16xf32>
    %961 = vector.multi_reduction <add>, %958, %cst_581 [1] : vector<16x24xf32> to vector<16xf32>
    %962 = vector.shape_cast %961 : vector<16xf32> to vector<16x1xf32>
    %cst_582 = arith.constant 2.400000e+01 : f32
    %963 = vector.broadcast %cst_582 : f32 to vector<16x1xf32>
    %964 = arith.divf %962, %963 : vector<16x1xf32>
    %965 = vector.broadcast %964 : vector<16x1xf32> to vector<16x24xf32>
    %966 = arith.subf %958, %965 : vector<16x24xf32>
    %967 = arith.mulf %966, %966 : vector<16x24xf32>
    %cst_583 = arith.constant dense<0.000000e+00> : vector<16xf32>
    %968 = vector.multi_reduction <add>, %967, %cst_583 [1] : vector<16x24xf32> to vector<16xf32>
    %969 = vector.shape_cast %968 : vector<16xf32> to vector<16x1xf32>
    %cst_584 = arith.constant 2.400000e+01 : f32
    %970 = vector.broadcast %cst_584 : f32 to vector<16x1xf32>
    %971 = arith.divf %969, %970 : vector<16x1xf32>
    %cst_585 = arith.constant 9.99999974E-6 : f32
    %972 = vector.broadcast %cst_585 : f32 to vector<16x1xf32>
    %973 = arith.addf %971, %972 : vector<16x1xf32>
    %974 = math.rsqrt %973 : vector<16x1xf32>
    %975 = vector.broadcast %974 : vector<16x1xf32> to vector<16x24xf32>
    %976 = arith.mulf %966, %975 : vector<16x24xf32>
    %977 = arith.mulf %976, %959 : vector<16x24xf32>
    %978 = arith.addf %977, %960 : vector<16x24xf32>
    %cst_586 = arith.constant 0.000000e+00 : f32
    %979 = vector.broadcast %cst_586 : f32 to vector<16x24xf32>
    %980 = arith.maximumf %978, %979 : vector<16x24xf32>
    %c445_587 = arith.constant 445 : index
    %c0_588 = arith.constant 0 : index
    %981 = vector.load %arg1[%c445_587, %c0_588] : memref<824x24xf32, #tpu.memory_space<vmem>>, vector<24x16xf32>
    %cst_589 = arith.constant dense<0.000000e+00> : vector<16x16xf32>
    %982 = tpu.matmul %980, %981, %cst_589 {dimension_numbers = #tpu.dot_dimension_numbers<[1], [0], [0], [1], [0, 0, 1, 1], [], []>} : vector<16x24xf32>, vector<24x16xf32>, vector<16x16xf32> -> vector<16x16xf32>
    %c469_590 = arith.constant 469 : index
    %c0_591 = arith.constant 0 : index
    %983 = vector.load %arg1[%c469_590, %c0_591] : memref<824x24xf32, #tpu.memory_space<vmem>>, vector<16x16xf32>
    %984 = arith.addf %982, %983 : vector<16x16xf32>
    %c485_592 = arith.constant 485 : index
    %c0_593 = arith.constant 0 : index
    %985 = vector.load %arg1[%c485_592, %c0_593] : memref<824x24xf32, #tpu.memory_space<vmem>>, vector<24x16xf32>
    %cst_594 = arith.constant dense<0.000000e+00> : vector<16x16xf32>
    %986 = tpu.matmul %980, %985, %cst_594 {dimension_numbers = #tpu.dot_dimension_numbers<[1], [0], [0], [1], [0, 0, 1, 1], [], []>} : vector<16x24xf32>, vector<24x16xf32>, vector<16x16xf32> -> vector<16x16xf32>
    %c509_595 = arith.constant 509 : index
    %c0_596 = arith.constant 0 : index
    %987 = vector.load %arg1[%c509_595, %c0_596] : memref<824x24xf32, #tpu.memory_space<vmem>>, vector<16x16xf32>
    %988 = arith.addf %986, %987 : vector<16x16xf32>
    %c615 = arith.constant 615 : index
    %c0_597 = arith.constant 0 : index
    %989 = vector.load %arg1[%c615, %c0_597] : memref<824x24xf32, #tpu.memory_space<vmem>>, vector<15x16xf32>
    %990 = vector.extract_strided_slice %988 {offsets = [0, 0], sizes = [15, 16], strides = [1, 1]} : vector<16x16xf32> to vector<15x16xf32>
    %991 = arith.mulf %989, %990 : vector<15x16xf32>
    %c720 = arith.constant 720 : index
    %c0_598 = arith.constant 0 : index
    %992 = vector.load %arg1[%c720, %c0_598] : memref<824x24xf32, #tpu.memory_space<vmem>>, vector<15x16xf32>
    %993 = vector.extract_strided_slice %984 {offsets = [1, 0], sizes = [15, 16], strides = [1, 1]} : vector<16x16xf32> to vector<15x16xf32>
    %994 = arith.mulf %992, %993 : vector<15x16xf32>
    %995 = arith.addf %991, %994 : vector<15x16xf32>
    %c735_599 = arith.constant 735 : index
    %c0_600 = arith.constant 0 : index
    %996 = vector.load %arg1[%c735_599, %c0_600] : memref<824x24xf32, #tpu.memory_space<vmem>>, vector<15x16xf32>
    %c750_601 = arith.constant 750 : index
    %c0_602 = arith.constant 0 : index
    %997 = vector.load %arg1[%c750_601, %c0_602] : memref<824x24xf32, #tpu.memory_space<vmem>>, vector<15x16xf32>
    %cst_603 = arith.constant dense<0.000000e+00> : vector<15xf32>
    %998 = vector.multi_reduction <add>, %995, %cst_603 [1] : vector<15x16xf32> to vector<15xf32>
    %999 = vector.shape_cast %998 : vector<15xf32> to vector<15x1xf32>
    %cst_604 = arith.constant 1.600000e+01 : f32
    %1000 = vector.broadcast %cst_604 : f32 to vector<15x1xf32>
    %1001 = arith.divf %999, %1000 : vector<15x1xf32>
    %1002 = vector.broadcast %1001 : vector<15x1xf32> to vector<15x16xf32>
    %1003 = arith.subf %995, %1002 : vector<15x16xf32>
    %1004 = arith.mulf %1003, %1003 : vector<15x16xf32>
    %cst_605 = arith.constant dense<0.000000e+00> : vector<15xf32>
    %1005 = vector.multi_reduction <add>, %1004, %cst_605 [1] : vector<15x16xf32> to vector<15xf32>
    %1006 = vector.shape_cast %1005 : vector<15xf32> to vector<15x1xf32>
    %cst_606 = arith.constant 1.600000e+01 : f32
    %1007 = vector.broadcast %cst_606 : f32 to vector<15x1xf32>
    %1008 = arith.divf %1006, %1007 : vector<15x1xf32>
    %cst_607 = arith.constant 9.99999974E-6 : f32
    %1009 = vector.broadcast %cst_607 : f32 to vector<15x1xf32>
    %1010 = arith.addf %1008, %1009 : vector<15x1xf32>
    %1011 = math.rsqrt %1010 : vector<15x1xf32>
    %1012 = vector.broadcast %1011 : vector<15x1xf32> to vector<15x16xf32>
    %1013 = arith.mulf %1003, %1012 : vector<15x16xf32>
    %1014 = arith.mulf %1013, %996 : vector<15x16xf32>
    %1015 = arith.addf %1014, %997 : vector<15x16xf32>
    %cst_608 = arith.constant 0.000000e+00 : f32
    %1016 = vector.broadcast %cst_608 : f32 to vector<15x16xf32>
    %1017 = arith.maximumf %1015, %1016 : vector<15x16xf32>
    %c1_609 = arith.constant 1 : index
    %c0_610 = arith.constant 0 : index
    %1018 = vector.load %arg3[%c1_609, %c0_610] : memref<16x16xf32, #tpu.memory_space<vmem>>, vector<15x16xf32>
    tpu.vector_store %arg3[%c1_609, %c0_610], %1017 {strides = array<i32>} : memref<16x16xf32, #tpu.memory_space<vmem>>, vector<15x16xf32>,
    %1019 = vector.extract_strided_slice %984 {offsets = [0, 0], sizes = [1, 16], strides = [1, 1]} : vector<16x16xf32> to vector<1x16xf32>
    %c735_611 = arith.constant 735 : index
    %c0_612 = arith.constant 0 : index
    %1020 = vector.load %arg1[%c735_611, %c0_612] : memref<824x24xf32, #tpu.memory_space<vmem>>, vector<1x16xf32>
    %c750_613 = arith.constant 750 : index
    %c0_614 = arith.constant 0 : index
    %1021 = vector.load %arg1[%c750_613, %c0_614] : memref<824x24xf32, #tpu.memory_space<vmem>>, vector<1x16xf32>
    %cst_615 = arith.constant dense<0.000000e+00> : vector<1xf32>
    %1022 = vector.multi_reduction <add>, %1019, %cst_615 [1] : vector<1x16xf32> to vector<1xf32>
    %1023 = vector.shape_cast %1022 : vector<1xf32> to vector<1x1xf32>
    %cst_616 = arith.constant 1.600000e+01 : f32
    %1024 = vector.broadcast %cst_616 : f32 to vector<1x1xf32>
    %1025 = arith.divf %1023, %1024 : vector<1x1xf32>
    %1026 = vector.broadcast %1025 : vector<1x1xf32> to vector<1x16xf32>
    %1027 = arith.subf %1019, %1026 : vector<1x16xf32>
    %1028 = arith.mulf %1027, %1027 : vector<1x16xf32>
    %cst_617 = arith.constant dense<0.000000e+00> : vector<1xf32>
    %1029 = vector.multi_reduction <add>, %1028, %cst_617 [1] : vector<1x16xf32> to vector<1xf32>
    %1030 = vector.shape_cast %1029 : vector<1xf32> to vector<1x1xf32>
    %cst_618 = arith.constant 1.600000e+01 : f32
    %1031 = vector.broadcast %cst_618 : f32 to vector<1x1xf32>
    %1032 = arith.divf %1030, %1031 : vector<1x1xf32>
    %cst_619 = arith.constant 9.99999974E-6 : f32
    %1033 = vector.broadcast %cst_619 : f32 to vector<1x1xf32>
    %1034 = arith.addf %1032, %1033 : vector<1x1xf32>
    %1035 = math.rsqrt %1034 : vector<1x1xf32>
    %1036 = vector.broadcast %1035 : vector<1x1xf32> to vector<1x16xf32>
    %1037 = arith.mulf %1027, %1036 : vector<1x16xf32>
    %1038 = arith.mulf %1037, %1020 : vector<1x16xf32>
    %1039 = arith.addf %1038, %1021 : vector<1x16xf32>
    %cst_620 = arith.constant 0.000000e+00 : f32
    %1040 = vector.broadcast %cst_620 : f32 to vector<1x16xf32>
    %1041 = arith.maximumf %1039, %1040 : vector<1x16xf32>
    %c0_621 = arith.constant 0 : index
    %c0_622 = arith.constant 0 : index
    %1042 = vector.load %arg3[%c0_621, %c0_622] : memref<16x16xf32, #tpu.memory_space<vmem>>, vector<1x16xf32>
    tpu.vector_store %arg3[%c0_621, %c0_622], %1041 {strides = array<i32>} : memref<16x16xf32, #tpu.memory_space<vmem>>, vector<1x16xf32>,
    %c0_623 = arith.constant 0 : index
    %c0_624 = arith.constant 0 : index
    %1043 = vector.load %arg3[%c0_623, %c0_624] : memref<16x16xf32, #tpu.memory_space<vmem>>, vector<16x16xf32>
    %c765 = arith.constant 765 : index
    %c0_625 = arith.constant 0 : index
    %1044 = vector.load %arg1[%c765, %c0_625] : memref<824x24xf32, #tpu.memory_space<vmem>>, vector<16x11xf32>
    %cst_626 = arith.constant dense<0.000000e+00> : vector<16x11xf32>
    %1045 = tpu.matmul %1043, %1044, %cst_626 {dimension_numbers = #tpu.dot_dimension_numbers<[1], [0], [0], [1], [0, 0, 1, 1], [], []>} : vector<16x16xf32>, vector<16x11xf32>, vector<16x11xf32> -> vector<16x11xf32>
    %c781 = arith.constant 781 : index
    %c0_627 = arith.constant 0 : index
    %1046 = vector.load %arg1[%c781, %c0_627] : memref<824x24xf32, #tpu.memory_space<vmem>>, vector<16x11xf32>
    %1047 = arith.addf %1045, %1046 : vector<16x11xf32>
    %cst_628 = arith.constant 0.000000e+00 : f32
    %1048 = vector.broadcast %cst_628 : f32 to vector<16x11xf32>
    %1049 = arith.maximumf %1047, %1048 : vector<16x11xf32>
    %c797 = arith.constant 797 : index
    %c0_629 = arith.constant 0 : index
    %1050 = vector.load %arg1[%c797, %c0_629] : memref<824x24xf32, #tpu.memory_space<vmem>>, vector<11x6xf32>
    %cst_630 = arith.constant dense<0.000000e+00> : vector<16x6xf32>
    %1051 = tpu.matmul %1049, %1050, %cst_630 {dimension_numbers = #tpu.dot_dimension_numbers<[1], [0], [0], [1], [0, 0, 1, 1], [], []>} : vector<16x11xf32>, vector<11x6xf32>, vector<16x6xf32> -> vector<16x6xf32>
    %c808 = arith.constant 808 : index
    %c0_631 = arith.constant 0 : index
    %1052 = vector.load %arg1[%c808, %c0_631] : memref<824x24xf32, #tpu.memory_space<vmem>>, vector<16x6xf32>
    %1053 = arith.addf %1051, %1052 : vector<16x6xf32>
    %c0_632 = arith.constant 0 : index
    %c0_633 = arith.constant 0 : index
    %1054 = vector.load %arg2[%c0_632, %c0_633] : memref<16x6xf32, #tpu.memory_space<vmem>>, vector<16x6xf32>
    tpu.vector_store %arg2[%c0_632, %c0_633], %1053 {strides = array<i32>} : memref<16x6xf32, #tpu.memory_space<vmem>>, vector<16x6xf32>,
    return
  }
}

</mosaic_0001>

<bundles_post_ra>
// kernel: forward.1
= control target key start
LH: loop header
LB: loop body
LE: loop exit
PB: predicated region body
PF: predicated region fallthrough
CT: control target
= control target key end

     0   :  { %vm23_vm0 = vcmask 1045504   ;;  %vm16_vm1 = vcmask 48128   ;;  %vm115_vm2 = vcmask 1042432   ;;  %vm6254_vm3 = vmmov 1   ;;  %s7455_s1 = inlined_call_operand.vmem [shape: f32[824,24], index: 1, kind: input, shape index: {}]   ;;  %s7456_s0 = inlined_call_operand.vmem [shape: f32[16,6], index: 0, kind: input, shape index: {}]   ;;  %s7457_s2 = inlined_call_operand.vmem [shape: f32[16,6], index: 2, kind: output, shape index: {}]  }
   0x1   :  { %v13_v0 = vld [vmem:[%s7455_s1] sm:$0x3f]  ;;  %v12_v2 = vld [vmem:[%s7456_s0 + $0x8] sm:$0xff]  ;;  %v104_v3 = vld [vmem:[%s7455_s1 + $0x16] sm:$0xff]  ;;  %vm108_vm5 = vcmask 89088   ;;  %vm196_vm6 = vcmask 130048  }
   0x2   :  { %v11_v1 = vld [vmem:[%s7456_s0] sm:$0xff]  ;;  %5567 = vmatprep.subr.msk.mxu1 %vm23_vm0, %v13_v0  ;;  %vm6287_vm4 = vmpackc.low %vm115_vm2, %vm6254_vm3  ;;  %v15_v7 = vld [vmem:[%s7455_s1 + $0xe] sm:$0xff]  ;;  %vm377_vm7 = vcmask 195584   ;;  %vm381_vm8 = vcmask 194560   ;;  %vm505_vm9 = vcmask 129024   ;;  %vm2889_vm10 = vcmask 122880  }
   0x3   :  { %5569 = vmatprep.mubr.msk.f32.mxu1 %vm16_vm1, %v11_v1  ;;  %5568 = vmatpush3.msk.msra.mxu1 %vm23_vm0, %v13_v0  ;;  %v105_v4 = vld [vmem:[%s7455_s1 + $0x1e] sm:$0x7]  ;;  %v14_v8 = vld [vmem:[%s7455_s1 + $0x6] sm:$0xff]  ;;  %v203_v18 = vld [vmem:[%s7455_s1 + $0x31] sm:$0xff]  ;;  %vm2839_vm11 = vcmask 1046528  }
   0x4   :  { %5570 = vmatmul.mubr.msk.f32.vlgmr.msra.gmra.mrb[0].mxu1 %vm16_vm1, %v12_v2  ;;  %v5929_v5 = vpack.c.bf16 %v105_v4, %v104_v3  ;;  %v205_v15 = vld [vmem:[%s7455_s1 + $0x41] sm:$0xff]  ;;  %v206_v16 = vld [vmem:[%s7455_s1 + $0x49] sm:$0xff]  ;;  %v204_v19 = vld [vmem:[%s7455_s1 + $0x39] sm:$0xff] }
   0x5   :  { %v6309_v17 = vpack.c.bf16 %v206_v16, %v205_v15  ;;  %v6319_v20 = vpack.c.bf16 %v204_v19, %v203_v18  ;;  %v107_v21 = vld [vmem:[%s7455_s1 + $0x29] sm:$0xff]  ;;  %v106_v22 = vld [vmem:[%s7455_s1 + $0x21] sm:$0xff]  ;;  %v369_v33 = vld [vmem:[%s7455_s1 + $0x51] sm:$0xff] }
   0x6   :  { %5931 = vmatprep.subr.msk.bf16.mxu1 %vm6287_vm4, %v5929_v5  ;;  %v370_v35 = vld [vmem:[%s7455_s1 + $0x59] sm:$0x7f]  ;;  %v413_v52 = vld [vmem:[%s7455_s1 + $0xe0] sm:$0xff]  ;;  %v6361_v54 = vld [vmem:[%s7455_s1 + $0xe8] sm:$0xff] }
   0x7   :  { %5934 = vmatpush3.bf16.msk.msra.mxu1 %vm6287_vm4, %v5929_v5  ;;  %5936 = vmatprep.subr.bf16.mxu0 %v6309_v17  ;;  %v412_v51 = vld [vmem:[%s7455_s1 + $0xd8] sm:$0xff]  ;;  %v6374_v0 = vld [vmem:[%s7455_s1 + $0xc9] sm:$0xff]  ;;  %v374_v3 = vld [vmem:[%s7455_s1 + $0xc2] sm:$0x7f] }
   0x8   :  { %5938 = vmatpush3.bf16.msra.mxu0 %v6309_v17  ;;  %v6354_v53 = vpack.c.bf16 %v413_v52, %v412_v51  ;;  %v6369_v62 = vld [vmem:[%s7455_s1 + $0xba] sm:$0xff]  ;;  %v5177_v6 = vld [vmem:[%s7455_s1 + $0x330] sm:$0xff] }
   0x9   :  { %5940 = vmatprep.subr.bf16.mxu0 %v6319_v20 }
   0xa   :  { %5944 = vmatprep.subr.bf16.mxu1 %v6354_v53 }
  0xd7   :  { %v5571_v9 = vpop.f32.mrb[0].mxu1 }
  0xd8   :  { %v99_v10 = vadd.f32 %v5571_v9, %v15_v7  ;;  %v93_v11 = vpop.f32.mrb[1].mxu1  ;;  %v376_v7 = vld [vmem:[%s7455_s1 + $0xd1] sm:$0x7f] }
  0xd9   :  { %v94_v12 = vadd.f32 %v93_v11, %v14_v8 }
  0xda   :  { %v103_v14 = vmax.f32 %v99_v10, 0.0 }
  0xdb   :  { %v102_v13 = vmax.f32 %v94_v12, 0.0  ;;  %v416_v12 = vld [vmem:[%s7455_s1 + $0xf8] sm:$0x7f] }
  0xdd   :  { %5576 = vmatprep.mubr.msk.f32.mxu1 %vm108_vm5, %v102_v13  ;;  %v6396_v13 = vld [vmem:[%s7455_s1 + $0xf0] sm:$0xff] }
  0xde   :  { %5577 = vmatmul.mubr.msk.f32.vlgmr.msra.gmra.mrb[2].mxu1 %vm108_vm5, %v103_v14 }
  0xdf   :  { %5946 = vmatpush3.bf16.msra.mxu1 %v6354_v53 }
  0xe0   :  { %5597 = vmatprep.subr.mxu1 %v6361_v54 }
  0xe3   :  { %5598 = vmatpush3.msra.mxu1 %v6361_v54 }
  0xe4   :  { %5956 = vmatprep.subr.bf16.mxu1 %v6354_v53 }
 0x1b1   :  { %v5578_v23 = vpop.f32.mrb[2].mxu1 }
 0x1b2   :  { %v191_v24 = vadd.f32 %v5578_v23, %v107_v21  ;;  %v185_v25 = vpop.f32.mrb[3].mxu1 }
 0x1b3   :  { %v186_v26 = vadd.f32 %v185_v25, %v106_v22 }
 0x1b4   :  { %v195_v27 = vmax.f32 %v191_v24, 0.0 }
 0x1b5   :  { %v194_v28 = vmax.f32 %v186_v26, 0.0 }
 0x1b6   :  { %198 = vst.msk [vmem:[#allocation2 + $0x8] sm:$0xff] %vm196_vm6, %v195_v27 }
 0x1b7   :  { %197 = vst.msk [vmem:[#allocation2] sm:$0xff] %vm196_vm6, %v194_v28 }
 0x1bd   :  { %v202_v30 = vld [vmem:[#allocation2 + $0x9] sm:$0x7f] }
 0x1be   :  { %v201_v29 = vld [vmem:[#allocation2 + $0x1] sm:$0xff] }
 0x1bf   :  { %5583 = vmatprep.mubr.msk.f32.mxu0 %vm196_vm6, %v201_v29  ;;  %v199_v31 = vld [vmem:[#allocation2] sm:$0xff]  ;;  %v200_v32 = vld [vmem:[#allocation2 + $0x8] sm:$0x7f] }
 0x1c0   :  { %5584 = vmatmul.mubr.msk.f32.vlgmr.msra.gmra.mrb[0].mxu0 %vm196_vm6, %v202_v30 }
 0x1c1   :  { %5942 = vmatpush3.bf16.msra.mxu0 %v6319_v20  ;;  %5590 = vmatprep.mubr.msk.f32.mxu0 %vm196_vm6, %v199_v31 }
 0x1c2   :  { %5948 = vmatprep.subr.bf16.mxu0 %v6309_v17 }
 0x1c8   :  { %5591 = vmatmul.mubr.msk.f32.vlgmr.msra.gmra.mrb[0].mxu0 %vm196_vm6, %v200_v32 }
 0x1c9   :  { %5950 = vmatpush3.bf16.msra.mxu0 %v6309_v17 }
 0x1ca   :  { %5952 = vmatprep.subr.bf16.mxu0 %v6319_v20 }
 0x29b   :  { %v5592_v34 = vpop.f32.mrb[0].mxu0 }
 0x29c   :  { %v360_v36 = vpop.f32.mrb[1].mxu0  ;;  %v372_v38 = vadd.f32 %v5592_v34, %v370_v35 }
 0x29d   :  { %v371_v37 = vadd.f32 %v369_v33, %v360_v36 }
 0x29e   :  { %v382_v40 = vsel %vm381_vm8, %v372_v38, 0.0 }
 0x29f   :  { %v378_v39 = vsel %vm377_vm7, %v371_v37, 0.0 }
 0x2a0   :  { %379 = vadd.xlane.f32.xlu0 %v378_v39  ;;  %v499_v39 = vld [vmem:[%s7455_s1 + $0x107] sm:$0x7f] }
 0x2a4   :  { %383 = vadd.xlane.f32.xlu0 %v382_v40 }
 0x32d   :  { %v380_v41 = vpop.xlane.xlu0 %379 }
 0x32e   :  { %v386_v42 = vmul.f32 0.041666668, %v380_v41 }
 0x330   :  { %v388_v43 = vsub.f32 %v371_v37, %v386_v42  ;;  %v6409_v42 = vld [vmem:[%s7455_s1 + $0xff] sm:$0xff] }
 0x331   :  { %v384_v44 = vpop.xlane.xlu0 %383 }
 0x332   :  { %v387_v45 = vmul.f32 0.041666668, %v384_v44  ;;  %v390_v46 = vmul.f32 %v388_v43, %v388_v43 }
 0x334   :  { %v389_v47 = vsub.f32 %v372_v38, %v387_v45  ;;  %v392_v48 = vsel %vm377_vm7, %v390_v46, 0.0  ;;  %v6417_v46 = vld [vmem:[%s7455_s1 + $0x10e] sm:$0xff] }
 0x335   :  { %393 = vadd.xlane.f32.xlu1 %v392_v48 }
 0x336   :  { %v391_v49 = vmul.f32 %v389_v47, %v389_v47 }
 0x338   :  { %v395_v50 = vsel %vm381_vm8, %v391_v49, 0.0 }
 0x339   :  { %396 = vadd.xlane.f32.xlu1 %v395_v50 }
 0x3c2   :  { %v394_v55 = vpop.xlane.xlu1 %393 }
 0x3c3   :  { %v398_v56 = vmul.f32 0.041666668, %v394_v55 }
 0x3c5   :  { %v400_v57 = vadd.f32 1e-05, %v398_v56 }
 0x3c6   :  { %v397_v58 = vpop.xlane.xlu1 %396 }
 0x3c7   :  { %6128 = vrsqrt.f32 %v400_v57  ;;  %v399_v59 = vmul.f32 0.041666668, %v397_v58  ;;  %v709_v58 = vld [vmem:[%s7455_s1 + $0x68] sm:$0x7f] }
 0x3c9   :  { %v401_v60 = vadd.f32 1e-05, %v399_v59  ;;  %v708_v59 = vld [vmem:[%s7455_s1 + $0x60] sm:$0xff] }
 0x3cb   :  { %6130 = vrsqrt.f32 %v401_v60 }
 0x3d1   :  { %v6129_v61 = vpop.eup %6128 }
 0x3d2   :  { %v404_v63 = vmul.f32 %v6129_v61, %v388_v43  ;;  %v501_v43 = vld [vmem:[%s7455_s1 + $0x116] sm:$0x7f] }
 0x3d4   :  { %v406_v1 = vmul.f32 %v404_v63, %v6369_v62 }
 0x3d5   :  { %v6131_v2 = vpop.eup %6130 }
 0x3d6   :  { %v405_v4 = vmul.f32 %v6131_v2, %v389_v47  ;;  %v408_v5 = vadd.f32 %v406_v1, %v6374_v0 }
 0x3d8   :  { %v410_v8 = vmax.f32 %v408_v5, 0.0  ;;  %v407_v9 = vmul.f32 %v405_v4, %v374_v3 }
 0x3da   :  { %5599 = vmatprep.mubr.msk.f32.mxu1 %vm377_vm7, %v410_v8  ;;  %v409_v10 = vadd.f32 %v407_v9, %v376_v7 }
 0x3dc   :  { %v411_v11 = vmax.f32 %v409_v10, 0.0 }
 0x3de   :  { %5600 = vmatmul.mubr.msk.f32.vlgmr.msra.gmra.mrb[4].mxu1 %vm377_vm7, %v411_v11 }
 0x3df   :  { %5958 = vmatpush3.bf16.msra.mxu1 %v6354_v53 }
 0x3e0   :  { %5620 = vmatprep.subr.mxu1 %v6361_v54 }
 0x3e3   :  { %5621 = vmatpush3.msra.mxu1 %v6361_v54 }
 0x3e4   :  { %5960 = vmatprep.subr.bf16.mxu1 %v6309_v17 }
 0x4b1   :  { %v5601_v14 = vpop.f32.mrb[4].mxu1 }
 0x4b2   :  { %v495_v15 = vadd.f32 %v5601_v14, %v416_v12  ;;  %v489_v16 = vpop.f32.mrb[5].mxu1 }
 0x4b3   :  { %v490_v18 = vadd.f32 %v489_v16, %v6396_v13 }
 0x4b4   :  { %v506_v19 = vsel %vm505_vm9, %v495_v15, 0.0 }
 0x4b5   :  { %507 = vadd.xlane.f32.xlu1 %v506_v19  ;;  %v502_v21 = vsel %vm196_vm6, %v490_v18, 0.0 }
 0x4b6   :  { %503 = vadd.xlane.f32.xlu0 %v502_v21 }
 0x542   :  { %v508_v22 = vpop.xlane.xlu1 %507 }
 0x543   :  { %v511_v23 = vmul.f32 0.0625, %v508_v22  ;;  %v504_v24 = vpop.xlane.xlu0 %503 }
 0x544   :  { %v510_v25 = vmul.f32 0.0625, %v504_v24 }
 0x545   :  { %v513_v26 = vsub.f32 %v495_v15, %v511_v23 }
 0x546   :  { %v512_v27 = vsub.f32 %v490_v18, %v510_v25  ;;  %v713_v25 = vld [vmem:[%s7455_s1 + $0xc2] sm:$0x7f] }
 0x547   :  { %v515_v28 = vmul.f32 %v513_v26, %v513_v26 }
 0x548   :  { %v514_v29 = vmul.f32 %v512_v27, %v512_v27 }
 0x549   :  { %v519_v30 = vsel %vm505_vm9, %v515_v28, 0.0 }
 0x54a   :  { %520 = vadd.xlane.f32.xlu1 %v519_v30  ;;  %v516_v31 = vsel %vm196_vm6, %v514_v29, 0.0  ;;  %v715_v29 = vld [vmem:[%s7455_s1 + $0xd1] sm:$0x7f] }
 0x54b   :  { %517 = vadd.xlane.f32.xlu0 %v516_v31 }
 0x5d7   :  { %v521_v32 = vpop.xlane.xlu1 %520 }
 0x5d8   :  { %v523_v33 = vmul.f32 0.0625, %v521_v32  ;;  %v518_v34 = vpop.xlane.xlu0 %517 }
 0x5d9   :  { %v522_v35 = vmul.f32 0.0625, %v518_v34 }
 0x5da   :  { %v525_v36 = vadd.f32 1e-05, %v523_v33 }
 0x5db   :  { %v524_v37 = vadd.f32 1e-05, %v522_v35 }
 0x5dc   :  { %6132 = vrsqrt.f32 %v525_v36  ;;  %v752_v36 = vld [vmem:[%s7455_s1 + $0xf8] sm:$0x7f] }
 0x5dd   :  { %6134 = vrsqrt.f32 %v524_v37 }
 0x5e6   :  { %v6133_v38 = vpop.eup %6132 }
 0x5e7   :  { %v6135_v40 = vpop.eup %6134  ;;  %v529_v41 = vmul.f32 %v6133_v38, %v513_v26 }
 0x5e8   :  { %v528_v44 = vmul.f32 %v6135_v40, %v512_v27 }
 0x5e9   :  { %v531_v45 = vmul.f32 %v529_v41, %v499_v39 }
 0x5ea   :  { %v530_v47 = vmul.f32 %v528_v44, %v6409_v42 }
 0x5eb   :  { %v533_v48 = vadd.f32 %v531_v45, %v501_v43 }
 0x5ec   :  { %v532_v49 = vadd.f32 %v530_v47, %v6417_v46 }
 0x5ed   :  { %v535_v50 = vmax.f32 %v533_v48, 0.0 }
 0x5ee   :  { %v534_v51 = vmax.f32 %v532_v49, 0.0 }
 0x5ef   :  { %537 = vst.msk [vmem:[#allocation2 + $0x8] sm:$0x7f] %vm505_vm9, %v535_v50 }
 0x5f0   :  { %536 = vst.msk [vmem:[#allocation2] sm:$0xff] %vm196_vm6, %v534_v51 }
 0x5f6   :  { %v541_v55 = vld [vmem:[#allocation2 + $0x9] sm:$0x7f] }
 0x5f7   :  { %v540_v52 = vld [vmem:[#allocation2 + $0x1] sm:$0xff] }
 0x5f8   :  { %5606 = vmatprep.mubr.msk.f32.mxu0 %vm196_vm6, %v540_v52  ;;  %v538_v56 = vld [vmem:[#allocation2] sm:$0xff]  ;;  %v539_v57 = vld [vmem:[#allocation2 + $0x8] sm:$0x7f] }
 0x5f9   :  { %5607 = vmatmul.mubr.msk.f32.vlgmr.msra.gmra.mrb[2].mxu0 %vm196_vm6, %v541_v55 }
 0x5fa   :  { %5954 = vmatpush3.bf16.msra.mxu0 %v6319_v20  ;;  %5613 = vmatprep.mubr.msk.f32.mxu0 %vm196_vm6, %v538_v56 }
 0x5fb   :  { %5968 = vmatprep.subr.bf16.mxu0 %v6354_v53 }
 0x601   :  { %5614 = vmatmul.mubr.msk.f32.vlgmr.msra.gmra.mrb[2].mxu0 %vm196_vm6, %v539_v57 }
 0x602   :  { %5970 = vmatpush3.bf16.msra.mxu0 %v6354_v53 }
 0x603   :  { %5643 = vmatprep.subr.mxu0 %v6361_v54 }
 0x606   :  { %5644 = vmatpush3.msra.mxu0 %v6361_v54 }
 0x607   :  { %5972 = vmatprep.subr.bf16.mxu0 %v6309_v17 }
 0x6d4   :  { %v5615_v60 = vpop.f32.mrb[2].mxu0 }
 0x6d5   :  { %v711_v61 = vadd.f32 %v5615_v60, %v709_v58  ;;  %v699_v63 = vpop.f32.mrb[3].mxu0 }
 0x6d6   :  { %v710_v1 = vadd.f32 %v708_v59, %v699_v63 }
 0x6d7   :  { %v719_v2 = vsel %vm381_vm8, %v711_v61, 0.0 }
 0x6d8   :  { %720 = vadd.xlane.f32.xlu1 %v719_v2  ;;  %v716_v3 = vsel %vm377_vm7, %v710_v1, 0.0  ;;  %v835_v2 = vld [vmem:[%s7455_s1 + $0x107] sm:$0x7f] }
 0x6d9   :  { %717 = vadd.xlane.f32.xlu0 %v716_v3 }
 0x765   :  { %v721_v4 = vpop.xlane.xlu1 %720 }
 0x766   :  { %v723_v5 = vmul.f32 0.041666668, %v721_v4  ;;  %v718_v7 = vpop.xlane.xlu0 %717 }
 0x767   :  { %v722_v8 = vmul.f32 0.041666668, %v718_v7 }
 0x768   :  { %v725_v9 = vsub.f32 %v711_v61, %v723_v5  ;;  %v837_v5 = vld [vmem:[%s7455_s1 + $0x116] sm:$0x7f] }
 0x769   :  { %v724_v10 = vsub.f32 %v710_v1, %v722_v8 }
 0x76a   :  { %v727_v11 = vmul.f32 %v725_v9, %v725_v9 }
 0x76b   :  { %v726_v12 = vmul.f32 %v724_v10, %v724_v10 }
 0x76c   :  { %v731_v14 = vsel %vm381_vm8, %v727_v11, 0.0 }
 0x76d   :  { %732 = vadd.xlane.f32.xlu1 %v731_v14  ;;  %v728_v15 = vsel %vm377_vm7, %v726_v12, 0.0 }
 0x76e   :  { %729 = vadd.xlane.f32.xlu0 %v728_v15 }
 0x7fa   :  { %v733_v16 = vpop.xlane.xlu1 %732 }
 0x7fb   :  { %v735_v18 = vmul.f32 0.041666668, %v733_v16  ;;  %v730_v19 = vpop.xlane.xlu0 %729 }
 0x7fc   :  { %v734_v21 = vmul.f32 0.041666668, %v730_v19 }
 0x7fd   :  { %v737_v22 = vadd.f32 1e-05, %v735_v18 }
 0x7fe   :  { %v736_v23 = vadd.f32 1e-05, %v734_v21  ;;  %v1043_v21 = vld [vmem:[%s7455_s1 + $0x77] sm:$0x7f] }
 0x7ff   :  { %6136 = vrsqrt.f32 %v737_v22  ;;  %v1042_v22 = vld [vmem:[%s7455_s1 + $0x6f] sm:$0xff] }
 0x800   :  { %6138 = vrsqrt.f32 %v736_v23 }
 0x809   :  { %v6137_v24 = vpop.eup %6136 }
 0x80a   :  { %v6139_v26 = vpop.eup %6138  ;;  %v741_v27 = vmul.f32 %v6137_v24, %v725_v9 }
 0x80b   :  { %v740_v28 = vmul.f32 %v6139_v26, %v724_v10 }
 0x80c   :  { %v743_v30 = vmul.f32 %v741_v27, %v713_v25 }
 0x80d   :  { %v742_v31 = vmul.f32 %v740_v28, %v6369_v62 }
 0x80e   :  { %v745_v32 = vadd.f32 %v743_v30, %v715_v29 }
 0x80f   :  { %v744_v33 = vadd.f32 %v742_v31, %v6374_v0 }
 0x810   :  { %v747_v35 = vmax.f32 %v745_v32, 0.0 }
 0x811   :  { %v746_v34 = vmax.f32 %v744_v33, 0.0 }
 0x813   :  { %5622 = vmatprep.mubr.msk.f32.mxu1 %vm377_vm7, %v746_v34 }
 0x814   :  { %5623 = vmatmul.mubr.msk.f32.vlgmr.msra.gmra.mrb[6].mxu1 %vm377_vm7, %v747_v35 }
 0x815   :  { %5962 = vmatpush3.bf16.msra.mxu1 %v6309_v17 }
 0x816   :  { %5964 = vmatprep.subr.bf16.mxu1 %v6319_v20 }
 0x8e7   :  { %v5624_v37 = vpop.f32.mrb[6].mxu1 }
 0x8e8   :  { %v831_v38 = vadd.f32 %v5624_v37, %v752_v36  ;;  %v825_v39 = vpop.f32.mrb[7].mxu1 }
 0x8e9   :  { %v826_v40 = vadd.f32 %v825_v39, %v6396_v13 }
 0x8ea   :  { %v841_v41 = vsel %vm505_vm9, %v831_v38, 0.0 }
 0x8eb   :  { %842 = vadd.xlane.f32.xlu1 %v841_v41  ;;  %v838_v43 = vsel %vm196_vm6, %v826_v40, 0.0 }
 0x8ec   :  { %839 = vadd.xlane.f32.xlu0 %v838_v43 }
 0x978   :  { %v843_v44 = vpop.xlane.xlu1 %842 }
 0x979   :  { %v845_v45 = vmul.f32 0.0625, %v843_v44  ;;  %v840_v47 = vpop.xlane.xlu0 %839 }
 0x97a   :  { %v844_v48 = vmul.f32 0.0625, %v840_v47 }
 0x97b   :  { %v847_v49 = vsub.f32 %v831_v38, %v845_v45 }
 0x97c   :  { %v846_v50 = vsub.f32 %v826_v40, %v844_v48  ;;  %v1047_v48 = vld [vmem:[%s7455_s1 + $0xc2] sm:$0x7f] }
 0x97d   :  { %v849_v51 = vmul.f32 %v847_v49, %v847_v49 }
 0x97e   :  { %v848_v52 = vmul.f32 %v846_v50, %v846_v50 }
 0x97f   :  { %v853_v55 = vsel %vm505_vm9, %v849_v51, 0.0 }
 0x980   :  { %854 = vadd.xlane.f32.xlu1 %v853_v55  ;;  %v850_v56 = vsel %vm196_vm6, %v848_v52, 0.0  ;;  %v1049_v52 = vld [vmem:[%s7455_s1 + $0xd1] sm:$0x7f] }
 0x981   :  { %851 = vadd.xlane.f32.xlu0 %v850_v56 }
 0xa0d   :  { %v855_v57 = vpop.xlane.xlu1 %854 }
 0xa0e   :  { %v857_v58 = vmul.f32 0.0625, %v855_v57  ;;  %v852_v59 = vpop.xlane.xlu0 %851 }
 0xa0f   :  { %v856_v60 = vmul.f32 0.0625, %v852_v59 }
 0xa10   :  { %v859_v61 = vadd.f32 1e-05, %v857_v58 }
 0xa11   :  { %v858_v63 = vadd.f32 1e-05, %v856_v60 }
 0xa12   :  { %6140 = vrsqrt.f32 %v859_v61  ;;  %v1086_v61 = vld [vmem:[%s7455_s1 + $0xf8] sm:$0x7f] }
 0xa13   :  { %6142 = vrsqrt.f32 %v858_v63 }
 0xa1c   :  { %v6141_v1 = vpop.eup %6140 }
 0xa1d   :  { %v6143_v3 = vpop.eup %6142  ;;  %v863_v4 = vmul.f32 %v6141_v1, %v847_v49 }
 0xa1e   :  { %v862_v7 = vmul.f32 %v6143_v3, %v846_v50 }
 0xa1f   :  { %v865_v8 = vmul.f32 %v863_v4, %v835_v2 }
 0xa20   :  { %v864_v9 = vmul.f32 %v862_v7, %v6409_v42 }
 0xa21   :  { %v867_v10 = vadd.f32 %v865_v8, %v837_v5 }
 0xa22   :  { %v866_v11 = vadd.f32 %v864_v9, %v6417_v46 }
 0xa23   :  { %v869_v12 = vmax.f32 %v867_v10, 0.0 }
 0xa24   :  { %v868_v14 = vmax.f32 %v866_v11, 0.0 }
 0xa25   :  { %871 = vst.msk [vmem:[#allocation2 + $0x8] sm:$0x7f] %vm505_vm9, %v869_v12 }
 0xa26   :  { %870 = vst.msk [vmem:[#allocation2] sm:$0xff] %vm196_vm6, %v868_v14 }
 0xa2c   :  { %v875_v16 = vld [vmem:[#allocation2 + $0x9] sm:$0x7f] }
 0xa2d   :  { %v874_v15 = vld [vmem:[#allocation2 + $0x1] sm:$0xff] }
 0xa2e   :  { %5629 = vmatprep.mubr.msk.f32.mxu1 %vm196_vm6, %v874_v15  ;;  %v872_v18 = vld [vmem:[#allocation2] sm:$0xff]  ;;  %v873_v19 = vld [vmem:[#allocation2 + $0x8] sm:$0x7f] }
 0xa2f   :  { %5630 = vmatmul.mubr.msk.f32.vlgmr.msra.gmra.mrb[8].mxu1 %vm196_vm6, %v875_v16 }
 0xa30   :  { %5966 = vmatpush3.bf16.msra.mxu1 %v6319_v20  ;;  %5636 = vmatprep.mubr.msk.f32.mxu1 %vm196_vm6, %v872_v18 }
 0xa31   :  { %5980 = vmatprep.subr.bf16.mxu1 %v6354_v53 }
 0xa37   :  { %5637 = vmatmul.mubr.msk.f32.vlgmr.msra.gmra.mrb[8].mxu1 %vm196_vm6, %v873_v19 }
 0xa38   :  { %5982 = vmatpush3.bf16.msra.mxu1 %v6354_v53 }
 0xa39   :  { %5666 = vmatprep.subr.mxu1 %v6361_v54 }
 0xa3c   :  { %5667 = vmatpush3.msra.mxu1 %v6361_v54 }
 0xa3d   :  { %5984 = vmatprep.subr.bf16.mxu1 %v6309_v17 }
 0xb0a   :  { %v5638_v23 = vpop.f32.mrb[8].mxu1 }
 0xb0b   :  { %v1045_v24 = vadd.f32 %v5638_v23, %v1043_v21  ;;  %v1033_v25 = vpop.f32.mrb[9].mxu1 }
 0xb0c   :  { %v1044_v26 = vadd.f32 %v1042_v22, %v1033_v25 }
 0xb0d   :  { %v1053_v27 = vsel %vm381_vm8, %v1045_v24, 0.0 }
 0xb0e   :  { %1054 = vadd.xlane.f32.xlu1 %v1053_v27  ;;  %v1050_v28 = vsel %vm377_vm7, %v1044_v26, 0.0  ;;  %v1169_v27 = vld [vmem:[%s7455_s1 + $0x107] sm:$0x7f] }
 0xb0f   :  { %1051 = vadd.xlane.f32.xlu0 %v1050_v28 }
 0xb9b   :  { %v1055_v29 = vpop.xlane.xlu1 %1054 }
 0xb9c   :  { %v1057_v30 = vmul.f32 0.041666668, %v1055_v29  ;;  %v1052_v31 = vpop.xlane.xlu0 %1051 }
 0xb9d   :  { %v1056_v32 = vmul.f32 0.041666668, %v1052_v31 }
 0xb9e   :  { %v1059_v33 = vsub.f32 %v1045_v24, %v1057_v30  ;;  %v1171_v30 = vld [vmem:[%s7455_s1 + $0x116] sm:$0x7f] }
 0xb9f   :  { %v1058_v34 = vsub.f32 %v1044_v26, %v1056_v32 }
 0xba0   :  { %v1061_v35 = vmul.f32 %v1059_v33, %v1059_v33 }
 0xba1   :  { %v1060_v36 = vmul.f32 %v1058_v34, %v1058_v34 }
 0xba2   :  { %v1065_v37 = vsel %vm381_vm8, %v1061_v35, 0.0 }
 0xba3   :  { %1066 = vadd.xlane.f32.xlu1 %v1065_v37  ;;  %v1062_v38 = vsel %vm377_vm7, %v1060_v36, 0.0 }
 0xba4   :  { %1063 = vadd.xlane.f32.xlu0 %v1062_v38 }
 0xc30   :  { %v1067_v39 = vpop.xlane.xlu1 %1066 }
 0xc31   :  { %v1069_v40 = vmul.f32 0.041666668, %v1067_v39  ;;  %v1064_v41 = vpop.xlane.xlu0 %1063 }
 0xc32   :  { %v1068_v43 = vmul.f32 0.041666668, %v1064_v41 }
 0xc33   :  { %v1071_v44 = vadd.f32 1e-05, %v1069_v40 }
 0xc34   :  { %v1070_v45 = vadd.f32 1e-05, %v1068_v43  ;;  %v1377_v43 = vld [vmem:[%s7455_s1 + $0x86] sm:$0x7f] }
 0xc35   :  { %6144 = vrsqrt.f32 %v1071_v44  ;;  %v1376_v44 = vld [vmem:[%s7455_s1 + $0x7e] sm:$0xff] }
 0xc36   :  { %6146 = vrsqrt.f32 %v1070_v45 }
 0xc3f   :  { %v6145_v47 = vpop.eup %6144 }
 0xc40   :  { %v6147_v49 = vpop.eup %6146  ;;  %v1075_v50 = vmul.f32 %v6145_v47, %v1059_v33 }
 0xc41   :  { %v1074_v51 = vmul.f32 %v6147_v49, %v1058_v34 }
 0xc42   :  { %v1077_v55 = vmul.f32 %v1075_v50, %v1047_v48 }
 0xc43   :  { %v1076_v56 = vmul.f32 %v1074_v51, %v6369_v62 }
 0xc44   :  { %v1079_v57 = vadd.f32 %v1077_v55, %v1049_v52 }
 0xc45   :  { %v1078_v58 = vadd.f32 %v1076_v56, %v6374_v0 }
 0xc46   :  { %v1081_v60 = vmax.f32 %v1079_v57, 0.0 }
 0xc47   :  { %v1080_v59 = vmax.f32 %v1078_v58, 0.0 }
 0xc49   :  { %5645 = vmatprep.mubr.msk.f32.mxu0 %vm377_vm7, %v1080_v59 }
 0xc4a   :  { %5646 = vmatmul.mubr.msk.f32.vlgmr.msra.gmra.mrb[4].mxu0 %vm377_vm7, %v1081_v60 }
 0xc4b   :  { %5974 = vmatpush3.bf16.msra.mxu0 %v6309_v17 }
 0xc4c   :  { %5976 = vmatprep.subr.bf16.mxu0 %v6319_v20 }
 0xd1d   :  { %v5647_v63 = vpop.f32.mrb[4].mxu0 }
 0xd1e   :  { %v1165_v1 = vadd.f32 %v5647_v63, %v1086_v61  ;;  %v1159_v2 = vpop.f32.mrb[5].mxu0 }
 0xd1f   :  { %v1160_v3 = vadd.f32 %v1159_v2, %v6396_v13 }
 0xd20   :  { %v1175_v4 = vsel %vm505_vm9, %v1165_v1, 0.0 }
 0xd21   :  { %1176 = vadd.xlane.f32.xlu1 %v1175_v4  ;;  %v1172_v5 = vsel %vm196_vm6, %v1160_v3, 0.0 }
 0xd22   :  { %1173 = vadd.xlane.f32.xlu0 %v1172_v5 }
 0xdae   :  { %v1177_v7 = vpop.xlane.xlu1 %1176 }
 0xdaf   :  { %v1179_v8 = vmul.f32 0.0625, %v1177_v7  ;;  %v1174_v9 = vpop.xlane.xlu0 %1173 }
 0xdb0   :  { %v1178_v10 = vmul.f32 0.0625, %v1174_v9 }
 0xdb1   :  { %v1181_v11 = vsub.f32 %v1165_v1, %v1179_v8  ;;  %v1381_v8 = vld [vmem:[%s7455_s1 + $0xc2] sm:$0x7f] }
 0xdb2   :  { %v1180_v12 = vsub.f32 %v1160_v3, %v1178_v10 }
 0xdb3   :  { %v1183_v14 = vmul.f32 %v1181_v11, %v1181_v11 }
 0xdb4   :  { %v1182_v15 = vmul.f32 %v1180_v12, %v1180_v12 }
 0xdb5   :  { %v1187_v16 = vsel %vm505_vm9, %v1183_v14, 0.0 }
 0xdb6   :  { %1188 = vadd.xlane.f32.xlu1 %v1187_v16  ;;  %v1184_v18 = vsel %vm196_vm6, %v1182_v15, 0.0 }
 0xdb7   :  { %1185 = vadd.xlane.f32.xlu0 %v1184_v18 }
 0xe43   :  { %v1189_v19 = vpop.xlane.xlu1 %1188 }
 0xe44   :  { %v1191_v21 = vmul.f32 0.0625, %v1189_v19  ;;  %v1186_v22 = vpop.xlane.xlu0 %1185 }
 0xe45   :  { %v1190_v23 = vmul.f32 0.0625, %v1186_v22  ;;  %v1420_v22 = vld [vmem:[%s7455_s1 + $0xf8] sm:$0x7f] }
 0xe46   :  { %v1193_v24 = vadd.f32 1e-05, %v1191_v21 }
 0xe47   :  { %v1192_v25 = vadd.f32 1e-05, %v1190_v23 }
 0xe48   :  { %6148 = vrsqrt.f32 %v1193_v24 }
 0xe49   :  { %6150 = vrsqrt.f32 %v1192_v25 }
 0xe52   :  { %v6149_v26 = vpop.eup %6148 }
 0xe53   :  { %v6151_v28 = vpop.eup %6150  ;;  %v1197_v29 = vmul.f32 %v6149_v26, %v1181_v11 }
 0xe54   :  { %v1196_v31 = vmul.f32 %v6151_v28, %v1180_v12  ;;  %v1383_v12 = vld [vmem:[%s7455_s1 + $0xd1] sm:$0x7f] }
 0xe55   :  { %v1199_v32 = vmul.f32 %v1197_v29, %v1169_v27 }
 0xe56   :  { %v1198_v33 = vmul.f32 %v1196_v31, %v6409_v42 }
 0xe57   :  { %v1201_v34 = vadd.f32 %v1199_v32, %v1171_v30 }
 0xe58   :  { %v1200_v35 = vadd.f32 %v1198_v33, %v6417_v46 }
 0xe59   :  { %v1203_v36 = vmax.f32 %v1201_v34, 0.0 }
 0xe5a   :  { %v1202_v37 = vmax.f32 %v1200_v35, 0.0 }
 0xe5b   :  { %1205 = vst.msk [vmem:[#allocation2 + $0x8] sm:$0x7f] %vm505_vm9, %v1203_v36 }
 0xe5c   :  { %1204 = vst.msk [vmem:[#allocation2] sm:$0xff] %vm196_vm6, %v1202_v37 }
 0xe62   :  { %v1209_v39 = vld [vmem:[#allocation2 + $0x9] sm:$0x7f] }
 0xe63   :  { %v1208_v38 = vld [vmem:[#allocation2 + $0x1] sm:$0xff] }
 0xe64   :  { %5652 = vmatprep.mubr.msk.f32.mxu0 %vm196_vm6, %v1208_v38  ;;  %v1206_v40 = vld [vmem:[#allocation2] sm:$0xff]  ;;  %v1207_v41 = vld [vmem:[#allocation2 + $0x8] sm:$0x7f] }
 0xe65   :  { %5653 = vmatmul.mubr.msk.f32.vlgmr.msra.gmra.mrb[6].mxu0 %vm196_vm6, %v1209_v39 }
 0xe66   :  { %5978 = vmatpush3.bf16.msra.mxu0 %v6319_v20  ;;  %5659 = vmatprep.mubr.msk.f32.mxu0 %vm196_vm6, %v1206_v40 }
 0xe67   :  { %5992 = vmatprep.subr.bf16.mxu0 %v6354_v53 }
 0xe6d   :  { %5660 = vmatmul.mubr.msk.f32.vlgmr.msra.gmra.mrb[6].mxu0 %vm196_vm6, %v1207_v41 }
 0xe6e   :  { %5994 = vmatpush3.bf16.msra.mxu0 %v6354_v53 }
 0xe6f   :  { %5689 = vmatprep.subr.mxu0 %v6361_v54 }
 0xe72   :  { %5690 = vmatpush3.msra.mxu0 %v6361_v54 }
 0xf40   :  { %v5661_v45 = vpop.f32.mrb[6].mxu0 }
 0xf41   :  { %v1379_v47 = vadd.f32 %v5661_v45, %v1377_v43  ;;  %v1367_v48 = vpop.f32.mrb[7].mxu0 }
 0xf42   :  { %v1378_v49 = vadd.f32 %v1376_v44, %v1367_v48 }
 0xf43   :  { %v1387_v50 = vsel %vm381_vm8, %v1379_v47, 0.0 }
 0xf44   :  { %1388 = vadd.xlane.f32.xlu1 %v1387_v50  ;;  %v1384_v53 = vsel %vm377_vm7, %v1378_v49, 0.0  ;;  %v1505_v50 = vld [vmem:[%s7455_s1 + $0x116] sm:$0x7f] }
 0xf45   :  { %1385 = vadd.xlane.f32.xlu0 %v1384_v53 }
 0xfd1   :  { %v1389_v51 = vpop.xlane.xlu1 %1388 }
 0xfd2   :  { %v1391_v54 = vmul.f32 0.041666668, %v1389_v51  ;;  %v1386_v52 = vpop.xlane.xlu0 %1385 }
 0xfd3   :  { %v1390_v55 = vmul.f32 0.041666668, %v1386_v52 }
 0xfd4   :  { %v1393_v56 = vsub.f32 %v1379_v47, %v1391_v54  ;;  %v1503_v47 = vld [vmem:[%s7455_s1 + $0x107] sm:$0x7f] }
 0xfd5   :  { %v1392_v57 = vsub.f32 %v1378_v49, %v1390_v55 }
 0xfd6   :  { %v1395_v58 = vmul.f32 %v1393_v56, %v1393_v56 }
 0xfd7   :  { %v1394_v59 = vmul.f32 %v1392_v57, %v1392_v57 }
 0xfd8   :  { %v1399_v60 = vsel %vm381_vm8, %v1395_v58, 0.0 }
 0xfd9   :  { %1400 = vadd.xlane.f32.xlu1 %v1399_v60  ;;  %v1396_v61 = vsel %vm377_vm7, %v1394_v59, 0.0 }
 0xfda   :  { %1397 = vadd.xlane.f32.xlu0 %v1396_v61 }
0x1066   :  { %v1401_v63 = vpop.xlane.xlu1 %1400 }
0x1067   :  { %v1403_v1 = vmul.f32 0.041666668, %v1401_v63  ;;  %v1398_v2 = vpop.xlane.xlu0 %1397  ;;  %v1711_v63 = vld [vmem:[%s7455_s1 + $0x95] sm:$0x7f] }
0x1068   :  { %v1402_v3 = vmul.f32 0.041666668, %v1398_v2 }
0x1069   :  { %v1405_v4 = vadd.f32 1e-05, %v1403_v1  ;;  %v1710_v1 = vld [vmem:[%s7455_s1 + $0x8d] sm:$0xff] }
0x106a   :  { %v1404_v5 = vadd.f32 1e-05, %v1402_v3 }
0x106b   :  { %6152 = vrsqrt.f32 %v1405_v4 }
0x106c   :  { %6154 = vrsqrt.f32 %v1404_v5 }
0x1075   :  { %v6153_v7 = vpop.eup %6152 }
0x1076   :  { %v6155_v9 = vpop.eup %6154  ;;  %v1409_v10 = vmul.f32 %v6153_v7, %v1393_v56 }
0x1077   :  { %v1408_v11 = vmul.f32 %v6155_v9, %v1392_v57 }
0x1078   :  { %v1411_v14 = vmul.f32 %v1409_v10, %v1381_v8 }
0x1079   :  { %v1410_v15 = vmul.f32 %v1408_v11, %v6369_v62 }
0x107a   :  { %v1413_v16 = vadd.f32 %v1411_v14, %v1383_v12 }
0x107b   :  { %v1412_v18 = vadd.f32 %v1410_v15, %v6374_v0 }
0x107c   :  { %v1415_v21 = vmax.f32 %v1413_v16, 0.0 }
0x107d   :  { %v1414_v19 = vmax.f32 %v1412_v18, 0.0 }
0x107f   :  { %5668 = vmatprep.mubr.msk.f32.mxu1 %vm377_vm7, %v1414_v19 }
0x1080   :  { %5669 = vmatmul.mubr.msk.f32.vlgmr.msra.gmra.mrb[10].mxu1 %vm377_vm7, %v1415_v21 }
0x1081   :  { %5986 = vmatpush3.bf16.msra.mxu1 %v6309_v17 }
0x1082   :  { %5988 = vmatprep.subr.bf16.mxu1 %v6319_v20 }
0x1153   :  { %v5670_v23 = vpop.f32.mrb[10].mxu1 }
0x1154   :  { %v1499_v24 = vadd.f32 %v5670_v23, %v1420_v22  ;;  %v1493_v25 = vpop.f32.mrb[11].mxu1 }
0x1155   :  { %v1494_v26 = vadd.f32 %v1493_v25, %v6396_v13 }
0x1156   :  { %v1509_v27 = vsel %vm505_vm9, %v1499_v24, 0.0 }
0x1157   :  { %1510 = vadd.xlane.f32.xlu1 %v1509_v27  ;;  %v1506_v28 = vsel %vm196_vm6, %v1494_v26, 0.0 }
0x1158   :  { %1507 = vadd.xlane.f32.xlu0 %v1506_v28  ;;  %v1715_v28 = vld [vmem:[%s7455_s1 + $0xc2] sm:$0x7f] }
0x11e4   :  { %v1511_v29 = vpop.xlane.xlu1 %1510 }
0x11e5   :  { %v1513_v30 = vmul.f32 0.0625, %v1511_v29  ;;  %v1508_v17 = vpop.xlane.xlu0 %1507 }
0x11e6   :  { %v1512_v31 = vmul.f32 0.0625, %v1508_v17 }
0x11e7   :  { %v1515_v32 = vsub.f32 %v1499_v24, %v1513_v30 }
0x11e8   :  { %v1514_v33 = vsub.f32 %v1494_v26, %v1512_v31  ;;  %v1717_v31 = vld [vmem:[%s7455_s1 + $0xd1] sm:$0x7f] }
0x11e9   :  { %v1517_v34 = vmul.f32 %v1515_v32, %v1515_v32 }
0x11ea   :  { %v1516_v35 = vmul.f32 %v1514_v33, %v1514_v33 }
0x11eb   :  { %v1521_v36 = vsel %vm505_vm9, %v1517_v34, 0.0 }
0x11ec   :  { %1522 = vadd.xlane.f32.xlu1 %v1521_v36  ;;  %v1518_v37 = vsel %vm196_vm6, %v1516_v35, 0.0 }
0x11ed   :  { %1519 = vadd.xlane.f32.xlu0 %v1518_v37 }
0x1279   :  { %v1523_v38 = vpop.xlane.xlu1 %1522 }
0x127a   :  { %v1525_v39 = vmul.f32 0.0625, %v1523_v38  ;;  %v1520_v40 = vpop.xlane.xlu0 %1519  ;;  %v1754_v38 = vld [vmem:[%s7455_s1 + $0xf8] sm:$0x7f] }
0x127b   :  { %v1524_v41 = vmul.f32 0.0625, %v1520_v40 }
0x127c   :  { %v1527_v43 = vadd.f32 1e-05, %v1525_v39 }
0x127d   :  { %v1526_v44 = vadd.f32 1e-05, %v1524_v41 }
0x127e   :  { %6156 = vrsqrt.f32 %v1527_v43 }
0x127f   :  { %6158 = vrsqrt.f32 %v1526_v44 }
0x1288   :  { %v6157_v45 = vpop.eup %6156 }
0x1289   :  { %v6159_v48 = vpop.eup %6158  ;;  %v1531_v49 = vmul.f32 %v6157_v45, %v1515_v32 }
0x128a   :  { %v1530_v53 = vmul.f32 %v6159_v48, %v1514_v33 }
0x128b   :  { %v1533_v51 = vmul.f32 %v1531_v49, %v1503_v47 }
0x128c   :  { %v1532_v54 = vmul.f32 %v1530_v53, %v6409_v42 }
0x128d   :  { %v1535_v52 = vadd.f32 %v1533_v51, %v1505_v50 }
0x128e   :  { %v1534_v55 = vadd.f32 %v1532_v54, %v6417_v46 }
0x128f   :  { %v1537_v56 = vmax.f32 %v1535_v52, 0.0 }
0x1290   :  { %v1536_v57 = vmax.f32 %v1534_v55, 0.0  ;;  %v1881_v55 = vld [vmem:[%s7455_s1 + $0x49] sm:$0xff] }
0x1291   :  { %1539 = vst.msk [vmem:[#allocation2 + $0x8] sm:$0x7f] %vm505_vm9, %v1537_v56 }
0x1292   :  { %1538 = vst.msk [vmem:[#allocation2] sm:$0xff] %vm196_vm6, %v1536_v57  ;;  %v1878_v57 = vld [vmem:[%s7455_s1 + $0x31] sm:$0xff] }
0x1298   :  { %v1543_v59 = vld [vmem:[#allocation2 + $0x9] sm:$0x7f] }
0x1299   :  { %v1542_v58 = vld [vmem:[#allocation2 + $0x1] sm:$0xff] }
0x129a   :  { %5675 = vmatprep.mubr.msk.f32.mxu1 %vm196_vm6, %v1542_v58  ;;  %v1540_v60 = vld [vmem:[#allocation2] sm:$0xff]  ;;  %v1541_v61 = vld [vmem:[#allocation2 + $0x8] sm:$0x7f] }
0x129b   :  { %5676 = vmatmul.mubr.msk.f32.vlgmr.msra.gmra.mrb[12].mxu1 %vm196_vm6, %v1543_v59  ;;  %v1879_v58 = vld [vmem:[%s7455_s1 + $0x39] sm:$0xff] }
0x129c   :  { %5990 = vmatpush3.bf16.msra.mxu1 %v6319_v20  ;;  %5682 = vmatprep.mubr.msk.f32.mxu1 %vm196_vm6, %v1540_v60  ;;  %v6621_v59 = vpack.c.bf16 %v1879_v58, %v1878_v57 }
0x12a3   :  { %5683 = vmatmul.mubr.msk.f32.vlgmr.msra.gmra.mrb[12].mxu1 %vm196_vm6, %v1541_v61 }
0x1376   :  { %v5684_v2 = vpop.f32.mrb[12].mxu1 }
0x1377   :  { %v1713_v3 = vadd.f32 %v5684_v2, %v1711_v63  ;;  %v1701_v4 = vpop.f32.mrb[13].mxu1 }
0x1378   :  { %v1712_v5 = vadd.f32 %v1710_v1, %v1701_v4 }
0x1379   :  { %v1721_v7 = vsel %vm381_vm8, %v1713_v3, 0.0 }
0x137a   :  { %1722 = vadd.xlane.f32.xlu1 %v1721_v7  ;;  %v1718_v20 = vsel %vm377_vm7, %v1712_v5, 0.0 }
0x137b   :  { %1719 = vadd.xlane.f32.xlu0 %v1718_v20 }
0x1407   :  { %v1723_v8 = vpop.xlane.xlu1 %1722 }
0x1408   :  { %v1725_v9 = vmul.f32 0.041666668, %v1723_v8  ;;  %v1720_v10 = vpop.xlane.xlu0 %1719  ;;  %v1839_v8 = vld [vmem:[%s7455_s1 + $0x116] sm:$0x7f] }
0x1409   :  { %v1724_v11 = vmul.f32 0.041666668, %v1720_v10 }
0x140a   :  { %v1727_v12 = vsub.f32 %v1713_v3, %v1725_v9 }
0x140b   :  { %v1726_v14 = vsub.f32 %v1712_v5, %v1724_v11  ;;  %v1837_v5 = vld [vmem:[%s7455_s1 + $0x107] sm:$0x7f] }
0x140c   :  { %v1729_v15 = vmul.f32 %v1727_v12, %v1727_v12 }
0x140d   :  { %v1728_v16 = vmul.f32 %v1726_v14, %v1726_v14 }
0x140e   :  { %v1733_v18 = vsel %vm381_vm8, %v1729_v15, 0.0 }
0x140f   :  { %1734 = vadd.xlane.f32.xlu1 %v1733_v18  ;;  %v1730_v19 = vsel %vm377_vm7, %v1728_v16, 0.0 }
0x1410   :  { %1731 = vadd.xlane.f32.xlu0 %v1730_v19 }
0x149c   :  { %v1735_v21 = vpop.xlane.xlu1 %1734 }
0x149d   :  { %v1737_v22 = vmul.f32 0.041666668, %v1735_v21  ;;  %v1732_v23 = vpop.xlane.xlu0 %1731 }
0x149e   :  { %v1736_v24 = vmul.f32 0.041666668, %v1732_v23 }
0x149f   :  { %v1739_v25 = vadd.f32 1e-05, %v1737_v22  ;;  %v2044_v22 = vld [vmem:[%s7455_s1 + $0x9c] sm:$0xff] }
0x14a0   :  { %v1738_v26 = vadd.f32 1e-05, %v1736_v24 }
0x14a1   :  { %6160 = vrsqrt.f32 %v1739_v25 }
0x14a2   :  { %6162 = vrsqrt.f32 %v1738_v26 }
0x14ab   :  { %v6161_v27 = vpop.eup %6160 }
0x14ac   :  { %v6163_v29 = vpop.eup %6162  ;;  %v1743_v30 = vmul.f32 %v6161_v27, %v1727_v12 }
0x14ad   :  { %v1742_v17 = vmul.f32 %v6163_v29, %v1726_v14 }
0x14ae   :  { %v1745_v32 = vmul.f32 %v1743_v30, %v1715_v28 }
0x14af   :  { %v1744_v33 = vmul.f32 %v1742_v17, %v6369_v62 }
0x14b0   :  { %v1747_v34 = vadd.f32 %v1745_v32, %v1717_v31 }
0x14b1   :  { %v1746_v35 = vadd.f32 %v1744_v33, %v6374_v0 }
0x14b2   :  { %v1749_v37 = vmax.f32 %v1747_v34, 0.0 }
0x14b3   :  { %v1748_v36 = vmax.f32 %v1746_v35, 0.0 }
0x14b5   :  { %5691 = vmatprep.mubr.msk.f32.mxu0 %vm377_vm7, %v1748_v36 }
0x14b6   :  { %5692 = vmatmul.mubr.msk.f32.vlgmr.msra.gmra.mrb[8].mxu0 %vm377_vm7, %v1749_v37 }
0x1589   :  { %v5693_v39 = vpop.f32.mrb[8].mxu0 }
0x158a   :  { %v1833_v40 = vadd.f32 %v5693_v39, %v1754_v38  ;;  %v1827_v41 = vpop.f32.mrb[9].mxu0  ;;  %v2084_v38 = vld [vmem:[%s7455_s1 + $0xd8] sm:$0xff]  ;;  %v2085_v39 = vld [vmem:[%s7455_s1 + $0xe0] sm:$0xff] }
0x158b   :  { %v1828_v43 = vadd.f32 %v1827_v41, %v6396_v13  ;;  %v1880_v13 = vld [vmem:[%s7455_s1 + $0x41] sm:$0xff] }
0x158c   :  { %v1843_v62 = vsel %vm505_vm9, %v1833_v40, 0.0  ;;  %v6611_v56 = vpack.c.bf16 %v1881_v55, %v1880_v13  ;;  %v2086_v41 = vld [vmem:[%s7455_s1 + $0xe8] sm:$0xff] }
0x158d   :  { %1844 = vadd.xlane.f32.xlu1 %v1843_v62  ;;  %v1840_v0 = vsel %vm196_vm6, %v1828_v43, 0.0  ;;  %v6673_v13 = vld [vmem:[%s7455_s1 + $0xc9] sm:$0xff] }
0x158e   :  { %1841 = vadd.xlane.f32.xlu0 %v1840_v0  ;;  %5996 = vmatprep.subr.bf16.mxu0 %v6611_v56 }
0x158f   :  { %5998 = vmatpush3.bf16.msra.mxu0 %v6611_v56 }
0x1590   :  { %6000 = vmatprep.subr.bf16.mxu0 %v6621_v59 }
0x161a   :  { %v1845_v44 = vpop.xlane.xlu1 %1844 }
0x161b   :  { %v1847_v45 = vmul.f32 0.0625, %v1845_v44  ;;  %v1842_v47 = vpop.xlane.xlu0 %1841 }
0x161c   :  { %v1846_v48 = vmul.f32 0.0625, %v1842_v47 }
0x161d   :  { %v1849_v49 = vsub.f32 %v1833_v40, %v1847_v45  ;;  %v6003_v40 = vpack.c.bf16 %v2085_v39, %v2084_v38 }
0x161e   :  { %v1848_v50 = vsub.f32 %v1828_v43, %v1846_v48 }
0x161f   :  { %v1851_v53 = vmul.f32 %v1849_v49, %v1849_v49  ;;  %6004 = vmatprep.subr.bf16.mxu1 %v6003_v40 }
0x1620   :  { %v1850_v51 = vmul.f32 %v1848_v50, %v1848_v50  ;;  %6006 = vmatpush3.bf16.msra.mxu1 %v6003_v40 }
0x1621   :  { %v1855_v54 = vsel %vm505_vm9, %v1851_v53, 0.0  ;;  %5712 = vmatprep.subr.mxu1 %v2086_v41 }
0x1622   :  { %1856 = vadd.xlane.f32.xlu1 %v1855_v54  ;;  %v1852_v52 = vsel %vm196_vm6, %v1850_v51, 0.0  ;;  %v6665_v51 = vld [vmem:[%s7455_s1 + $0xba] sm:$0xff] }
0x1623   :  { %1853 = vadd.xlane.f32.xlu0 %v1852_v52  ;;  %v2051_v52 = vld [vmem:[%s7455_s1 + $0xd1] sm:$0x7f] }
0x1624   :  { %5713 = vmatpush3.msra.mxu1 %v2086_v41 }
0x1625   :  { %6008 = vmatprep.subr.bf16.mxu1 %v6611_v56 }
0x16af   :  { %v1857_v60 = vpop.xlane.xlu1 %1856 }
0x16b0   :  { %v1859_v61 = vmul.f32 0.0625, %v1857_v60  ;;  %v1854_v63 = vpop.xlane.xlu0 %1853 }
0x16b1   :  { %v1858_v1 = vmul.f32 0.0625, %v1854_v63 }
0x16b2   :  { %v1861_v2 = vadd.f32 1e-05, %v1859_v61 }
0x16b3   :  { %v1860_v3 = vadd.f32 1e-05, %v1858_v1  ;;  %v2088_v1 = vld [vmem:[%s7455_s1 + $0xf8] sm:$0x7f] }
0x16b4   :  { %6164 = vrsqrt.f32 %v1861_v2  ;;  %v6687_v2 = vld [vmem:[%s7455_s1 + $0xf0] sm:$0xff] }
0x16b5   :  { %6166 = vrsqrt.f32 %v1860_v3 }
0x16be   :  { %v6165_v4 = vpop.eup %6164 }
0x16bf   :  { %v6167_v7 = vpop.eup %6166  ;;  %v1865_v20 = vmul.f32 %v6165_v4, %v1849_v49  ;;  %v2049_v49 = vld [vmem:[%s7455_s1 + $0xc2] sm:$0x7f] }
0x16c0   :  { %v1864_v9 = vmul.f32 %v6167_v7, %v1848_v50 }
0x16c1   :  { %v1867_v10 = vmul.f32 %v1865_v20, %v1837_v5 }
0x16c2   :  { %v1866_v11 = vmul.f32 %v1864_v9, %v6409_v42 }
0x16c3   :  { %v1869_v12 = vadd.f32 %v1867_v10, %v1839_v8 }
0x16c4   :  { %v1868_v14 = vadd.f32 %v1866_v11, %v6417_v46  ;;  %v2045_v46 = vld [vmem:[%s7455_s1 + $0xa4] sm:$0x7f] }
0x16c5   :  { %v1871_v15 = vmax.f32 %v1869_v12, 0.0 }
0x16c6   :  { %v1870_v16 = vmax.f32 %v1868_v14, 0.0 }
0x16c7   :  { %1873 = vst.msk [vmem:[#allocation2 + $0x8] sm:$0x7f] %vm505_vm9, %v1871_v15 }
0x16c8   :  { %1872 = vst.msk [vmem:[#allocation2] sm:$0xff] %vm196_vm6, %v1870_v16 }
0x16ce   :  { %v1877_v19 = vld [vmem:[#allocation2 + $0x9] sm:$0x7f] }
0x16cf   :  { %v1876_v18 = vld [vmem:[#allocation2 + $0x1] sm:$0xff] }
0x16d0   :  { %5698 = vmatprep.mubr.msk.f32.mxu0 %vm196_vm6, %v1876_v18  ;;  %v1874_v21 = vld [vmem:[#allocation2] sm:$0xff]  ;;  %v1875_v42 = vld [vmem:[#allocation2 + $0x8] sm:$0x7f] }
0x16d1   :  { %5699 = vmatmul.mubr.msk.f32.vlgmr.msra.gmra.mrb[10].mxu0 %vm196_vm6, %v1877_v19 }
0x16d2   :  { %6002 = vmatpush3.bf16.msra.mxu0 %v6621_v59  ;;  %5705 = vmatprep.mubr.msk.f32.mxu0 %vm196_vm6, %v1874_v21 }
0x16d3   :  { %6016 = vmatprep.subr.bf16.mxu0 %v6003_v40 }
0x16d9   :  { %5706 = vmatmul.mubr.msk.f32.vlgmr.msra.gmra.mrb[10].mxu0 %vm196_vm6, %v1875_v42 }
0x16da   :  { %6018 = vmatpush3.bf16.msra.mxu0 %v6003_v40 }
0x16db   :  { %5735 = vmatprep.subr.mxu0 %v2086_v41 }
0x16de   :  { %5736 = vmatpush3.msra.mxu0 %v2086_v41 }
0x17ac   :  { %v5707_v23 = vpop.f32.mrb[10].mxu0 }
0x17ad   :  { %v2047_v24 = vadd.f32 %v5707_v23, %v2045_v46  ;;  %v2035_v25 = vpop.f32.mrb[11].mxu0 }
0x17ae   :  { %v2046_v26 = vadd.f32 %v2044_v22, %v2035_v25 }
0x17af   :  { %v2055_v27 = vsel %vm381_vm8, %v2047_v24, 0.0 }
0x17b0   :  { %2056 = vadd.xlane.f32.xlu1 %v2055_v27  ;;  %v2052_v28 = vsel %vm377_vm7, %v2046_v26, 0.0 }
0x17b1   :  { %2053 = vadd.xlane.f32.xlu0 %v2052_v28 }
0x183d   :  { %v2057_v29 = vpop.xlane.xlu1 %2056 }
0x183e   :  { %v2059_v30 = vmul.f32 0.041666668, %v2057_v29  ;;  %v2054_v17 = vpop.xlane.xlu0 %2053  ;;  %v6700_v29 = vld [vmem:[%s7455_s1 + $0xff] sm:$0xff] }
0x183f   :  { %v2058_v31 = vmul.f32 0.041666668, %v2054_v17 }
0x1840   :  { %v2061_v32 = vsub.f32 %v2047_v24, %v2059_v30  ;;  %v2173_v30 = vld [vmem:[%s7455_s1 + $0x116] sm:$0x7f] }
0x1841   :  { %v2060_v33 = vsub.f32 %v2046_v26, %v2058_v31  ;;  %v2171_v26 = vld [vmem:[%s7455_s1 + $0x107] sm:$0x7f] }
0x1842   :  { %v2063_v34 = vmul.f32 %v2061_v32, %v2061_v32 }
0x1843   :  { %v2062_v35 = vmul.f32 %v2060_v33, %v2060_v33 }
0x1844   :  { %v2067_v36 = vsel %vm381_vm8, %v2063_v34, 0.0 }
0x1845   :  { %2068 = vadd.xlane.f32.xlu1 %v2067_v36  ;;  %v2064_v37 = vsel %vm377_vm7, %v2062_v35, 0.0 }
0x1846   :  { %2065 = vadd.xlane.f32.xlu0 %v2064_v37 }
0x18d2   :  { %v2069_v43 = vpop.xlane.xlu1 %2068 }
0x18d3   :  { %v2071_v62 = vmul.f32 0.041666668, %v2069_v43  ;;  %v2066_v0 = vpop.xlane.xlu0 %2065  ;;  %v2379_v43 = vld [vmem:[%s7455_s1 + $0xb3] sm:$0x7f] }
0x18d4   :  { %v2070_v44 = vmul.f32 0.041666668, %v2066_v0 }
0x18d5   :  { %v2073_v45 = vadd.f32 1e-05, %v2071_v62  ;;  %v2378_v62 = vld [vmem:[%s7455_s1 + $0xab] sm:$0xff] }
0x18d6   :  { %v2072_v47 = vadd.f32 1e-05, %v2070_v44 }
0x18d7   :  { %6168 = vrsqrt.f32 %v2073_v45 }
0x18d8   :  { %6170 = vrsqrt.f32 %v2072_v47 }
0x18e1   :  { %v6169_v48 = vpop.eup %6168 }
0x18e2   :  { %v6171_v50 = vpop.eup %6170  ;;  %v2077_v53 = vmul.f32 %v6169_v48, %v2061_v32  ;;  %v6708_v32 = vld [vmem:[%s7455_s1 + $0x10e] sm:$0xff] }
0x18e3   :  { %v2076_v54 = vmul.f32 %v6171_v50, %v2060_v33 }
0x18e4   :  { %v2079_v55 = vmul.f32 %v2077_v53, %v2049_v49 }
0x18e5   :  { %v2078_v57 = vmul.f32 %v2076_v54, %v6665_v51 }
0x18e6   :  { %v2081_v58 = vadd.f32 %v2079_v55, %v2051_v52 }
0x18e7   :  { %v2080_v60 = vadd.f32 %v2078_v57, %v6673_v13 }
0x18e8   :  { %v2083_v63 = vmax.f32 %v2081_v58, 0.0 }
0x18e9   :  { %v2082_v61 = vmax.f32 %v2080_v60, 0.0 }
0x18eb   :  { %5714 = vmatprep.mubr.msk.f32.mxu1 %vm377_vm7, %v2082_v61 }
0x18ec   :  { %5715 = vmatmul.mubr.msk.f32.vlgmr.msra.gmra.mrb[14].mxu1 %vm377_vm7, %v2083_v63 }
0x18ed   :  { %6010 = vmatpush3.bf16.msra.mxu1 %v6611_v56 }
0x18ee   :  { %6012 = vmatprep.subr.bf16.mxu1 %v6621_v59 }
0x19bf   :  { %v5716_v3 = vpop.f32.mrb[14].mxu1 }
0x19c0   :  { %v2167_v4 = vadd.f32 %v5716_v3, %v2088_v1  ;;  %v2161_v5 = vpop.f32.mrb[15].mxu1 }
0x19c1   :  { %v2162_v7 = vadd.f32 %v2161_v5, %v6687_v2 }
0x19c2   :  { %v2177_v20 = vsel %vm505_vm9, %v2167_v4, 0.0 }
0x19c3   :  { %2178 = vadd.xlane.f32.xlu1 %v2177_v20  ;;  %v2174_v56 = vsel %vm196_vm6, %v2162_v7, 0.0 }
0x19c4   :  { %2175 = vadd.xlane.f32.xlu0 %v2174_v56  ;;  %v2383_v56 = vld [vmem:[%s7455_s1 + $0xc2] sm:$0x7f] }
0x1a50   :  { %v2179_v8 = vpop.xlane.xlu1 %2178 }
0x1a51   :  { %v2181_v9 = vmul.f32 0.0625, %v2179_v8  ;;  %v2176_v10 = vpop.xlane.xlu0 %2175 }
0x1a52   :  { %v2180_v11 = vmul.f32 0.0625, %v2176_v10 }
0x1a53   :  { %v2183_v12 = vsub.f32 %v2167_v4, %v2181_v9 }
0x1a54   :  { %v2182_v14 = vsub.f32 %v2162_v7, %v2180_v11  ;;  %v2385_v11 = vld [vmem:[%s7455_s1 + $0xd1] sm:$0x7f] }
0x1a55   :  { %v2185_v15 = vmul.f32 %v2183_v12, %v2183_v12 }
0x1a56   :  { %v2184_v16 = vmul.f32 %v2182_v14, %v2182_v14 }
0x1a57   :  { %v2189_v18 = vsel %vm505_vm9, %v2185_v15, 0.0 }
0x1a58   :  { %2190 = vadd.xlane.f32.xlu1 %v2189_v18  ;;  %v2186_v19 = vsel %vm196_vm6, %v2184_v16, 0.0 }
0x1a59   :  { %2187 = vadd.xlane.f32.xlu0 %v2186_v19 }
0x1ae5   :  { %v2191_v21 = vpop.xlane.xlu1 %2190 }
0x1ae6   :  { %v2193_v42 = vmul.f32 0.0625, %v2191_v21  ;;  %v2188_v46 = vpop.xlane.xlu0 %2187  ;;  %v2422_v21 = vld [vmem:[%s7455_s1 + $0xf8] sm:$0x7f] }
0x1ae7   :  { %v2192_v22 = vmul.f32 0.0625, %v2188_v46 }
0x1ae8   :  { %v2195_v23 = vadd.f32 1e-05, %v2193_v42 }
0x1ae9   :  { %v2194_v24 = vadd.f32 1e-05, %v2192_v22 }
0x1aea   :  { %6172 = vrsqrt.f32 %v2195_v23 }
0x1aeb   :  { %6174 = vrsqrt.f32 %v2194_v24 }
0x1af4   :  { %v6173_v25 = vpop.eup %6172 }
0x1af5   :  { %v6175_v27 = vpop.eup %6174  ;;  %v2199_v28 = vmul.f32 %v6173_v25, %v2183_v12 }
0x1af6   :  { %v2198_v17 = vmul.f32 %v6175_v27, %v2182_v14 }
0x1af7   :  { %v2201_v31 = vmul.f32 %v2199_v28, %v2171_v26 }
0x1af8   :  { %v2200_v33 = vmul.f32 %v2198_v17, %v6700_v29 }
0x1af9   :  { %v2203_v34 = vadd.f32 %v2201_v31, %v2173_v30 }
0x1afa   :  { %v2202_v35 = vadd.f32 %v2200_v33, %v6708_v32 }
0x1afb   :  { %v2205_v36 = vmax.f32 %v2203_v34, 0.0 }
0x1afc   :  { %v2204_v37 = vmax.f32 %v2202_v35, 0.0  ;;  %v2545_v35 = vld [vmem:[%s7455_s1 + $0x125] sm:$0xff] }
0x1afd   :  { %2207 = vst.msk [vmem:[#allocation2 + $0x8] sm:$0x7f] %vm505_vm9, %v2205_v36 }
0x1afe   :  { %2206 = vst.msk [vmem:[#allocation2] sm:$0xff] %vm196_vm6, %v2204_v37 }
0x1b04   :  { %v2211_v39 = vld [vmem:[#allocation2 + $0x9] sm:$0x7f] }
0x1b05   :  { %v2210_v38 = vld [vmem:[#allocation2 + $0x1] sm:$0xff] }
0x1b06   :  { %5721 = vmatprep.mubr.msk.f32.mxu1 %vm196_vm6, %v2210_v38  ;;  %v2208_v40 = vld [vmem:[#allocation2] sm:$0xff]  ;;  %v2209_v41 = vld [vmem:[#allocation2 + $0x8] sm:$0x7f] }
0x1b07   :  { %5722 = vmatmul.mubr.msk.f32.vlgmr.msra.gmra.mrb[16].mxu1 %vm196_vm6, %v2211_v39 }
0x1b08   :  { %6014 = vmatpush3.bf16.msra.mxu1 %v6621_v59  ;;  %5728 = vmatprep.mubr.msk.f32.mxu1 %vm196_vm6, %v2208_v40 }
0x1b0f   :  { %5729 = vmatmul.mubr.msk.f32.vlgmr.msra.gmra.mrb[16].mxu1 %vm196_vm6, %v2209_v41 }
0x1be2   :  { %v5730_v0 = vpop.f32.mrb[16].mxu1 }
0x1be3   :  { %v2381_v44 = vadd.f32 %v5730_v0, %v2379_v43  ;;  %v2369_v45 = vpop.f32.mrb[17].mxu1  ;;  %v2505_v0 = vld [vmem:[%s7455_s1 + $0x107] sm:$0x7f] }
0x1be4   :  { %v2380_v47 = vadd.f32 %v2378_v62, %v2369_v45 }
0x1be5   :  { %v2389_v48 = vsel %vm381_vm8, %v2381_v44, 0.0 }
0x1be6   :  { %2390 = vadd.xlane.f32.xlu1 %v2389_v48  ;;  %v2386_v59 = vsel %vm377_vm7, %v2380_v47, 0.0 }
0x1be7   :  { %2387 = vadd.xlane.f32.xlu0 %v2386_v59 }
0x1c73   :  { %v2391_v49 = vpop.xlane.xlu1 %2390 }
0x1c74   :  { %v2393_v50 = vmul.f32 0.041666668, %v2391_v49  ;;  %v2388_v53 = vpop.xlane.xlu0 %2387 }
0x1c75   :  { %v2392_v54 = vmul.f32 0.041666668, %v2388_v53 }
0x1c76   :  { %v2395_v52 = vsub.f32 %v2381_v44, %v2393_v50 }
0x1c77   :  { %v2394_v55 = vsub.f32 %v2380_v47, %v2392_v54  ;;  %v2507_v47 = vld [vmem:[%s7455_s1 + $0x116] sm:$0x7f] }
0x1c78   :  { %v2397_v57 = vmul.f32 %v2395_v52, %v2395_v52 }
0x1c79   :  { %v2396_v58 = vmul.f32 %v2394_v55, %v2394_v55 }
0x1c7a   :  { %v2401_v60 = vsel %vm381_vm8, %v2397_v57, 0.0 }
0x1c7b   :  { %2402 = vadd.xlane.f32.xlu1 %v2401_v60  ;;  %v2398_v61 = vsel %vm377_vm7, %v2396_v58, 0.0  ;;  %v2547_v58 = vld [vmem:[%s7455_s1 + $0x135] sm:$0xff] }
0x1c7c   :  { %2399 = vadd.xlane.f32.xlu0 %v2398_v61 }
0x1d08   :  { %v2403_v63 = vpop.xlane.xlu1 %2402 }
0x1d09   :  { %v2405_v1 = vmul.f32 0.041666668, %v2403_v63  ;;  %v2400_v3 = vpop.xlane.xlu0 %2399 }
0x1d0a   :  { %v2404_v4 = vmul.f32 0.041666668, %v2400_v3 }
0x1d0b   :  { %v2407_v5 = vadd.f32 1e-05, %v2405_v1 }
0x1d0c   :  { %v2406_v7 = vadd.f32 1e-05, %v2404_v4 }
0x1d0d   :  { %6176 = vrsqrt.f32 %v2407_v5 }
0x1d0e   :  { %6178 = vrsqrt.f32 %v2406_v7 }
0x1d17   :  { %v6177_v20 = vpop.eup %6176 }
0x1d18   :  { %v6179_v8 = vpop.eup %6178  ;;  %v2411_v9 = vmul.f32 %v6177_v20, %v2395_v52 }
0x1d19   :  { %v2410_v10 = vmul.f32 %v6179_v8, %v2394_v55 }
0x1d1a   :  { %v2413_v12 = vmul.f32 %v2411_v9, %v2383_v56 }
0x1d1b   :  { %v2412_v14 = vmul.f32 %v2410_v10, %v6665_v51 }
0x1d1c   :  { %v2415_v15 = vadd.f32 %v2413_v12, %v2385_v11 }
0x1d1d   :  { %v2414_v16 = vadd.f32 %v2412_v14, %v6673_v13  ;;  %v2665_v14 = vld [vmem:[%s7455_s1 + $0x1bd] sm:$0xff] }
0x1d1e   :  { %v2417_v19 = vmax.f32 %v2415_v15, 0.0  ;;  %v2666_v15 = vld [vmem:[%s7455_s1 + $0x1c5] sm:$0xff] }
0x1d1f   :  { %v2416_v18 = vmax.f32 %v2414_v16, 0.0  ;;  %v2751_v16 = vld [vmem:[%s7455_s1 + $0x1e5] sm:$0xff] }
0x1d21   :  { %5737 = vmatprep.mubr.msk.f32.mxu0 %vm377_vm7, %v2416_v18  ;;  %v6788_v18 = vpack.c.bf16 %v2666_v15, %v2665_v14 }
0x1d22   :  { %5738 = vmatmul.mubr.msk.f32.vlgmr.msra.gmra.mrb[12].mxu0 %vm377_vm7, %v2417_v19  ;;  %v2752_v19 = vld [vmem:[%s7455_s1 + $0x1ed] sm:$0xff] }
0x1d23   :  { %6024 = vmatprep.subr.bf16.mxu1 %v6788_v18 }
0x1d24   :  { %6026 = vmatpush3.bf16.msra.mxu1 %v6788_v18 }
0x1df5   :  { %v5739_v42 = vpop.f32.mrb[12].mxu0 }
0x1df6   :  { %v2501_v46 = vadd.f32 %v5739_v42, %v2422_v21  ;;  %v2495_v22 = vpop.f32.mrb[13].mxu0  ;;  %v6793_v21 = vpack.c.bf16 %v2752_v19, %v2751_v16  ;;  %v6798_v42 = vld [vmem:[%s7455_s1 + $0x1cd] sm:$0xff] }
0x1df7   :  { %v2496_v23 = vadd.f32 %v2495_v22, %v6687_v2  ;;  %v2544_v2 = vld [vmem:[%s7455_s1 + $0x11d] sm:$0xff]  ;;  %5751 = vmatprep.subr.mxu1 %v6798_v42 }
0x1df8   :  { %v2511_v51 = vsel %vm505_vm9, %v2501_v46, 0.0  ;;  %v6753_v36 = vpack.c.bf16 %v2545_v35, %v2544_v2  ;;  %5752 = vmatpush3.msra.mxu1 %v6798_v42 }
0x1df9   :  { %2512 = vadd.xlane.f32.xlu1 %v2511_v51  ;;  %v2508_v13 = vsel %vm196_vm6, %v2496_v23, 0.0 }
0x1dfa   :  { %2509 = vadd.xlane.f32.xlu0 %v2508_v13  ;;  %6020 = vmatprep.subr.bf16.mxu0 %v6753_v36 }
0x1dfb   :  { %6022 = vmatpush3.bf16.msra.mxu0 %v6753_v36  ;;  %6032 = vmatprep.subr.bf16.mxu1 %v6753_v36 }
0x1dfc   :  { %6028 = vmatprep.subr.bf16.mxu0 %v6793_v21 }
0x1e86   :  { %v2513_v24 = vpop.xlane.xlu1 %2512 }
0x1e87   :  { %v2515_v25 = vmul.f32 0.0625, %v2513_v24  ;;  %v2510_v26 = vpop.xlane.xlu0 %2509 }
0x1e88   :  { %v2514_v27 = vmul.f32 0.0625, %v2510_v26 }
0x1e89   :  { %v2517_v28 = vsub.f32 %v2501_v46, %v2515_v25  ;;  %v6804_v46 = vld [vmem:[%s7455_s1 + $0x1f5] sm:$0xff] }
0x1e8a   :  { %v2516_v30 = vsub.f32 %v2496_v23, %v2514_v27  ;;  %v6818_v27 = vld [vmem:[%s7455_s1 + $0x1a5] sm:$0xff] }
0x1e8b   :  { %v2519_v17 = vmul.f32 %v2517_v28, %v2517_v28 }
0x1e8c   :  { %v2518_v31 = vmul.f32 %v2516_v30, %v2516_v30 }
0x1e8d   :  { %v2523_v33 = vsel %vm505_vm9, %v2519_v17, 0.0  ;;  %v6823_v17 = vld [vmem:[%s7455_s1 + $0x19d] sm:$0xff] }
0x1e8e   :  { %2524 = vadd.xlane.f32.xlu1 %v2523_v33  ;;  %v2520_v34 = vsel %vm196_vm6, %v2518_v31, 0.0  ;;  %v6828_v33 = vld [vmem:[%s7455_s1 + $0x1b5] sm:$0xff] }
0x1e8f   :  { %2521 = vadd.xlane.f32.xlu0 %v2520_v34  ;;  %v6833_v34 = vld [vmem:[%s7455_s1 + $0x1ad] sm:$0xff] }
0x1f1b   :  { %v2525_v37 = vpop.xlane.xlu1 %2524 }
0x1f1c   :  { %v2527_v38 = vmul.f32 0.0625, %v2525_v37  ;;  %v2522_v39 = vpop.xlane.xlu0 %2521 }
0x1f1d   :  { %v2526_v40 = vmul.f32 0.0625, %v2522_v39 }
0x1f1e   :  { %v2529_v41 = vadd.f32 1e-05, %v2527_v38 }
0x1f1f   :  { %v2528_v43 = vadd.f32 1e-05, %v2526_v40 }
0x1f20   :  { %6180 = vrsqrt.f32 %v2529_v41  ;;  %v6852_v41 = vld [vmem:[%s7455_s1 + $0x1dd] sm:$0xff] }
0x1f21   :  { %6182 = vrsqrt.f32 %v2528_v43  ;;  %v6857_v43 = vld [vmem:[%s7455_s1 + $0x205] sm:$0xff] }
0x1f2a   :  { %v6181_v62 = vpop.eup %6180 }
0x1f2b   :  { %v6183_v44 = vpop.eup %6182  ;;  %v2533_v45 = vmul.f32 %v6181_v62, %v2517_v28  ;;  %v6862_v62 = vld [vmem:[%s7455_s1 + $0x1d5] sm:$0xff] }
0x1f2c   :  { %v2532_v48 = vmul.f32 %v6183_v44, %v2516_v30 }
0x1f2d   :  { %v2535_v59 = vmul.f32 %v2533_v45, %v2505_v0  ;;  %v6867_v45 = vld [vmem:[%s7455_s1 + $0x1fd] sm:$0xff] }
0x1f2e   :  { %v2534_v49 = vmul.f32 %v2532_v48, %v6700_v29  ;;  %v2546_v29 = vld [vmem:[%s7455_s1 + $0x12d] sm:$0xff] }
0x1f2f   :  { %v2537_v50 = vadd.f32 %v2535_v59, %v2507_v47 }
0x1f30   :  { %v2536_v53 = vadd.f32 %v2534_v49, %v6708_v32 }
0x1f31   :  { %v2539_v54 = vmax.f32 %v2537_v50, 0.0  ;;  %v2836_v50 = vld [vmem:[%s7455_s1 + $0x27e] sm:$0x7f] }
0x1f32   :  { %v2538_v52 = vmax.f32 %v2536_v53, 0.0  ;;  %v2832_v53 = vld [vmem:[%s7455_s1 + $0x215] sm:$0x7f] }
0x1f33   :  { %2541 = vst.msk [vmem:[#allocation2 + $0x8] sm:$0x7f] %vm505_vm9, %v2539_v54 }
0x1f34   :  { %2540 = vst.msk [vmem:[#allocation2] sm:$0xff] %vm196_vm6, %v2538_v52 }
0x1f3a   :  { %v2543_v57 = vld [vmem:[#allocation2 + $0x8] sm:$0xff] }
0x1f3b   :  { %v2542_v55 = vld [vmem:[#allocation2] sm:$0xff] }
0x1f3c   :  { %5744 = vmatprep.mubr.msk.f32.mxu0 %vm196_vm6, %v2542_v55 }
0x1f3d   :  { %5745 = vmatmul.mubr.msk.f32.vlgmr.msra.gmra.mrb[14].mxu0 %vm196_vm6, %v2543_v57 }
0x1f3e   :  { %6030 = vmatpush3.bf16.msra.mxu0 %v6793_v21 }
0x1f3f   :  { %5760 = vmatprep.subr.mxu0 %v6804_v46 }
0x1f42   :  { %5761 = vmatpush3.msra.mxu0 %v6804_v46 }
0x1f43   :  { %6036 = vmatprep.subr.bf16.mxu0 %v6788_v18 }
0x2010   :  { %v5746_v32 = vpop.f32.mrb[14].mxu0 }
0x2011   :  { %v2626_v60 = vadd.f32 %v5746_v32, %v2547_v58  ;;  %v2620_v61 = vpop.f32.mrb[15].mxu0  ;;  %v2831_v58 = vld [vmem:[%s7455_s1 + $0x20d] sm:$0xff]  ;;  %v2835_v32 = vld [vmem:[%s7455_s1 + $0x276] sm:$0xff] }
0x2012   :  { %v2621_v63 = vadd.f32 %v2620_v61, %v2546_v29 }
0x2013   :  { %v2636_v1 = vsel %vm377_vm7, %v2626_v60, 0.0 }
0x2014   :  { %2637 = vadd.xlane.f32.xlu1 %v2636_v1  ;;  %v2633_v3 = vsel %vm377_vm7, %v2621_v63, 0.0 }
0x2015   :  { %2634 = vadd.xlane.f32.xlu0 %v2633_v3 }
0x20a1   :  { %v2638_v4 = vpop.xlane.xlu1 %2637 }
0x20a2   :  { %v2640_v5 = vmul.f32 0.041666668, %v2638_v4  ;;  %v2635_v7 = vpop.xlane.xlu0 %2634 }
0x20a3   :  { %v2639_v20 = vmul.f32 0.041666668, %v2635_v7 }
0x20a4   :  { %v2642_v56 = vsub.f32 %v2626_v60, %v2640_v5 }
0x20a5   :  { %v2641_v8 = vsub.f32 %v2621_v63, %v2639_v20 }
0x20a6   :  { %v2644_v9 = vmul.f32 %v2642_v56, %v2642_v56 }
0x20a7   :  { %v2643_v10 = vmul.f32 %v2641_v8, %v2641_v8 }
0x20a8   :  { %v2648_v11 = vsel %vm377_vm7, %v2644_v9, 0.0 }
0x20a9   :  { %2649 = vadd.xlane.f32.xlu1 %v2648_v11  ;;  %v2645_v12 = vsel %vm377_vm7, %v2643_v10, 0.0 }
0x20aa   :  { %2646 = vadd.xlane.f32.xlu0 %v2645_v12 }
0x2136   :  { %v2650_v22 = vpop.xlane.xlu1 %2649 }
0x2137   :  { %v2652_v23 = vmul.f32 0.041666668, %v2650_v22  ;;  %v2647_v51 = vpop.xlane.xlu0 %2646 }
0x2138   :  { %v2651_v13 = vmul.f32 0.041666668, %v2647_v51 }
0x2139   :  { %v2654_v24 = vadd.f32 1e-05, %v2652_v23 }
0x213a   :  { %v2653_v25 = vadd.f32 1e-05, %v2651_v13 }
0x213b   :  { %6184 = vrsqrt.f32 %v2654_v24 }
0x213c   :  { %6186 = vrsqrt.f32 %v2653_v25 }
0x2145   :  { %v6185_v26 = vpop.eup %6184 }
0x2146   :  { %v6187_v28 = vpop.eup %6186  ;;  %v2658_v30 = vmul.f32 %v6185_v26, %v2642_v56 }
0x2147   :  { %v2657_v31 = vmul.f32 %v6187_v28, %v2641_v8 }
0x2148   :  { %v2660_v2 = vmul.f32 %v2658_v30, %v6818_v27 }
0x2149   :  { %v2659_v35 = vmul.f32 %v2657_v31, %v6823_v17 }
0x214a   :  { %v2662_v37 = vadd.f32 %v2660_v2, %v6828_v33 }
0x214b   :  { %v2661_v38 = vadd.f32 %v2659_v35, %v6833_v34 }
0x214c   :  { %v2664_v40 = vmax.f32 %v2662_v37, 0.0 }
0x214d   :  { %v2663_v39 = vmax.f32 %v2661_v38, 0.0 }
0x214f   :  { %5753 = vmatprep.mubr.msk.f32.mxu1 %vm377_vm7, %v2663_v39  ;;  %5762 = vmatprep.mubr.msk.f32.mxu0 %vm377_vm7, %v2663_v39 }
0x2150   :  { %5754 = vmatmul.mubr.msk.f32.vlgmr.msra.gmra.mrb[18].mxu1 %vm377_vm7, %v2664_v40  ;;  %5763 = vmatmul.mubr.msk.f32.vlgmr.msra.gmra.mrb[16].mxu0 %vm377_vm7, %v2664_v40  ;;  %v2887_v40 = vld [vmem:[%s7455_s1 + $0x2df] sm:$0x1] }
0x2151   :  { %6034 = vmatpush3.bf16.msra.mxu1 %v6753_v36  ;;  %6038 = vmatpush3.bf16.msra.mxu0 %v6788_v18 }
0x2152   :  { %6040 = vmatprep.subr.bf16.mxu1 %v6793_v21  ;;  %5776 = vmatprep.subr.mxu0 %v6798_v42 }
0x2155   :  { %5777 = vmatpush3.msra.mxu0 %v6798_v42 }
0x2156   :  { %6044 = vmatprep.subr.bf16.mxu0 %v6753_v36 }
0x2223   :  { %v5755_v0 = vpop.f32.mrb[18].mxu1  ;;  %v5764_v44 = vpop.f32.mrb[16].mxu0 }
0x2224   :  { %v2748_v47 = vadd.f32 %v5755_v0, %v6852_v41  ;;  %v2828_v48 = vadd.f32 %v5764_v44, %v6857_v43  ;;  %v2742_v59 = vpop.f32.mrb[19].mxu1  ;;  %v2822_v49 = vpop.f32.mrb[17].mxu0  ;;  %v2888_v44 = vld [vmem:[%s7455_s1 + $0x2ee] sm:$0x1] }
0x2225   :  { %v2743_v54 = vadd.f32 %v2742_v59, %v6862_v62  ;;  %v2823_v55 = vadd.f32 %v2822_v49, %v6867_v45 }
0x2226   :  { %v2841_v52 = vrot.slane %v2748_v47, 1  ;;  %v2834_v61 = vmul.f32 %v2832_v53, %v2828_v48 }
0x2227   :  { %v2840_v57 = vrot.slane %v2743_v54, 1  ;;  %v2890_v29 = vsel %vm2889_vm10, %v2743_v54, 0.0  ;;  %v2833_v1 = vmul.f32 %v2831_v58, %v2823_v55 }
0x2228   :  { %v2846_v60 = vmul.f32 %v2841_v52, %v2836_v50  ;;  %2891 = vadd.xlane.f32.xlu1 %v2890_v29  ;;  %v6901_v50 = vld [vmem:[%s7455_s1 + $0x2df] sm:$0xff] }
0x2229   :  { %v2842_v63 = vsel %vm2839_vm11, %v2840_v57, %v2841_v52  ;;  %v2850_v57 = vld [vmem:[%s7455_s1 + $0x2e7] sm:$0x7f] }
0x222a   :  { %v2845_v3 = vmul.f32 %v2842_v63, %v2835_v32  ;;  %v2848_v4 = vadd.f32 %v2846_v60, %v2834_v61  ;;  %v2852_v32 = vld [vmem:[%s7455_s1 + $0x2f6] sm:$0x7f] }
0x222c   :  { %v2847_v5 = vadd.f32 %v2845_v3, %v2833_v1  ;;  %v2856_v20 = vsel %vm505_vm9, %v2848_v4, 0.0 }
0x222e   :  { %v2853_v7 = vsel %vm196_vm6, %v2847_v5, 0.0 }
0x222f   :  { %2854 = vadd.xlane.f32.xlu0 %v2853_v7  ;;  %v2911_v7 = vld [vmem:[%s7455_s1 + $0x13d] sm:$0xff] }
0x2233   :  { %2857 = vadd.xlane.f32.xlu0 %v2856_v20 }
0x22b5   :  { %v2892_v56 = vpop.xlane.xlu1 %2891 }
0x22b6   :  { %v2893_v8 = vmul.f32 0.0625, %v2892_v56 }
0x22b8   :  { %v2894_v9 = vsub.f32 %v2743_v54, %v2893_v8  ;;  %v6907_v54 = vld [vmem:[%s7455_s1 + $0x2ee] sm:$0xff] }
0x22ba   :  { %v2895_v10 = vmul.f32 %v2894_v9, %v2894_v9 }
0x22bc   :  { %v2855_v11 = vpop.xlane.xlu0 %2854  ;;  %v2896_v12 = vsel %vm2889_vm10, %v2895_v10, 0.0 }
0x22bd   :  { %v2859_v14 = vmul.f32 0.0625, %v2855_v11  ;;  %2897 = vadd.xlane.f32.xlu0 %v2896_v12 }
0x22bf   :  { %v2861_v15 = vsub.f32 %v2847_v5, %v2859_v14  ;;  %v2912_v5 = vld [vmem:[%s7455_s1 + $0x145] sm:$0xff] }
0x22c0   :  { %v2858_v16 = vpop.xlane.xlu0 %2857 }
0x22c1   :  { %v2860_v19 = vmul.f32 0.0625, %v2858_v16  ;;  %v2863_v22 = vmul.f32 %v2861_v15, %v2861_v15 }
0x22c3   :  { %v2862_v23 = vsub.f32 %v2848_v4, %v2860_v19  ;;  %v2865_v51 = vsel %vm196_vm6, %v2863_v22, 0.0 }
0x22c4   :  { %2866 = vadd.xlane.f32.xlu1 %v2865_v51 }
0x22c5   :  { %v2864_v13 = vmul.f32 %v2862_v23, %v2862_v23 }
0x22c7   :  { %v2868_v24 = vsel %vm505_vm9, %v2864_v13, 0.0 }
0x22c8   :  { %2869 = vadd.xlane.f32.xlu1 %v2868_v24 }
0x234a   :  { %v2898_v25 = vpop.xlane.xlu0 %2897 }
0x234b   :  { %v2899_v26 = vmul.f32 0.0625, %v2898_v25 }
0x234d   :  { %v2900_v28 = vadd.f32 1e-05, %v2899_v26 }
0x234f   :  { %6188 = vrsqrt.f32 %v2900_v28 }
0x2351   :  { %v2867_v30 = vpop.xlane.xlu1 %2866 }
0x2352   :  { %v2871_v31 = vmul.f32 0.0625, %v2867_v30 }
0x2354   :  { %v2873_v2 = vadd.f32 1e-05, %v2871_v31 }
0x2355   :  { %v2870_v35 = vpop.xlane.xlu1 %2869 }
0x2356   :  { %6190 = vrsqrt.f32 %v2873_v2  ;;  %v2872_v37 = vmul.f32 0.0625, %v2870_v35 }
0x2358   :  { %v2874_v38 = vadd.f32 1e-05, %v2872_v37 }
0x2359   :  { %v6189_v39 = vpop.eup %6188 }
0x235a   :  { %v2902_v0 = vmul.f32 %v6189_v39, %v2894_v9  ;;  %6192 = vrsqrt.f32 %v2874_v38 }
0x235c   :  { %v2903_v47 = vmul.f32 %v2902_v0, %v2887_v40 }
0x235e   :  { %v2904_v48 = vadd.f32 %v2903_v47, %v2888_v44 }
0x2360   :  { %v6191_v59 = vpop.eup %6190  ;;  %v2905_v49 = vmax.f32 %v2904_v48, 0.0 }
0x2361   :  { %v2877_v53 = vmul.f32 %v6191_v59, %v2861_v15 }
0x2362   :  { %2906 = vst.msk [vmem:[#allocation2] sm:$0x1] %vm2889_vm10, %v2905_v49 }
0x2363   :  { %v2879_v52 = vmul.f32 %v2877_v53, %v6901_v50 }
0x2364   :  { %v6193_v55 = vpop.eup %6192 }
0x2365   :  { %v2881_v58 = vadd.f32 %v2879_v52, %v6907_v54  ;;  %v2878_v29 = vmul.f32 %v6193_v55, %v2862_v23 }
0x2367   :  { %v2883_v60 = vmax.f32 %v2881_v58, 0.0  ;;  %v2880_v61 = vmul.f32 %v2878_v29, %v2850_v57  ;;  %v3201_v29 = vld [vmem:[%s7455_s1 + $0x28d] sm:$0x7f] }
0x2369   :  { %2885 = vst.msk [vmem:[#allocation2 + $0x1] sm:$0xff] %vm196_vm6, %v2883_v60  ;;  %v2882_v63 = vadd.f32 %v2880_v61, %v2852_v32  ;;  %v3197_v32 = vld [vmem:[%s7455_s1 + $0x224] sm:$0x7f] }
0x236b   :  { %v2884_v1 = vmax.f32 %v2882_v63, 0.0 }
0x236d   :  { %2886 = vst.msk [vmem:[#allocation2 + $0x9] sm:$0x7f] %vm505_vm9, %v2884_v1 }
0x2370   :  { %v2907_v3 = vld [vmem:[#allocation2] sm:$0xff] }
0x2371   :  { %5769 = vmatprep.mubr.msk.f32.mxu1 %vm196_vm6, %v2907_v3  ;;  %v3196_v3 = vld [vmem:[%s7455_s1 + $0x21c] sm:$0xff] }
0x2374   :  { %v2908_v4 = vld [vmem:[#allocation2 + $0x8] sm:$0xff] }
0x2375   :  { %5770 = vmatmul.mubr.msk.f32.vlgmr.msra.gmra.mrb[20].mxu1 %vm196_vm6, %v2908_v4 }
0x2376   :  { %6042 = vmatpush3.bf16.msra.mxu1 %v6793_v21 }
0x2377   :  { %5785 = vmatprep.subr.mxu1 %v6804_v46 }
0x237a   :  { %5786 = vmatpush3.msra.mxu1 %v6804_v46 }
0x237b   :  { %6048 = vmatprep.subr.bf16.mxu1 %v6788_v18 }
0x2448   :  { %v5771_v20 = vpop.f32.mrb[20].mxu1 }
0x2449   :  { %v2991_v56 = vadd.f32 %v5771_v20, %v2912_v5  ;;  %v2985_v8 = vpop.f32.mrb[21].mxu1  ;;  %v3200_v5 = vld [vmem:[%s7455_s1 + $0x285] sm:$0xff] }
0x244a   :  { %v2986_v9 = vadd.f32 %v2985_v8, %v2911_v7 }
0x244b   :  { %v3001_v10 = vsel %vm377_vm7, %v2991_v56, 0.0 }
0x244c   :  { %3002 = vadd.xlane.f32.xlu1 %v3001_v10  ;;  %v2998_v11 = vsel %vm377_vm7, %v2986_v9, 0.0 }
0x244d   :  { %2999 = vadd.xlane.f32.xlu0 %v2998_v11 }
0x24d9   :  { %v3003_v12 = vpop.xlane.xlu1 %3002 }
0x24da   :  { %v3005_v14 = vmul.f32 0.041666668, %v3003_v12  ;;  %v3000_v15 = vpop.xlane.xlu0 %2999 }
0x24db   :  { %v3004_v16 = vmul.f32 0.041666668, %v3000_v15 }
0x24dc   :  { %v3007_v19 = vsub.f32 %v2991_v56, %v3005_v14 }
0x24dd   :  { %v3006_v22 = vsub.f32 %v2986_v9, %v3004_v16 }
0x24de   :  { %v3009_v23 = vmul.f32 %v3007_v19, %v3007_v19 }
0x24df   :  { %v3008_v51 = vmul.f32 %v3006_v22, %v3006_v22 }
0x24e0   :  { %v3013_v13 = vsel %vm377_vm7, %v3009_v23, 0.0 }
0x24e1   :  { %3014 = vadd.xlane.f32.xlu1 %v3013_v13  ;;  %v3010_v24 = vsel %vm377_vm7, %v3008_v51, 0.0 }
0x24e2   :  { %3011 = vadd.xlane.f32.xlu0 %v3010_v24 }
0x256e   :  { %v3015_v25 = vpop.xlane.xlu1 %3014 }
0x256f   :  { %v3017_v26 = vmul.f32 0.041666668, %v3015_v25  ;;  %v3012_v28 = vpop.xlane.xlu0 %3011 }
0x2570   :  { %v3016_v30 = vmul.f32 0.041666668, %v3012_v28 }
0x2571   :  { %v3019_v31 = vadd.f32 1e-05, %v3017_v26 }
0x2572   :  { %v3018_v2 = vadd.f32 1e-05, %v3016_v30 }
0x2573   :  { %6194 = vrsqrt.f32 %v3019_v31 }
0x2574   :  { %6196 = vrsqrt.f32 %v3018_v2 }
0x257d   :  { %v6195_v35 = vpop.eup %6194 }
0x257e   :  { %v6197_v37 = vpop.eup %6196  ;;  %v3023_v38 = vmul.f32 %v6195_v35, %v3007_v19 }
0x257f   :  { %v3022_v39 = vmul.f32 %v6197_v37, %v3006_v22 }
0x2580   :  { %v3025_v40 = vmul.f32 %v3023_v38, %v6818_v27 }
0x2581   :  { %v3024_v0 = vmul.f32 %v3022_v39, %v6823_v17 }
0x2582   :  { %v3027_v44 = vadd.f32 %v3025_v40, %v6828_v33 }
0x2583   :  { %v3026_v47 = vadd.f32 %v3024_v0, %v6833_v34 }
0x2584   :  { %v3029_v59 = vmax.f32 %v3027_v44, 0.0 }
0x2585   :  { %v3028_v48 = vmax.f32 %v3026_v47, 0.0 }
0x2587   :  { %5778 = vmatprep.mubr.msk.f32.mxu0 %vm377_vm7, %v3028_v48  ;;  %5787 = vmatprep.mubr.msk.f32.mxu1 %vm377_vm7, %v3028_v48 }
0x2588   :  { %5779 = vmatmul.mubr.msk.f32.vlgmr.msra.gmra.mrb[18].mxu0 %vm377_vm7, %v3029_v59  ;;  %5788 = vmatmul.mubr.msk.f32.vlgmr.msra.gmra.mrb[22].mxu1 %vm377_vm7, %v3029_v59 }
0x2589   :  { %6046 = vmatpush3.bf16.msra.mxu0 %v6753_v36  ;;  %6050 = vmatpush3.bf16.msra.mxu1 %v6788_v18 }
0x258a   :  { %6052 = vmatprep.subr.bf16.mxu0 %v6793_v21  ;;  %5801 = vmatprep.subr.mxu1 %v6798_v42 }
0x258d   :  { %5802 = vmatpush3.msra.mxu1 %v6798_v42 }
0x258e   :  { %6056 = vmatprep.subr.bf16.mxu1 %v6753_v36 }
0x265b   :  { %v5780_v49 = vpop.f32.mrb[18].mxu0  ;;  %v5789_v53 = vpop.f32.mrb[22].mxu1 }
0x265c   :  { %v3113_v52 = vadd.f32 %v5780_v49, %v6852_v41  ;;  %v3193_v55 = vadd.f32 %v5789_v53, %v6857_v43  ;;  %v3107_v57 = vpop.f32.mrb[19].mxu0  ;;  %v3187_v58 = vpop.f32.mrb[23].mxu1  ;;  %v3251_v53 = vld [vmem:[%s7455_s1 + $0x2df] sm:$0x1] }
0x265d   :  { %v3108_v60 = vadd.f32 %v3107_v57, %v6862_v62  ;;  %v3188_v63 = vadd.f32 %v3187_v58, %v6867_v45 }
0x265e   :  { %v3205_v61 = vrot.slane %v3113_v52, 1  ;;  %v3199_v20 = vmul.f32 %v3197_v32, %v3193_v55  ;;  %v3252_v55 = vld [vmem:[%s7455_s1 + $0x2ee] sm:$0x1] }
0x265f   :  { %v3204_v1 = vrot.slane %v3108_v60, 1  ;;  %v3253_v4 = vsel %vm2889_vm10, %v3108_v60, 0.0  ;;  %v3198_v8 = vmul.f32 %v3196_v3, %v3188_v63 }
0x2660   :  { %v3210_v7 = vmul.f32 %v3205_v61, %v3201_v29  ;;  %3254 = vadd.xlane.f32.xlu1 %v3253_v4 }
0x2661   :  { %v3206_v56 = vsel %vm2839_vm11, %v3204_v1, %v3205_v61  ;;  %v3214_v1 = vld [vmem:[%s7455_s1 + $0x2e7] sm:$0x7f] }
0x2662   :  { %v3209_v9 = vmul.f32 %v3206_v56, %v3200_v5  ;;  %v3212_v10 = vadd.f32 %v3210_v7, %v3199_v20  ;;  %v3216_v5 = vld [vmem:[%s7455_s1 + $0x2f6] sm:$0x7f] }
0x2664   :  { %v3211_v11 = vadd.f32 %v3209_v9, %v3198_v8  ;;  %v3220_v14 = vsel %vm505_vm9, %v3212_v10, 0.0 }
0x2666   :  { %v3217_v12 = vsel %vm196_vm6, %v3211_v11, 0.0 }
0x2667   :  { %3218 = vadd.xlane.f32.xlu0 %v3217_v12  ;;  %v3274_v12 = vld [vmem:[%s7455_s1 + $0x14d] sm:$0xff] }
0x266b   :  { %3221 = vadd.xlane.f32.xlu0 %v3220_v14 }
0x26ed   :  { %v3255_v15 = vpop.xlane.xlu1 %3254 }
0x26ee   :  { %v3256_v16 = vmul.f32 0.0625, %v3255_v15 }
0x26f0   :  { %v3257_v19 = vsub.f32 %v3108_v60, %v3256_v16 }
0x26f2   :  { %v3258_v22 = vmul.f32 %v3257_v19, %v3257_v19 }
0x26f4   :  { %v3219_v23 = vpop.xlane.xlu0 %3218  ;;  %v3259_v51 = vsel %vm2889_vm10, %v3258_v22, 0.0 }
0x26f5   :  { %v3223_v13 = vmul.f32 0.0625, %v3219_v23  ;;  %3260 = vadd.xlane.f32.xlu0 %v3259_v51 }
0x26f7   :  { %v3225_v24 = vsub.f32 %v3211_v11, %v3223_v13  ;;  %v3275_v11 = vld [vmem:[%s7455_s1 + $0x155] sm:$0xff] }
0x26f8   :  { %v3222_v25 = vpop.xlane.xlu0 %3221 }
0x26f9   :  { %v3224_v26 = vmul.f32 0.0625, %v3222_v25  ;;  %v3227_v28 = vmul.f32 %v3225_v24, %v3225_v24 }
0x26fb   :  { %v3226_v30 = vsub.f32 %v3212_v10, %v3224_v26  ;;  %v3229_v31 = vsel %vm196_vm6, %v3227_v28, 0.0 }
0x26fc   :  { %3230 = vadd.xlane.f32.xlu1 %v3229_v31 }
0x26fd   :  { %v3228_v2 = vmul.f32 %v3226_v30, %v3226_v30 }
0x26ff   :  { %v3232_v35 = vsel %vm505_vm9, %v3228_v2, 0.0 }
0x2700   :  { %3233 = vadd.xlane.f32.xlu1 %v3232_v35 }
0x2782   :  { %v3261_v37 = vpop.xlane.xlu0 %3260 }
0x2783   :  { %v3262_v38 = vmul.f32 0.0625, %v3261_v37 }
0x2785   :  { %v3263_v39 = vadd.f32 1e-05, %v3262_v38 }
0x2787   :  { %6198 = vrsqrt.f32 %v3263_v39 }
0x2789   :  { %v3231_v40 = vpop.xlane.xlu1 %3230 }
0x278a   :  { %v3235_v0 = vmul.f32 0.0625, %v3231_v40 }
0x278c   :  { %v3237_v44 = vadd.f32 1e-05, %v3235_v0 }
0x278d   :  { %v3234_v47 = vpop.xlane.xlu1 %3233 }
0x278e   :  { %6200 = vrsqrt.f32 %v3237_v44  ;;  %v3236_v48 = vmul.f32 0.0625, %v3234_v47 }
0x2790   :  { %v3238_v59 = vadd.f32 1e-05, %v3236_v48 }
0x2791   :  { %v6199_v49 = vpop.eup %6198 }
0x2792   :  { %v3265_v52 = vmul.f32 %v6199_v49, %v3257_v19  ;;  %6202 = vrsqrt.f32 %v3238_v59 }
0x2794   :  { %v3266_v57 = vmul.f32 %v3265_v52, %v3251_v53 }
0x2796   :  { %v3267_v58 = vadd.f32 %v3266_v57, %v3252_v55 }
0x2798   :  { %v6201_v29 = vpop.eup %6200  ;;  %v3268_v32 = vmax.f32 %v3267_v58, 0.0 }
0x2799   :  { %v3241_v60 = vmul.f32 %v6201_v29, %v3225_v24 }
0x279a   :  { %3269 = vst.msk [vmem:[#allocation2] sm:$0x1] %vm2889_vm10, %v3268_v32 }
0x279b   :  { %v3243_v61 = vmul.f32 %v3241_v60, %v6901_v50 }
0x279c   :  { %v6203_v63 = vpop.eup %6202 }
0x279d   :  { %v3245_v3 = vadd.f32 %v3243_v61, %v6907_v54  ;;  %v3242_v4 = vmul.f32 %v6203_v63, %v3226_v30 }
0x279f   :  { %v3247_v7 = vmax.f32 %v3245_v3, 0.0  ;;  %v3244_v20 = vmul.f32 %v3242_v4, %v3214_v1 }
0x27a1   :  { %3249 = vst.msk [vmem:[#allocation2 + $0x1] sm:$0xff] %vm196_vm6, %v3247_v7  ;;  %v3246_v56 = vadd.f32 %v3244_v20, %v3216_v5  ;;  %v3559_v20 = vld [vmem:[%s7455_s1 + $0x22b] sm:$0xff] }
0x27a3   :  { %v3248_v8 = vmax.f32 %v3246_v56, 0.0 }
0x27a5   :  { %3250 = vst.msk [vmem:[#allocation2 + $0x9] sm:$0x7f] %vm505_vm9, %v3248_v8  ;;  %v3563_v8 = vld [vmem:[%s7455_s1 + $0x294] sm:$0xff] }
0x27a8   :  { %v3270_v9 = vld [vmem:[#allocation2] sm:$0xff] }
0x27a9   :  { %5794 = vmatprep.mubr.msk.f32.mxu0 %vm196_vm6, %v3270_v9 }
0x27ac   :  { %v3271_v10 = vld [vmem:[#allocation2 + $0x8] sm:$0xff] }
0x27ad   :  { %5795 = vmatmul.mubr.msk.f32.vlgmr.msra.gmra.mrb[20].mxu0 %vm196_vm6, %v3271_v10 }
0x27ae   :  { %6054 = vmatpush3.bf16.msra.mxu0 %v6793_v21 }
0x27af   :  { %5810 = vmatprep.subr.mxu0 %v6804_v46 }
0x27b2   :  { %5811 = vmatpush3.msra.mxu0 %v6804_v46 }
0x27b3   :  { %6060 = vmatprep.subr.bf16.mxu0 %v6788_v18 }
0x2880   :  { %v5796_v14 = vpop.f32.mrb[20].mxu0 }
0x2881   :  { %v3354_v15 = vadd.f32 %v5796_v14, %v3275_v11  ;;  %v3348_v16 = vpop.f32.mrb[21].mxu0 }
0x2882   :  { %v3349_v19 = vadd.f32 %v3348_v16, %v3274_v12 }
0x2883   :  { %v3364_v22 = vsel %vm377_vm7, %v3354_v15, 0.0 }
0x2884   :  { %3365 = vadd.xlane.f32.xlu1 %v3364_v22  ;;  %v3361_v23 = vsel %vm377_vm7, %v3349_v19, 0.0 }
0x2885   :  { %3362 = vadd.xlane.f32.xlu0 %v3361_v23 }
0x2911   :  { %v3366_v51 = vpop.xlane.xlu1 %3365 }
0x2912   :  { %v3368_v13 = vmul.f32 0.041666668, %v3366_v51  ;;  %v3363_v24 = vpop.xlane.xlu0 %3362 }
0x2913   :  { %v3367_v25 = vmul.f32 0.041666668, %v3363_v24 }
0x2914   :  { %v3370_v26 = vsub.f32 %v3354_v15, %v3368_v13 }
0x2915   :  { %v3369_v28 = vsub.f32 %v3349_v19, %v3367_v25 }
0x2916   :  { %v3372_v30 = vmul.f32 %v3370_v26, %v3370_v26 }
0x2917   :  { %v3371_v31 = vmul.f32 %v3369_v28, %v3369_v28 }
0x2918   :  { %v3376_v2 = vsel %vm377_vm7, %v3372_v30, 0.0 }
0x2919   :  { %3377 = vadd.xlane.f32.xlu1 %v3376_v2  ;;  %v3373_v35 = vsel %vm377_vm7, %v3371_v31, 0.0 }
0x291a   :  { %3374 = vadd.xlane.f32.xlu0 %v3373_v35 }
0x29a6   :  { %v3378_v37 = vpop.xlane.xlu1 %3377 }
0x29a7   :  { %v3380_v38 = vmul.f32 0.041666668, %v3378_v37  ;;  %v3375_v39 = vpop.xlane.xlu0 %3374 }
0x29a8   :  { %v3379_v40 = vmul.f32 0.041666668, %v3375_v39 }
0x29a9   :  { %v3382_v0 = vadd.f32 1e-05, %v3380_v38 }
0x29aa   :  { %v3381_v44 = vadd.f32 1e-05, %v3379_v40 }
0x29ab   :  { %6204 = vrsqrt.f32 %v3382_v0 }
0x29ac   :  { %6206 = vrsqrt.f32 %v3381_v44 }
0x29b5   :  { %v6205_v47 = vpop.eup %6204 }
0x29b6   :  { %v6207_v48 = vpop.eup %6206  ;;  %v3386_v59 = vmul.f32 %v6205_v47, %v3370_v26 }
0x29b7   :  { %v3385_v49 = vmul.f32 %v6207_v48, %v3369_v28 }
0x29b8   :  { %v3388_v53 = vmul.f32 %v3386_v59, %v6818_v27 }
0x29b9   :  { %v3387_v52 = vmul.f32 %v3385_v49, %v6823_v17 }
0x29ba   :  { %v3390_v55 = vadd.f32 %v3388_v53, %v6828_v33 }
0x29bb   :  { %v3389_v57 = vadd.f32 %v3387_v52, %v6833_v34 }
0x29bc   :  { %v3392_v29 = vmax.f32 %v3390_v55, 0.0 }
0x29bd   :  { %v3391_v58 = vmax.f32 %v3389_v57, 0.0 }
0x29bf   :  { %5803 = vmatprep.mubr.msk.f32.mxu1 %vm377_vm7, %v3391_v58  ;;  %5812 = vmatprep.mubr.msk.f32.mxu0 %vm377_vm7, %v3391_v58  ;;  %v3614_v58 = vld [vmem:[%s7455_s1 + $0x2df] sm:$0x1] }
0x29c0   :  { %5804 = vmatmul.mubr.msk.f32.vlgmr.msra.gmra.mrb[24].mxu1 %vm377_vm7, %v3392_v29  ;;  %5813 = vmatmul.mubr.msk.f32.vlgmr.msra.gmra.mrb[22].mxu0 %vm377_vm7, %v3392_v29 }
0x29c1   :  { %6058 = vmatpush3.bf16.msra.mxu1 %v6753_v36  ;;  %6062 = vmatpush3.bf16.msra.mxu0 %v6788_v18  ;;  %v3564_v36 = vld [vmem:[%s7455_s1 + $0x29c] sm:$0x7f]  ;;  %v3560_v18 = vld [vmem:[%s7455_s1 + $0x233] sm:$0x7f] }
0x29c2   :  { %6064 = vmatprep.subr.bf16.mxu1 %v6793_v21  ;;  %5826 = vmatprep.subr.mxu0 %v6798_v42 }
0x29c5   :  { %5827 = vmatpush3.msra.mxu0 %v6798_v42 }
0x2a93   :  { %v5805_v32 = vpop.f32.mrb[24].mxu1  ;;  %v5814_v60 = vpop.f32.mrb[22].mxu0 }
0x2a94   :  { %v3476_v61 = vadd.f32 %v5805_v32, %v6852_v41  ;;  %v3556_v63 = vadd.f32 %v5814_v60, %v6857_v43  ;;  %v3470_v1 = vpop.f32.mrb[25].mxu1  ;;  %v3550_v3 = vpop.f32.mrb[23].mxu0  ;;  %v3615_v32 = vld [vmem:[%s7455_s1 + $0x2ee] sm:$0x1] }
0x2a95   :  { %v3471_v4 = vadd.f32 %v3470_v1, %v6862_v62  ;;  %v3551_v42 = vadd.f32 %v3550_v3, %v6867_v45 }
0x2a96   :  { %v3568_v5 = vrot.slane %v3476_v61, 1  ;;  %v3562_v10 = vmul.f32 %v3560_v18, %v3556_v63 }
0x2a97   :  { %v3567_v7 = vrot.slane %v3471_v4, 1  ;;  %v3616_v56 = vsel %vm2889_vm10, %v3471_v4, 0.0  ;;  %v3561_v12 = vmul.f32 %v3559_v20, %v3551_v42 }
0x2a98   :  { %v3573_v9 = vmul.f32 %v3568_v5, %v3564_v36  ;;  %3617 = vadd.xlane.f32.xlu1 %v3616_v56 }
0x2a99   :  { %v3569_v11 = vsel %vm2839_vm11, %v3567_v7, %v3568_v5  ;;  %v3579_v7 = vld [vmem:[%s7455_s1 + $0x2f6] sm:$0x7f] }
0x2a9a   :  { %v3572_v14 = vmul.f32 %v3569_v11, %v3563_v8  ;;  %v3575_v15 = vadd.f32 %v3573_v9, %v3562_v10 }
0x2a9c   :  { %v3574_v16 = vadd.f32 %v3572_v14, %v3561_v12  ;;  %v3583_v22 = vsel %vm505_vm9, %v3575_v15, 0.0  ;;  %v3638_v12 = vld [vmem:[%s7455_s1 + $0x165] sm:$0xff]  ;;  %v3637_v14 = vld [vmem:[%s7455_s1 + $0x15d] sm:$0xff] }
0x2a9e   :  { %v3580_v19 = vsel %vm196_vm6, %v3574_v16, 0.0 }
0x2a9f   :  { %3581 = vadd.xlane.f32.xlu0 %v3580_v19 }
0x2aa3   :  { %3584 = vadd.xlane.f32.xlu0 %v3583_v22 }
0x2b25   :  { %v3618_v23 = vpop.xlane.xlu1 %3617 }
0x2b26   :  { %v3619_v51 = vmul.f32 0.0625, %v3618_v23 }
0x2b28   :  { %v3620_v13 = vsub.f32 %v3471_v4, %v3619_v51  ;;  %v3577_v4 = vld [vmem:[%s7455_s1 + $0x2e7] sm:$0x7f] }
0x2b2a   :  { %v3621_v24 = vmul.f32 %v3620_v13, %v3620_v13 }
0x2b2c   :  { %v3582_v25 = vpop.xlane.xlu0 %3581  ;;  %v3622_v26 = vsel %vm2889_vm10, %v3621_v24, 0.0 }
0x2b2d   :  { %v3586_v28 = vmul.f32 0.0625, %v3582_v25  ;;  %3623 = vadd.xlane.f32.xlu0 %v3622_v26 }
0x2b2f   :  { %v3588_v30 = vsub.f32 %v3574_v16, %v3586_v28 }
0x2b30   :  { %v3585_v31 = vpop.xlane.xlu0 %3584 }
0x2b31   :  { %v3587_v2 = vmul.f32 0.0625, %v3585_v31  ;;  %v3590_v35 = vmul.f32 %v3588_v30, %v3588_v30 }
0x2b33   :  { %v3589_v37 = vsub.f32 %v3575_v15, %v3587_v2  ;;  %v3592_v38 = vsel %vm196_vm6, %v3590_v35, 0.0 }
0x2b34   :  { %3593 = vadd.xlane.f32.xlu1 %v3592_v38 }
0x2b35   :  { %v3591_v39 = vmul.f32 %v3589_v37, %v3589_v37 }
0x2b37   :  { %v3595_v40 = vsel %vm505_vm9, %v3591_v39, 0.0 }
0x2b38   :  { %3596 = vadd.xlane.f32.xlu1 %v3595_v40 }
0x2bba   :  { %v3624_v0 = vpop.xlane.xlu0 %3623 }
0x2bbb   :  { %v3625_v44 = vmul.f32 0.0625, %v3624_v0 }
0x2bbd   :  { %v3626_v47 = vadd.f32 1e-05, %v3625_v44 }
0x2bbf   :  { %6208 = vrsqrt.f32 %v3626_v47 }
0x2bc1   :  { %v3594_v48 = vpop.xlane.xlu1 %3593 }
0x2bc2   :  { %v3598_v59 = vmul.f32 0.0625, %v3594_v48 }
0x2bc4   :  { %v3600_v49 = vadd.f32 1e-05, %v3598_v59 }
0x2bc5   :  { %v3597_v53 = vpop.xlane.xlu1 %3596 }
0x2bc6   :  { %6210 = vrsqrt.f32 %v3600_v49  ;;  %v3599_v52 = vmul.f32 0.0625, %v3597_v53 }
0x2bc8   :  { %v3601_v55 = vadd.f32 1e-05, %v3599_v52 }
0x2bc9   :  { %v6209_v57 = vpop.eup %6208 }
0x2bca   :  { %v3628_v29 = vmul.f32 %v6209_v57, %v3620_v13  ;;  %6212 = vrsqrt.f32 %v3601_v55 }
0x2bcc   :  { %v3629_v60 = vmul.f32 %v3628_v29, %v3614_v58 }
0x2bce   :  { %v3630_v61 = vadd.f32 %v3629_v60, %v3615_v32 }
0x2bd0   :  { %v6211_v63 = vpop.eup %6210  ;;  %v3631_v1 = vmax.f32 %v3630_v61, 0.0  ;;  %v3923_v61 = vld [vmem:[%s7455_s1 + $0x242] sm:$0x7f] }
0x2bd1   :  { %v3604_v3 = vmul.f32 %v6211_v63, %v3588_v30 }
0x2bd2   :  { %3632 = vst.msk [vmem:[#allocation2] sm:$0x1] %vm2889_vm10, %v3631_v1 }
0x2bd3   :  { %v3606_v36 = vmul.f32 %v3604_v3, %v6901_v50 }
0x2bd4   :  { %v6213_v18 = vpop.eup %6212 }
0x2bd5   :  { %v3608_v5 = vadd.f32 %v3606_v36, %v6907_v54  ;;  %v3605_v42 = vmul.f32 %v6213_v18, %v3589_v37  ;;  %v3926_v18 = vld [vmem:[%s7455_s1 + $0x2a3] sm:$0xff] }
0x2bd7   :  { %v3610_v20 = vmax.f32 %v3608_v5, 0.0  ;;  %v3607_v56 = vmul.f32 %v3605_v42, %v3577_v4 }
0x2bd9   :  { %3612 = vst.msk [vmem:[#allocation2 + $0x1] sm:$0xff] %vm196_vm6, %v3610_v20  ;;  %v3609_v8 = vadd.f32 %v3607_v56, %v3579_v7 }
0x2bdb   :  { %v3611_v9 = vmax.f32 %v3609_v8, 0.0 }
0x2bdd   :  { %3613 = vst.msk [vmem:[#allocation2 + $0x9] sm:$0x7f] %vm505_vm9, %v3611_v9 }
0x2be0   :  { %v3633_v10 = vld [vmem:[#allocation2] sm:$0xff] }
0x2be1   :  { %5819 = vmatprep.mubr.msk.f32.mxu1 %vm196_vm6, %v3633_v10 }
0x2be4   :  { %v3634_v11 = vld [vmem:[#allocation2 + $0x8] sm:$0xff] }
0x2be5   :  { %5820 = vmatmul.mubr.msk.f32.vlgmr.msra.gmra.mrb[26].mxu1 %vm196_vm6, %v3634_v11 }
0x2be6   :  { %6066 = vmatpush3.bf16.msra.mxu1 %v6793_v21 }
0x2be7   :  { %5835 = vmatprep.subr.mxu1 %v6804_v46 }
0x2bea   :  { %5836 = vmatpush3.msra.mxu1 %v6804_v46 }
0x2cb8   :  { %v5821_v15 = vpop.f32.mrb[26].mxu1 }
0x2cb9   :  { %v3717_v16 = vadd.f32 %v5821_v15, %v3638_v12  ;;  %v3711_v19 = vpop.f32.mrb[27].mxu1 }
0x2cba   :  { %v3712_v22 = vadd.f32 %v3711_v19, %v3637_v14 }
0x2cbb   :  { %v3727_v23 = vsel %vm377_vm7, %v3717_v16, 0.0 }
0x2cbc   :  { %3728 = vadd.xlane.f32.xlu1 %v3727_v23  ;;  %v3724_v21 = vsel %vm377_vm7, %v3712_v22, 0.0 }
0x2cbd   :  { %3725 = vadd.xlane.f32.xlu0 %v3724_v21 }
0x2d49   :  { %v3729_v51 = vpop.xlane.xlu1 %3728 }
0x2d4a   :  { %v3731_v46 = vmul.f32 0.041666668, %v3729_v51  ;;  %v3726_v13 = vpop.xlane.xlu0 %3725 }
0x2d4b   :  { %v3730_v24 = vmul.f32 0.041666668, %v3726_v13 }
0x2d4c   :  { %v3733_v25 = vsub.f32 %v3717_v16, %v3731_v46 }
0x2d4d   :  { %v3732_v26 = vsub.f32 %v3712_v22, %v3730_v24 }
0x2d4e   :  { %v3735_v28 = vmul.f32 %v3733_v25, %v3733_v25 }
0x2d4f   :  { %v3734_v30 = vmul.f32 %v3732_v26, %v3732_v26 }
0x2d50   :  { %v3739_v31 = vsel %vm377_vm7, %v3735_v28, 0.0 }
0x2d51   :  { %3740 = vadd.xlane.f32.xlu1 %v3739_v31  ;;  %v3736_v2 = vsel %vm377_vm7, %v3734_v30, 0.0 }
0x2d52   :  { %3737 = vadd.xlane.f32.xlu0 %v3736_v2 }
0x2dde   :  { %v3741_v35 = vpop.xlane.xlu1 %3740 }
0x2ddf   :  { %v3743_v37 = vmul.f32 0.041666668, %v3741_v35  ;;  %v3738_v38 = vpop.xlane.xlu0 %3737 }
0x2de0   :  { %v3742_v39 = vmul.f32 0.041666668, %v3738_v38 }
0x2de1   :  { %v3745_v40 = vadd.f32 1e-05, %v3743_v37 }
0x2de2   :  { %v3744_v0 = vadd.f32 1e-05, %v3742_v39 }
0x2de3   :  { %6214 = vrsqrt.f32 %v3745_v40 }
0x2de4   :  { %6216 = vrsqrt.f32 %v3744_v0 }
0x2ded   :  { %v6215_v44 = vpop.eup %6214 }
0x2dee   :  { %v6217_v47 = vpop.eup %6216  ;;  %v3749_v48 = vmul.f32 %v6215_v44, %v3733_v25  ;;  %v3998_v25 = vld [vmem:[%s7455_s1 + $0x11d] sm:$0xff] }
0x2def   :  { %v3748_v59 = vmul.f32 %v6217_v47, %v3732_v26  ;;  %v3999_v26 = vld [vmem:[%s7455_s1 + $0x125] sm:$0xff]  ;;  %v3977_v47 = vld [vmem:[%s7455_s1 + $0x2df] sm:$0x1] }
0x2df0   :  { %v3751_v49 = vmul.f32 %v3749_v48, %v6818_v27  ;;  %v7110_v28 = vpack.c.bf16 %v3999_v26, %v3998_v25 }
0x2df1   :  { %v3750_v53 = vmul.f32 %v3748_v59, %v6823_v17  ;;  %v3978_v59 = vld [vmem:[%s7455_s1 + $0x2ee] sm:$0x1] }
0x2df2   :  { %v3753_v52 = vadd.f32 %v3751_v49, %v6828_v33  ;;  %6068 = vmatprep.subr.bf16.mxu0 %v7110_v28 }
0x2df3   :  { %v3752_v55 = vadd.f32 %v3750_v53, %v6833_v34  ;;  %v3927_v34 = vld [vmem:[%s7455_s1 + $0x2ab] sm:$0x7f] }
0x2df4   :  { %v3755_v58 = vmax.f32 %v3753_v52, 0.0 }
0x2df5   :  { %v3754_v57 = vmax.f32 %v3752_v55, 0.0 }
0x2df7   :  { %5828 = vmatprep.mubr.msk.f32.mxu0 %vm377_vm7, %v3754_v57  ;;  %5837 = vmatprep.mubr.msk.f32.mxu1 %vm377_vm7, %v3754_v57 }
0x2df8   :  { %5829 = vmatmul.mubr.msk.f32.vlgmr.msra.gmra.mrb[24].mxu0 %vm377_vm7, %v3755_v58  ;;  %5838 = vmatmul.mubr.msk.f32.vlgmr.msra.gmra.mrb[28].mxu1 %vm377_vm7, %v3755_v58 }
0x2df9   :  { %6070 = vmatpush3.bf16.msra.mxu0 %v7110_v28 }
0x2ecb   :  { %v5830_v29 = vpop.f32.mrb[24].mxu0  ;;  %v5839_v32 = vpop.f32.mrb[28].mxu1 }
0x2ecc   :  { %v3839_v27 = vadd.f32 %v5830_v29, %v6852_v41  ;;  %v3919_v17 = vadd.f32 %v5839_v32, %v6857_v43  ;;  %v3833_v60 = vpop.f32.mrb[25].mxu0  ;;  %v3913_v33 = vpop.f32.mrb[29].mxu1  ;;  %v3922_v41 = vld [vmem:[%s7455_s1 + $0x23a] sm:$0xff]  ;;  %v3940_v32 = vld [vmem:[%s7455_s1 + $0x2e7] sm:$0x7f] }
0x2ecd   :  { %v3834_v63 = vadd.f32 %v3833_v60, %v6862_v62  ;;  %v3914_v3 = vadd.f32 %v3913_v33, %v6867_v45  ;;  %v3942_v60 = vld [vmem:[%s7455_s1 + $0x2f6] sm:$0x7f] }
0x2ece   :  { %v3931_v1 = vrot.slane %v3839_v27, 1  ;;  %v3925_v5 = vmul.f32 %v3923_v61, %v3919_v17 }
0x2ecf   :  { %v3930_v36 = vrot.slane %v3834_v63, 1  ;;  %v3979_v43 = vsel %vm2889_vm10, %v3834_v63, 0.0  ;;  %v3924_v62 = vmul.f32 %v3922_v41, %v3914_v3  ;;  %v4000_v3 = vld [vmem:[%s7455_s1 + $0x16d] sm:$0xff] }
0x2ed0   :  { %v3936_v4 = vmul.f32 %v3931_v1, %v3927_v34  ;;  %3980 = vadd.xlane.f32.xlu1 %v3979_v43 }
0x2ed1   :  { %v3932_v42 = vsel %vm2839_vm11, %v3930_v36, %v3931_v1 }
0x2ed2   :  { %v3935_v7 = vmul.f32 %v3932_v42, %v3926_v18  ;;  %v3938_v20 = vadd.f32 %v3936_v4, %v3925_v5 }
0x2ed4   :  { %v3937_v45 = vadd.f32 %v3935_v7, %v3924_v62  ;;  %v3946_v8 = vsel %vm505_vm9, %v3938_v20, 0.0 }
0x2ed6   :  { %v3943_v56 = vsel %vm196_vm6, %v3937_v45, 0.0 }
0x2ed7   :  { %3944 = vadd.xlane.f32.xlu0 %v3943_v56 }
0x2edb   :  { %3947 = vadd.xlane.f32.xlu0 %v3946_v8 }
0x2f5d   :  { %v3981_v9 = vpop.xlane.xlu1 %3980 }
0x2f5e   :  { %v3982_v10 = vmul.f32 0.0625, %v3981_v9 }
0x2f60   :  { %v3983_v11 = vsub.f32 %v3834_v63, %v3982_v10 }
0x2f62   :  { %v3984_v12 = vmul.f32 %v3983_v11, %v3983_v11 }
0x2f64   :  { %v3945_v14 = vpop.xlane.xlu0 %3944  ;;  %v3985_v15 = vsel %vm2889_vm10, %v3984_v12, 0.0  ;;  %v4119_v12 = vld [vmem:[%s7455_s1 + $0x1bd] sm:$0xff] }
0x2f65   :  { %v3949_v16 = vmul.f32 0.0625, %v3945_v14  ;;  %3986 = vadd.xlane.f32.xlu0 %v3985_v15  ;;  %v4120_v14 = vld [vmem:[%s7455_s1 + $0x1c5] sm:$0xff] }
0x2f66   :  { %v4205_v15 = vld [vmem:[%s7455_s1 + $0x1e5] sm:$0xff] }
0x2f67   :  { %v3951_v19 = vsub.f32 %v3937_v45, %v3949_v16  ;;  %v7152_v16 = vpack.c.bf16 %v4120_v14, %v4119_v12 }
0x2f68   :  { %v3948_v22 = vpop.xlane.xlu0 %3947 }
0x2f69   :  { %v3950_v23 = vmul.f32 0.0625, %v3948_v22  ;;  %v3953_v21 = vmul.f32 %v3951_v19, %v3951_v19  ;;  %6072 = vmatprep.subr.bf16.mxu1 %v7152_v16 }
0x2f6a   :  { %6074 = vmatpush3.bf16.msra.mxu1 %v7152_v16 }
0x2f6b   :  { %v3952_v51 = vsub.f32 %v3938_v20, %v3950_v23  ;;  %v3955_v46 = vsel %vm196_vm6, %v3953_v21, 0.0  ;;  %v7162_v23 = vld [vmem:[%s7455_s1 + $0x1cd] sm:$0xff]  ;;  %v7168_v21 = vld [vmem:[%s7455_s1 + $0x1f5] sm:$0xff] }
0x2f6c   :  { %3956 = vadd.xlane.f32.xlu1 %v3955_v46  ;;  %5851 = vmatprep.subr.mxu1 %v7162_v23 }
0x2f6d   :  { %v3954_v13 = vmul.f32 %v3952_v51, %v3952_v51 }
0x2f6e   :  { %5852 = vmatpush3.msra.mxu1 %v7162_v23 }
0x2f6f   :  { %v3958_v24 = vsel %vm505_vm9, %v3954_v13, 0.0  ;;  %6080 = vmatprep.subr.bf16.mxu1 %v7110_v28 }
0x2f70   :  { %3959 = vadd.xlane.f32.xlu1 %v3958_v24 }
0x2ff2   :  { %v3987_v30 = vpop.xlane.xlu0 %3986 }
0x2ff3   :  { %v3988_v31 = vmul.f32 0.0625, %v3987_v30 }
0x2ff5   :  { %v3989_v2 = vadd.f32 1e-05, %v3988_v31  ;;  %v7182_v31 = vld [vmem:[%s7455_s1 + $0x1a5] sm:$0xff] }
0x2ff7   :  { %6218 = vrsqrt.f32 %v3989_v2 }
0x2ff9   :  { %v3957_v35 = vpop.xlane.xlu1 %3956 }
0x2ffa   :  { %v3961_v37 = vmul.f32 0.0625, %v3957_v35 }
0x2ffc   :  { %v3963_v38 = vadd.f32 1e-05, %v3961_v37  ;;  %v7187_v37 = vld [vmem:[%s7455_s1 + $0x19d] sm:$0xff] }
0x2ffd   :  { %v3960_v39 = vpop.xlane.xlu1 %3959 }
0x2ffe   :  { %6220 = vrsqrt.f32 %v3963_v38  ;;  %v3962_v40 = vmul.f32 0.0625, %v3960_v39  ;;  %v7192_v39 = vld [vmem:[%s7455_s1 + $0x1b5] sm:$0xff] }
0x3000   :  { %v3964_v0 = vadd.f32 1e-05, %v3962_v40  ;;  %v7197_v40 = vld [vmem:[%s7455_s1 + $0x1ad] sm:$0xff] }
0x3001   :  { %v6219_v44 = vpop.eup %6218 }
0x3002   :  { %v3991_v48 = vmul.f32 %v6219_v44, %v3983_v11  ;;  %6222 = vrsqrt.f32 %v3964_v0 }
0x3004   :  { %v3992_v49 = vmul.f32 %v3991_v48, %v3977_v47 }
0x3006   :  { %v3993_v53 = vadd.f32 %v3992_v49, %v3978_v59 }
0x3008   :  { %v6221_v52 = vpop.eup %6220  ;;  %v3994_v55 = vmax.f32 %v3993_v53, 0.0  ;;  %v7216_v53 = vld [vmem:[%s7455_s1 + $0x1dd] sm:$0xff] }
0x3009   :  { %v3967_v57 = vmul.f32 %v6221_v52, %v3951_v19  ;;  %v4206_v19 = vld [vmem:[%s7455_s1 + $0x1ed] sm:$0xff]  ;;  %v7221_v52 = vld [vmem:[%s7455_s1 + $0x205] sm:$0xff] }
0x300a   :  { %3995 = vst.msk [vmem:[#allocation2] sm:$0x1] %vm2889_vm10, %v3994_v55  ;;  %v7157_v22 = vpack.c.bf16 %v4206_v19, %v4205_v15  ;;  %v7226_v55 = vld [vmem:[%s7455_s1 + $0x1d5] sm:$0xff] }
0x300b   :  { %v3969_v58 = vmul.f32 %v3967_v57, %v6901_v50 }
0x300c   :  { %v6223_v29 = vpop.eup %6222  ;;  %6076 = vmatprep.subr.bf16.mxu0 %v7157_v22 }
0x300d   :  { %v3971_v27 = vadd.f32 %v3969_v58, %v6907_v54  ;;  %v3968_v17 = vmul.f32 %v6223_v29, %v3952_v51  ;;  %v4001_v54 = vld [vmem:[%s7455_s1 + $0x175] sm:$0xff]  ;;  %v7231_v29 = vld [vmem:[%s7455_s1 + $0x1fd] sm:$0xff] }
0x300f   :  { %v3973_v33 = vmax.f32 %v3971_v27, 0.0  ;;  %v3970_v34 = vmul.f32 %v3968_v17, %v3940_v32 }
0x3011   :  { %3975 = vst.msk [vmem:[#allocation2 + $0x1] sm:$0xff] %vm196_vm6, %v3973_v33  ;;  %v3972_v61 = vadd.f32 %v3970_v34, %v3942_v60  ;;  %v4290_v33 = vld [vmem:[%s7455_s1 + $0x2ba] sm:$0x7f]  ;;  %v4286_v34 = vld [vmem:[%s7455_s1 + $0x251] sm:$0x7f] }
0x3013   :  { %v3974_v63 = vmax.f32 %v3972_v61, 0.0 }
0x3015   :  { %3976 = vst.msk [vmem:[#allocation2 + $0x9] sm:$0x7f] %vm505_vm9, %v3974_v63 }
0x3018   :  { %v3996_v50 = vld [vmem:[#allocation2] sm:$0xff] }
0x3019   :  { %5844 = vmatprep.mubr.msk.f32.mxu0 %vm196_vm6, %v3996_v50 }
0x301c   :  { %v3997_v1 = vld [vmem:[#allocation2 + $0x8] sm:$0xff] }
0x301d   :  { %5845 = vmatmul.mubr.msk.f32.vlgmr.msra.gmra.mrb[26].mxu0 %vm196_vm6, %v3997_v1 }
0x301e   :  { %6078 = vmatpush3.bf16.msra.mxu0 %v7157_v22 }
0x301f   :  { %5860 = vmatprep.subr.mxu0 %v7168_v21 }
0x3022   :  { %5861 = vmatpush3.msra.mxu0 %v7168_v21 }
0x3023   :  { %6084 = vmatprep.subr.bf16.mxu0 %v7152_v16 }
0x30f0   :  { %v5846_v36 = vpop.f32.mrb[26].mxu0 }
0x30f1   :  { %v4080_v41 = vadd.f32 %v5846_v36, %v4001_v54  ;;  %v4074_v43 = vpop.f32.mrb[27].mxu0  ;;  %v4285_v54 = vld [vmem:[%s7455_s1 + $0x249] sm:$0xff]  ;;  %v4289_v36 = vld [vmem:[%s7455_s1 + $0x2b2] sm:$0xff] }
0x30f2   :  { %v4075_v18 = vadd.f32 %v4074_v43, %v4000_v3 }
0x30f3   :  { %v4090_v4 = vsel %vm377_vm7, %v4080_v41, 0.0 }
0x30f4   :  { %4091 = vadd.xlane.f32.xlu1 %v4090_v4  ;;  %v4087_v5 = vsel %vm377_vm7, %v4075_v18, 0.0 }
0x30f5   :  { %4088 = vadd.xlane.f32.xlu0 %v4087_v5 }
0x3181   :  { %v4092_v42 = vpop.xlane.xlu1 %4091 }
0x3182   :  { %v4094_v62 = vmul.f32 0.041666668, %v4092_v42  ;;  %v4089_v7 = vpop.xlane.xlu0 %4088 }
0x3183   :  { %v4093_v20 = vmul.f32 0.041666668, %v4089_v7 }
0x3184   :  { %v4096_v45 = vsub.f32 %v4080_v41, %v4094_v62 }
0x3185   :  { %v4095_v56 = vsub.f32 %v4075_v18, %v4093_v20 }
0x3186   :  { %v4098_v8 = vmul.f32 %v4096_v45, %v4096_v45 }
0x3187   :  { %v4097_v9 = vmul.f32 %v4095_v56, %v4095_v56 }
0x3188   :  { %v4102_v10 = vsel %vm377_vm7, %v4098_v8, 0.0 }
0x3189   :  { %4103 = vadd.xlane.f32.xlu1 %v4102_v10  ;;  %v4099_v11 = vsel %vm377_vm7, %v4097_v9, 0.0 }
0x318a   :  { %4100 = vadd.xlane.f32.xlu0 %v4099_v11 }
0x3216   :  { %v4104_v51 = vpop.xlane.xlu1 %4103 }
0x3217   :  { %v4106_v46 = vmul.f32 0.041666668, %v4104_v51  ;;  %v4101_v13 = vpop.xlane.xlu0 %4100 }
0x3218   :  { %v4105_v24 = vmul.f32 0.041666668, %v4101_v13 }
0x3219   :  { %v4108_v25 = vadd.f32 1e-05, %v4106_v46 }
0x321a   :  { %v4107_v26 = vadd.f32 1e-05, %v4105_v24 }
0x321b   :  { %6224 = vrsqrt.f32 %v4108_v25 }
0x321c   :  { %6226 = vrsqrt.f32 %v4107_v26 }
0x3225   :  { %v6225_v30 = vpop.eup %6224 }
0x3226   :  { %v6227_v2 = vpop.eup %6226  ;;  %v4112_v35 = vmul.f32 %v6225_v30, %v4096_v45 }
0x3227   :  { %v4111_v38 = vmul.f32 %v6227_v2, %v4095_v56 }
0x3228   :  { %v4114_v0 = vmul.f32 %v4112_v35, %v7182_v31 }
0x3229   :  { %v4113_v44 = vmul.f32 %v4111_v38, %v7187_v37 }
0x322a   :  { %v4116_v47 = vadd.f32 %v4114_v0, %v7192_v39 }
0x322b   :  { %v4115_v48 = vadd.f32 %v4113_v44, %v7197_v40 }
0x322c   :  { %v4118_v49 = vmax.f32 %v4116_v47, 0.0 }
0x322d   :  { %v4117_v59 = vmax.f32 %v4115_v48, 0.0 }
0x322f   :  { %5853 = vmatprep.mubr.msk.f32.mxu1 %vm377_vm7, %v4117_v59  ;;  %5862 = vmatprep.mubr.msk.f32.mxu0 %vm377_vm7, %v4117_v59 }
0x3230   :  { %5854 = vmatmul.mubr.msk.f32.vlgmr.msra.gmra.mrb[30].mxu1 %vm377_vm7, %v4118_v49  ;;  %5863 = vmatmul.mubr.msk.f32.vlgmr.msra.gmra.mrb[28].mxu0 %vm377_vm7, %v4118_v49  ;;  %v4340_v49 = vld [vmem:[%s7455_s1 + $0x2df] sm:$0x1] }
0x3231   :  { %6082 = vmatpush3.bf16.msra.mxu1 %v7110_v28  ;;  %6086 = vmatpush3.bf16.msra.mxu0 %v7152_v16 }
0x3232   :  { %6088 = vmatprep.subr.bf16.mxu1 %v7157_v22  ;;  %5876 = vmatprep.subr.mxu0 %v7162_v23 }
0x3235   :  { %5877 = vmatpush3.msra.mxu0 %v7162_v23 }
0x3236   :  { %6092 = vmatprep.subr.bf16.mxu0 %v7110_v28 }
0x3303   :  { %v5855_v57 = vpop.f32.mrb[30].mxu1  ;;  %v5864_v58 = vpop.f32.mrb[28].mxu0 }
0x3304   :  { %v4202_v32 = vadd.f32 %v5855_v57, %v7216_v53  ;;  %v4282_v27 = vadd.f32 %v5864_v58, %v7221_v52  ;;  %v4196_v17 = vpop.f32.mrb[31].mxu1  ;;  %v4276_v60 = vpop.f32.mrb[29].mxu0  ;;  %v4341_v58 = vld [vmem:[%s7455_s1 + $0x2ee] sm:$0x1] }
0x3305   :  { %v4197_v61 = vadd.f32 %v4196_v17, %v7226_v55  ;;  %v4277_v50 = vadd.f32 %v4276_v60, %v7231_v29 }
0x3306   :  { %v4294_v63 = vrot.slane %v4202_v32, 1  ;;  %v4288_v43 = vmul.f32 %v4286_v34, %v4282_v27 }
0x3307   :  { %v4293_v1 = vrot.slane %v4197_v61, 1  ;;  %v4342_v3 = vsel %vm2889_vm10, %v4197_v61, 0.0  ;;  %v4287_v4 = vmul.f32 %v4285_v54, %v4277_v50 }
0x3308   :  { %v4299_v41 = vmul.f32 %v4294_v63, %v4290_v33  ;;  %4343 = vadd.xlane.f32.xlu1 %v4342_v3  ;;  %v7265_v33 = vld [vmem:[%s7455_s1 + $0x2df] sm:$0xff] }
0x3309   :  { %v4295_v18 = vsel %vm2839_vm11, %v4293_v1, %v4294_v63  ;;  %v4303_v1 = vld [vmem:[%s7455_s1 + $0x2e7] sm:$0x7f] }
0x330a   :  { %v4298_v5 = vmul.f32 %v4295_v18, %v4289_v36  ;;  %v4301_v42 = vadd.f32 %v4299_v41, %v4288_v43  ;;  %v4305_v36 = vld [vmem:[%s7455_s1 + $0x2f6] sm:$0x7f] }
0x330c   :  { %v4300_v62 = vadd.f32 %v4298_v5, %v4287_v4  ;;  %v4309_v20 = vsel %vm505_vm9, %v4301_v42, 0.0 }
0x330e   :  { %v4306_v7 = vsel %vm196_vm6, %v4300_v62, 0.0 }
0x330f   :  { %4307 = vadd.xlane.f32.xlu0 %v4306_v7  ;;  %v4363_v7 = vld [vmem:[%s7455_s1 + $0x17d] sm:$0xff] }
0x3313   :  { %4310 = vadd.xlane.f32.xlu0 %v4309_v20 }
0x3395   :  { %v4344_v45 = vpop.xlane.xlu1 %4343 }
0x3396   :  { %v4345_v56 = vmul.f32 0.0625, %v4344_v45 }
0x3398   :  { %v4346_v8 = vsub.f32 %v4197_v61, %v4345_v56  ;;  %v7271_v61 = vld [vmem:[%s7455_s1 + $0x2ee] sm:$0xff] }
0x339a   :  { %v4347_v9 = vmul.f32 %v4346_v8, %v4346_v8 }
0x339c   :  { %v4308_v10 = vpop.xlane.xlu0 %4307  ;;  %v4348_v11 = vsel %vm2889_vm10, %v4347_v9, 0.0 }
0x339d   :  { %v4312_v12 = vmul.f32 0.0625, %v4308_v10  ;;  %4349 = vadd.xlane.f32.xlu0 %v4348_v11 }
0x339f   :  { %v4314_v14 = vsub.f32 %v4300_v62, %v4312_v12  ;;  %v4364_v62 = vld [vmem:[%s7455_s1 + $0x185] sm:$0xff] }
0x33a0   :  { %v4311_v15 = vpop.xlane.xlu0 %4310 }
0x33a1   :  { %v4313_v19 = vmul.f32 0.0625, %v4311_v15  ;;  %v4316_v51 = vmul.f32 %v4314_v14, %v4314_v14 }
0x33a3   :  { %v4315_v46 = vsub.f32 %v4301_v42, %v4313_v19  ;;  %v4318_v13 = vsel %vm196_vm6, %v4316_v51, 0.0 }
0x33a4   :  { %4319 = vadd.xlane.f32.xlu1 %v4318_v13 }
0x33a5   :  { %v4317_v24 = vmul.f32 %v4315_v46, %v4315_v46 }
0x33a7   :  { %v4321_v25 = vsel %vm505_vm9, %v4317_v24, 0.0 }
0x33a8   :  { %4322 = vadd.xlane.f32.xlu1 %v4321_v25 }
0x342a   :  { %v4350_v26 = vpop.xlane.xlu0 %4349 }
0x342b   :  { %v4351_v30 = vmul.f32 0.0625, %v4350_v26 }
0x342d   :  { %v4352_v2 = vadd.f32 1e-05, %v4351_v30 }
0x342f   :  { %6228 = vrsqrt.f32 %v4352_v2 }
0x3431   :  { %v4320_v35 = vpop.xlane.xlu1 %4319 }
0x3432   :  { %v4324_v38 = vmul.f32 0.0625, %v4320_v35 }
0x3434   :  { %v4326_v0 = vadd.f32 1e-05, %v4324_v38 }
0x3435   :  { %v4323_v44 = vpop.xlane.xlu1 %4322 }
0x3436   :  { %6230 = vrsqrt.f32 %v4326_v0  ;;  %v4325_v47 = vmul.f32 0.0625, %v4323_v44 }
0x3438   :  { %v4327_v48 = vadd.f32 1e-05, %v4325_v47 }
0x3439   :  { %v6229_v59 = vpop.eup %6228 }
0x343a   :  { %v4354_v57 = vmul.f32 %v6229_v59, %v4346_v8  ;;  %6232 = vrsqrt.f32 %v4327_v48 }
0x343c   :  { %v4355_v32 = vmul.f32 %v4354_v57, %v4340_v49 }
0x343e   :  { %v4356_v27 = vadd.f32 %v4355_v32, %v4341_v58 }
0x3440   :  { %v6231_v17 = vpop.eup %6230  ;;  %v4357_v60 = vmax.f32 %v4356_v27, 0.0 }
0x3441   :  { %v4330_v34 = vmul.f32 %v6231_v17, %v4314_v14 }
0x3442   :  { %4358 = vst.msk [vmem:[#allocation2] sm:$0x1] %vm2889_vm10, %v4357_v60 }
0x3443   :  { %v4332_v63 = vmul.f32 %v4330_v34, %v7265_v33 }
0x3444   :  { %v6233_v50 = vpop.eup %6232 }
0x3445   :  { %v4334_v54 = vadd.f32 %v4332_v63, %v7271_v61  ;;  %v4331_v3 = vmul.f32 %v6233_v50, %v4315_v46 }
0x3447   :  { %v4336_v41 = vmax.f32 %v4334_v54, 0.0  ;;  %v4333_v43 = vmul.f32 %v4331_v3, %v4303_v1 }
0x3449   :  { %4338 = vst.msk [vmem:[#allocation2 + $0x1] sm:$0xff] %vm196_vm6, %v4336_v41  ;;  %v4335_v18 = vadd.f32 %v4333_v43, %v4305_v36  ;;  %v4648_v43 = vld [vmem:[%s7455_s1 + $0x258] sm:$0xff] }
0x344b   :  { %v4337_v4 = vmax.f32 %v4335_v18, 0.0 }
0x344d   :  { %4339 = vst.msk [vmem:[#allocation2 + $0x9] sm:$0x7f] %vm505_vm9, %v4337_v4  ;;  %v4652_v4 = vld [vmem:[%s7455_s1 + $0x2c1] sm:$0xff] }
0x3450   :  { %v4359_v5 = vld [vmem:[#allocation2] sm:$0xff] }
0x3451   :  { %5869 = vmatprep.mubr.msk.f32.mxu1 %vm196_vm6, %v4359_v5 }
0x3454   :  { %v4360_v42 = vld [vmem:[#allocation2 + $0x8] sm:$0xff] }
0x3455   :  { %5870 = vmatmul.mubr.msk.f32.vlgmr.msra.gmra.mrb[32].mxu1 %vm196_vm6, %v4360_v42 }
0x3456   :  { %6090 = vmatpush3.bf16.msra.mxu1 %v7157_v22 }
0x3457   :  { %5885 = vmatprep.subr.mxu1 %v7168_v21 }
0x345a   :  { %5886 = vmatpush3.msra.mxu1 %v7168_v21 }
0x345b   :  { %6096 = vmatprep.subr.bf16.mxu1 %v7152_v16 }
0x3528   :  { %v5871_v20 = vpop.f32.mrb[32].mxu1 }
0x3529   :  { %v4443_v45 = vadd.f32 %v5871_v20, %v4364_v62  ;;  %v4437_v56 = vpop.f32.mrb[33].mxu1 }
0x352a   :  { %v4438_v8 = vadd.f32 %v4437_v56, %v4363_v7 }
0x352b   :  { %v4453_v9 = vsel %vm377_vm7, %v4443_v45, 0.0 }
0x352c   :  { %4454 = vadd.xlane.f32.xlu1 %v4453_v9  ;;  %v4450_v10 = vsel %vm377_vm7, %v4438_v8, 0.0 }
0x352d   :  { %4451 = vadd.xlane.f32.xlu0 %v4450_v10 }
0x35b9   :  { %v4455_v11 = vpop.xlane.xlu1 %4454 }
0x35ba   :  { %v4457_v12 = vmul.f32 0.041666668, %v4455_v11  ;;  %v4452_v14 = vpop.xlane.xlu0 %4451 }
0x35bb   :  { %v4456_v15 = vmul.f32 0.041666668, %v4452_v14 }
0x35bc   :  { %v4459_v19 = vsub.f32 %v4443_v45, %v4457_v12 }
0x35bd   :  { %v4458_v51 = vsub.f32 %v4438_v8, %v4456_v15 }
0x35be   :  { %v4461_v46 = vmul.f32 %v4459_v19, %v4459_v19 }
0x35bf   :  { %v4460_v13 = vmul.f32 %v4458_v51, %v4458_v51 }
0x35c0   :  { %v4465_v24 = vsel %vm377_vm7, %v4461_v46, 0.0 }
0x35c1   :  { %4466 = vadd.xlane.f32.xlu1 %v4465_v24  ;;  %v4462_v25 = vsel %vm377_vm7, %v4460_v13, 0.0 }
0x35c2   :  { %4463 = vadd.xlane.f32.xlu0 %v4462_v25 }
0x364e   :  { %v4467_v26 = vpop.xlane.xlu1 %4466 }
0x364f   :  { %v4469_v30 = vmul.f32 0.041666668, %v4467_v26  ;;  %v4464_v2 = vpop.xlane.xlu0 %4463 }
0x3650   :  { %v4468_v35 = vmul.f32 0.041666668, %v4464_v2 }
0x3651   :  { %v4471_v38 = vadd.f32 1e-05, %v4469_v30 }
0x3652   :  { %v4470_v0 = vadd.f32 1e-05, %v4468_v35 }
0x3653   :  { %6234 = vrsqrt.f32 %v4471_v38 }
0x3654   :  { %6236 = vrsqrt.f32 %v4470_v0 }
0x365d   :  { %v6235_v44 = vpop.eup %6234 }
0x365e   :  { %v6237_v47 = vpop.eup %6236  ;;  %v4475_v48 = vmul.f32 %v6235_v44, %v4459_v19 }
0x365f   :  { %v4474_v59 = vmul.f32 %v6237_v47, %v4458_v51 }
0x3660   :  { %v4477_v49 = vmul.f32 %v4475_v48, %v7182_v31 }
0x3661   :  { %v4476_v57 = vmul.f32 %v4474_v59, %v7187_v37 }
0x3662   :  { %v4479_v58 = vadd.f32 %v4477_v49, %v7192_v39 }
0x3663   :  { %v4478_v32 = vadd.f32 %v4476_v57, %v7197_v40 }
0x3664   :  { %v4481_v17 = vmax.f32 %v4479_v58, 0.0 }
0x3665   :  { %v4480_v27 = vmax.f32 %v4478_v32, 0.0 }
0x3667   :  { %5878 = vmatprep.mubr.msk.f32.mxu0 %vm377_vm7, %v4480_v27  ;;  %5887 = vmatprep.mubr.msk.f32.mxu1 %vm377_vm7, %v4480_v27  ;;  %v4703_v27 = vld [vmem:[%s7455_s1 + $0x2df] sm:$0x1] }
0x3668   :  { %5879 = vmatmul.mubr.msk.f32.vlgmr.msra.gmra.mrb[30].mxu0 %vm377_vm7, %v4481_v17  ;;  %5888 = vmatmul.mubr.msk.f32.vlgmr.msra.gmra.mrb[34].mxu1 %vm377_vm7, %v4481_v17 }
0x3669   :  { %6094 = vmatpush3.bf16.msra.mxu0 %v7110_v28  ;;  %6098 = vmatpush3.bf16.msra.mxu1 %v7152_v16  ;;  %v4653_v28 = vld [vmem:[%s7455_s1 + $0x2c9] sm:$0x7f]  ;;  %v4649_v16 = vld [vmem:[%s7455_s1 + $0x260] sm:$0x7f] }
0x366a   :  { %6100 = vmatprep.subr.bf16.mxu0 %v7157_v22  ;;  %5901 = vmatprep.subr.mxu1 %v7162_v23 }
0x366d   :  { %5902 = vmatpush3.msra.mxu1 %v7162_v23 }
0x373b   :  { %v5880_v60 = vpop.f32.mrb[30].mxu0  ;;  %v5889_v34 = vpop.f32.mrb[34].mxu1 }
0x373c   :  { %v4565_v63 = vadd.f32 %v5880_v60, %v7216_v53  ;;  %v4645_v50 = vadd.f32 %v5889_v34, %v7221_v52  ;;  %v4559_v1 = vpop.f32.mrb[31].mxu0  ;;  %v4639_v54 = vpop.f32.mrb[35].mxu1  ;;  %v4704_v60 = vld [vmem:[%s7455_s1 + $0x2ee] sm:$0x1] }
0x373d   :  { %v4560_v3 = vadd.f32 %v4559_v1, %v7226_v55  ;;  %v4640_v23 = vadd.f32 %v4639_v54, %v7231_v29 }
0x373e   :  { %v4657_v36 = vrot.slane %v4565_v63, 1  ;;  %v4651_v42 = vmul.f32 %v4649_v16, %v4645_v50 }
0x373f   :  { %v4656_v41 = vrot.slane %v4560_v3, 1  ;;  %v4705_v18 = vsel %vm2889_vm10, %v4560_v3, 0.0  ;;  %v4650_v7 = vmul.f32 %v4648_v43, %v4640_v23 }
0x3740   :  { %v4662_v5 = vmul.f32 %v4657_v36, %v4653_v28  ;;  %4706 = vadd.xlane.f32.xlu1 %v4705_v18 }
0x3741   :  { %v4658_v62 = vsel %vm2839_vm11, %v4656_v41, %v4657_v36  ;;  %v4668_v41 = vld [vmem:[%s7455_s1 + $0x2f6] sm:$0x7f] }
0x3742   :  { %v4661_v20 = vmul.f32 %v4658_v62, %v4652_v4  ;;  %v4664_v45 = vadd.f32 %v4662_v5, %v4651_v42 }
0x3744   :  { %v4663_v56 = vadd.f32 %v4661_v20, %v4650_v7  ;;  %v4672_v9 = vsel %vm505_vm9, %v4664_v45, 0.0  ;;  %v4727_v7 = vld [vmem:[%s7455_s1 + $0x195] sm:$0xff]  ;;  %v4726_v20 = vld [vmem:[%s7455_s1 + $0x18d] sm:$0xff] }
0x3746   :  { %v4669_v8 = vsel %vm196_vm6, %v4663_v56, 0.0 }
0x3747   :  { %4670 = vadd.xlane.f32.xlu0 %v4669_v8 }
0x374b   :  { %4673 = vadd.xlane.f32.xlu0 %v4672_v9 }
0x37cd   :  { %v4707_v10 = vpop.xlane.xlu1 %4706 }
0x37ce   :  { %v4708_v11 = vmul.f32 0.0625, %v4707_v10 }
0x37d0   :  { %v4709_v12 = vsub.f32 %v4560_v3, %v4708_v11  ;;  %v4666_v3 = vld [vmem:[%s7455_s1 + $0x2e7] sm:$0x7f] }
0x37d2   :  { %v4710_v14 = vmul.f32 %v4709_v12, %v4709_v12 }
0x37d4   :  { %v4671_v15 = vpop.xlane.xlu0 %4670  ;;  %v4711_v19 = vsel %vm2889_vm10, %v4710_v14, 0.0 }
0x37d5   :  { %v4675_v51 = vmul.f32 0.0625, %v4671_v15  ;;  %4712 = vadd.xlane.f32.xlu0 %v4711_v19 }
0x37d7   :  { %v4677_v46 = vsub.f32 %v4663_v56, %v4675_v51 }
0x37d8   :  { %v4674_v13 = vpop.xlane.xlu0 %4673 }
0x37d9   :  { %v4676_v24 = vmul.f32 0.0625, %v4674_v13  ;;  %v4679_v25 = vmul.f32 %v4677_v46, %v4677_v46 }
0x37db   :  { %v4678_v26 = vsub.f32 %v4664_v45, %v4676_v24  ;;  %v4681_v30 = vsel %vm196_vm6, %v4679_v25, 0.0 }
0x37dc   :  { %4682 = vadd.xlane.f32.xlu1 %v4681_v30 }
0x37dd   :  { %v4680_v2 = vmul.f32 %v4678_v26, %v4678_v26 }
0x37df   :  { %v4684_v35 = vsel %vm505_vm9, %v4680_v2, 0.0 }
0x37e0   :  { %4685 = vadd.xlane.f32.xlu1 %v4684_v35 }
0x3862   :  { %v4713_v38 = vpop.xlane.xlu0 %4712 }
0x3863   :  { %v4714_v0 = vmul.f32 0.0625, %v4713_v38 }
0x3865   :  { %v4715_v44 = vadd.f32 1e-05, %v4714_v0 }
0x3867   :  { %6238 = vrsqrt.f32 %v4715_v44 }
0x3869   :  { %v4683_v47 = vpop.xlane.xlu1 %4682 }
0x386a   :  { %v4687_v48 = vmul.f32 0.0625, %v4683_v47 }
0x386c   :  { %v4689_v59 = vadd.f32 1e-05, %v4687_v48 }
0x386d   :  { %v4686_v49 = vpop.xlane.xlu1 %4685 }
0x386e   :  { %6240 = vrsqrt.f32 %v4689_v59  ;;  %v4688_v57 = vmul.f32 0.0625, %v4686_v49 }
0x3870   :  { %v4690_v58 = vadd.f32 1e-05, %v4688_v57 }
0x3871   :  { %v6239_v32 = vpop.eup %6238 }
0x3872   :  { %v4717_v17 = vmul.f32 %v6239_v32, %v4709_v12  ;;  %6242 = vrsqrt.f32 %v4690_v58 }
0x3874   :  { %v4718_v34 = vmul.f32 %v4717_v17, %v4703_v27 }
0x3876   :  { %v4719_v63 = vadd.f32 %v4718_v34, %v4704_v60 }
0x3878   :  { %v6241_v50 = vpop.eup %6240  ;;  %v4720_v1 = vmax.f32 %v4719_v63, 0.0  ;;  %v5012_v63 = vld [vmem:[%s7455_s1 + $0x26f] sm:$0x7f] }
0x3879   :  { %v4693_v54 = vmul.f32 %v6241_v50, %v4677_v46 }
0x387a   :  { %4721 = vst.msk [vmem:[#allocation2] sm:$0x1] %vm2889_vm10, %v4720_v1 }
0x387b   :  { %v4695_v28 = vmul.f32 %v4693_v54, %v7265_v33 }
0x387c   :  { %v6243_v16 = vpop.eup %6242 }
0x387d   :  { %v4697_v36 = vadd.f32 %v4695_v28, %v7271_v61  ;;  %v4694_v23 = vmul.f32 %v6243_v16, %v4678_v26  ;;  %v5015_v16 = vld [vmem:[%s7455_s1 + $0x2d0] sm:$0xff] }
0x387f   :  { %v4699_v43 = vmax.f32 %v4697_v36, 0.0  ;;  %v4696_v18 = vmul.f32 %v4694_v23, %v4666_v3 }
0x3881   :  { %4701 = vst.msk [vmem:[#allocation2 + $0x1] sm:$0xff] %vm196_vm6, %v4699_v43  ;;  %v4698_v4 = vadd.f32 %v4696_v18, %v4668_v41 }
0x3883   :  { %v4700_v5 = vmax.f32 %v4698_v4, 0.0 }
0x3885   :  { %4702 = vst.msk [vmem:[#allocation2 + $0x9] sm:$0x7f] %vm505_vm9, %v4700_v5 }
0x3888   :  { %v4722_v42 = vld [vmem:[#allocation2] sm:$0xff] }
0x3889   :  { %5894 = vmatprep.mubr.msk.f32.mxu0 %vm196_vm6, %v4722_v42 }
0x388c   :  { %v4723_v62 = vld [vmem:[#allocation2 + $0x8] sm:$0xff] }
0x388d   :  { %5895 = vmatmul.mubr.msk.f32.vlgmr.msra.gmra.mrb[32].mxu0 %vm196_vm6, %v4723_v62 }
0x388e   :  { %6102 = vmatpush3.bf16.msra.mxu0 %v7157_v22 }
0x388f   :  { %5910 = vmatprep.subr.mxu0 %v7168_v21 }
0x3892   :  { %5911 = vmatpush3.msra.mxu0 %v7168_v21 }
0x3960   :  { %v5896_v45 = vpop.f32.mrb[32].mxu0 }
0x3961   :  { %v4806_v56 = vadd.f32 %v5896_v45, %v4727_v7  ;;  %v4800_v8 = vpop.f32.mrb[33].mxu0 }
0x3962   :  { %v4801_v9 = vadd.f32 %v4800_v8, %v4726_v20 }
0x3963   :  { %v4816_v10 = vsel %vm377_vm7, %v4806_v56, 0.0 }
0x3964   :  { %4817 = vadd.xlane.f32.xlu1 %v4816_v10  ;;  %v4813_v22 = vsel %vm377_vm7, %v4801_v9, 0.0 }
0x3965   :  { %4814 = vadd.xlane.f32.xlu0 %v4813_v22 }
0x39f1   :  { %v4818_v11 = vpop.xlane.xlu1 %4817 }
0x39f2   :  { %v4820_v21 = vmul.f32 0.041666668, %v4818_v11  ;;  %v4815_v12 = vpop.xlane.xlu0 %4814 }
0x39f3   :  { %v4819_v14 = vmul.f32 0.041666668, %v4815_v12 }
0x39f4   :  { %v4822_v15 = vsub.f32 %v4806_v56, %v4820_v21 }
0x39f5   :  { %v4821_v19 = vsub.f32 %v4801_v9, %v4819_v14 }
0x39f6   :  { %v4824_v51 = vmul.f32 %v4822_v15, %v4822_v15 }
0x39f7   :  { %v4823_v46 = vmul.f32 %v4821_v19, %v4821_v19 }
0x39f8   :  { %v4828_v13 = vsel %vm377_vm7, %v4824_v51, 0.0 }
0x39f9   :  { %4829 = vadd.xlane.f32.xlu1 %v4828_v13  ;;  %v4825_v24 = vsel %vm377_vm7, %v4823_v46, 0.0 }
0x39fa   :  { %4826 = vadd.xlane.f32.xlu0 %v4825_v24 }
0x3a86   :  { %v4830_v25 = vpop.xlane.xlu1 %4829 }
0x3a87   :  { %v4832_v26 = vmul.f32 0.041666668, %v4830_v25  ;;  %v4827_v30 = vpop.xlane.xlu0 %4826 }
0x3a88   :  { %v4831_v2 = vmul.f32 0.041666668, %v4827_v30 }
0x3a89   :  { %v4834_v35 = vadd.f32 1e-05, %v4832_v26 }
0x3a8a   :  { %v4833_v38 = vadd.f32 1e-05, %v4831_v2 }
0x3a8b   :  { %6244 = vrsqrt.f32 %v4834_v35 }
0x3a8c   :  { %6246 = vrsqrt.f32 %v4833_v38 }
0x3a95   :  { %v6245_v0 = vpop.eup %6244 }
0x3a96   :  { %v6247_v44 = vpop.eup %6246  ;;  %v4838_v47 = vmul.f32 %v6245_v0, %v4822_v15  ;;  %v5087_v15 = vld [vmem:[%s7455_s1 + $0x2fd] sm:$0xff] }
0x3a97   :  { %v4837_v48 = vmul.f32 %v6247_v44, %v4821_v19  ;;  %v5088_v19 = vld [vmem:[%s7455_s1 + $0x305] sm:$0xff]  ;;  %v5066_v44 = vld [vmem:[%s7455_s1 + $0x2df] sm:$0x1] }
0x3a98   :  { %v4840_v59 = vmul.f32 %v4838_v47, %v7182_v31  ;;  %v6103_v51 = vpack.c.bf16 %v5088_v19, %v5087_v15 }
0x3a99   :  { %v4839_v49 = vmul.f32 %v4837_v48, %v7187_v37  ;;  %v5067_v48 = vld [vmem:[%s7455_s1 + $0x2ee] sm:$0x1] }
0x3a9a   :  { %v4842_v57 = vadd.f32 %v4840_v59, %v7192_v39  ;;  %6104 = vmatprep.subr.bf16.mxu1 %v6103_v51 }
0x3a9b   :  { %v4841_v58 = vadd.f32 %v4839_v49, %v7197_v40  ;;  %v5016_v40 = vld [vmem:[%s7455_s1 + $0x2d8] sm:$0x7f] }
0x3a9c   :  { %v4844_v27 = vmax.f32 %v4842_v57, 0.0 }
0x3a9d   :  { %v4843_v32 = vmax.f32 %v4841_v58, 0.0 }
0x3a9f   :  { %5903 = vmatprep.mubr.msk.f32.mxu1 %vm377_vm7, %v4843_v32  ;;  %5912 = vmatprep.mubr.msk.f32.mxu0 %vm377_vm7, %v4843_v32 }
0x3aa0   :  { %5904 = vmatmul.mubr.msk.f32.vlgmr.msra.gmra.mrb[36].mxu1 %vm377_vm7, %v4844_v27  ;;  %5913 = vmatmul.mubr.msk.f32.vlgmr.msra.gmra.mrb[34].mxu0 %vm377_vm7, %v4844_v27 }
0x3aa1   :  { %6106 = vmatpush3.bf16.msra.mxu1 %v6103_v51 }
0x3b73   :  { %v5905_v17 = vpop.f32.mrb[36].mxu1  ;;  %v5914_v60 = vpop.f32.mrb[34].mxu0 }
0x3b74   :  { %v4928_v31 = vadd.f32 %v5905_v17, %v7216_v53  ;;  %v5008_v37 = vadd.f32 %v5914_v60, %v7221_v52  ;;  %v4922_v34 = vpop.f32.mrb[37].mxu1  ;;  %v5002_v39 = vpop.f32.mrb[35].mxu0  ;;  %v5011_v53 = vld [vmem:[%s7455_s1 + $0x267] sm:$0xff] }
0x3b75   :  { %v4923_v50 = vadd.f32 %v4922_v34, %v7226_v55  ;;  %v5003_v54 = vadd.f32 %v5002_v39, %v7231_v29  ;;  %v5029_v60 = vld [vmem:[%s7455_s1 + $0x2e7] sm:$0x7f]  ;;  %v5031_v34 = vld [vmem:[%s7455_s1 + $0x2f6] sm:$0x7f] }
0x3b76   :  { %v5020_v1 = vrot.slane %v4928_v31, 1  ;;  %v5014_v36 = vmul.f32 %v5012_v63, %v5008_v37 }
0x3b77   :  { %v5019_v28 = vrot.slane %v4923_v50, 1  ;;  %v5068_v52 = vsel %vm2889_vm10, %v4923_v50, 0.0  ;;  %v5013_v55 = vmul.f32 %v5011_v53, %v5003_v54  ;;  %v5175_v54 = vld [vmem:[%s7455_s1 + $0x325] sm:$0x7]  ;;  %v5090_v53 = vld [vmem:[%s7455_s1 + $0x315] sm:$0xff] }
0x3b78   :  { %v5025_v3 = vmul.f32 %v5020_v1, %v5016_v40  ;;  %5069 = vadd.xlane.f32.xlu1 %v5068_v52  ;;  %v5089_v52 = vld [vmem:[%s7455_s1 + $0x30d] sm:$0xff] }
0x3b79   :  { %v5021_v23 = vsel %vm2839_vm11, %v5019_v28, %v5020_v1 }
0x3b7a   :  { %v5024_v41 = vmul.f32 %v5021_v23, %v5015_v16  ;;  %v5027_v43 = vadd.f32 %v5025_v3, %v5014_v36 }
0x3b7c   :  { %v5026_v29 = vadd.f32 %v5024_v41, %v5013_v55  ;;  %v5035_v4 = vsel %vm505_vm9, %v5027_v43, 0.0 }
0x3b7e   :  { %v5032_v18 = vsel %vm196_vm6, %v5026_v29, 0.0 }
0x3b7f   :  { %5033 = vadd.xlane.f32.xlu0 %v5032_v18 }
0x3b83   :  { %5036 = vadd.xlane.f32.xlu0 %v5035_v4 }
0x3c05   :  { %v5070_v5 = vpop.xlane.xlu1 %5069 }
0x3c06   :  { %v5071_v42 = vmul.f32 0.0625, %v5070_v5 }
0x3c08   :  { %v5072_v62 = vsub.f32 %v4923_v50, %v5071_v42 }
0x3c0a   :  { %v5073_v7 = vmul.f32 %v5072_v62, %v5072_v62 }
0x3c0c   :  { %v5034_v20 = vpop.xlane.xlu0 %5033  ;;  %v5074_v45 = vsel %vm2889_vm10, %v5073_v7, 0.0 }
0x3c0d   :  { %v5038_v56 = vmul.f32 0.0625, %v5034_v20  ;;  %5075 = vadd.xlane.f32.xlu0 %v5074_v45 }
0x3c0f   :  { %v5040_v8 = vsub.f32 %v5026_v29, %v5038_v56 }
0x3c10   :  { %v5037_v9 = vpop.xlane.xlu0 %5036 }
0x3c11   :  { %v5039_v10 = vmul.f32 0.0625, %v5037_v9  ;;  %v5042_v22 = vmul.f32 %v5040_v8, %v5040_v8 }
0x3c13   :  { %v5041_v11 = vsub.f32 %v5027_v43, %v5039_v10  ;;  %v5044_v21 = vsel %vm196_vm6, %v5042_v22, 0.0  ;;  %v5176_v43 = vld [vmem:[%s7455_s1 + $0x328] sm:$0xff] }
0x3c14   :  { %5045 = vadd.xlane.f32.xlu1 %v5044_v21 }
0x3c15   :  { %v5043_v12 = vmul.f32 %v5041_v11, %v5041_v11 }
0x3c17   :  { %v5047_v14 = vsel %vm505_vm9, %v5043_v12, 0.0 }
0x3c18   :  { %5048 = vadd.xlane.f32.xlu1 %v5047_v14 }
0x3c9a   :  { %v5076_v46 = vpop.xlane.xlu0 %5075 }
0x3c9b   :  { %v5077_v13 = vmul.f32 0.0625, %v5076_v46 }
0x3c9d   :  { %v5078_v24 = vadd.f32 1e-05, %v5077_v13 }
0x3c9f   :  { %6248 = vrsqrt.f32 %v5078_v24 }
0x3ca1   :  { %v5046_v25 = vpop.xlane.xlu1 %5045 }
0x3ca2   :  { %v5050_v26 = vmul.f32 0.0625, %v5046_v25 }
0x3ca4   :  { %v5052_v30 = vadd.f32 1e-05, %v5050_v26 }
0x3ca5   :  { %v5049_v2 = vpop.xlane.xlu1 %5048 }
0x3ca6   :  { %6250 = vrsqrt.f32 %v5052_v30  ;;  %v5051_v35 = vmul.f32 0.0625, %v5049_v2 }
0x3ca8   :  { %v5053_v38 = vadd.f32 1e-05, %v5051_v35 }
0x3ca9   :  { %v6249_v0 = vpop.eup %6248 }
0x3caa   :  { %v5080_v47 = vmul.f32 %v6249_v0, %v5072_v62  ;;  %6252 = vrsqrt.f32 %v5053_v38 }
0x3cac   :  { %v5081_v59 = vmul.f32 %v5080_v47, %v5066_v44 }
0x3cae   :  { %v5082_v49 = vadd.f32 %v5081_v59, %v5067_v48 }
0x3cb0   :  { %v6251_v57 = vpop.eup %6250  ;;  %v5083_v58 = vmax.f32 %v5082_v49, 0.0 }
0x3cb1   :  { %v5056_v32 = vmul.f32 %v6251_v57, %v5040_v8 }
0x3cb2   :  { %5084 = vst.msk [vmem:[#allocation2] sm:$0x1] %vm2889_vm10, %v5083_v58 }
0x3cb3   :  { %v5058_v27 = vmul.f32 %v5056_v32, %v7265_v33 }
0x3cb4   :  { %v6253_v17 = vpop.eup %6252 }
0x3cb5   :  { %v5060_v31 = vadd.f32 %v5058_v27, %v7271_v61  ;;  %v5057_v37 = vmul.f32 %v6253_v17, %v5041_v11  ;;  %v5174_v61 = vld [vmem:[%s7455_s1 + $0x31d] sm:$0xff] }
0x3cb6   :  { %v6107_v28 = vpack.c.bf16 %v5175_v54, %v5174_v61 }
0x3cb7   :  { %v5062_v39 = vmax.f32 %v5060_v31, 0.0  ;;  %v5059_v40 = vmul.f32 %v5057_v37, %v5029_v60 }
0x3cb8   :  { %6109 = vmatprep.subr.msk.bf16.mxu0 %vm6287_vm4, %v6107_v28 }
0x3cb9   :  { %5064 = vst.msk [vmem:[#allocation2 + $0x1] sm:$0xff] %vm196_vm6, %v5062_v39  ;;  %v5061_v63 = vadd.f32 %v5059_v40, %v5031_v34  ;;  %6112 = vmatpush3.bf16.msk.msra.mxu0 %vm6287_vm4, %v6107_v28 }
0x3cbb   :  { %v5063_v50 = vmax.f32 %v5061_v63, 0.0 }
0x3cbd   :  { %5065 = vst.msk [vmem:[#allocation2 + $0x9] sm:$0x7f] %vm505_vm9, %v5063_v50 }
0x3cc0   :  { %v5085_v33 = vld [vmem:[#allocation2] sm:$0xff] }
0x3cc1   :  { %5919 = vmatprep.mubr.msk.f32.mxu1 %vm196_vm6, %v5085_v33 }
0x3cc4   :  { %v5086_v1 = vld [vmem:[#allocation2 + $0x8] sm:$0xff] }
0x3cc5   :  { %5920 = vmatmul.mubr.msk.f32.vlgmr.msra.gmra.mrb[38].mxu1 %vm196_vm6, %v5086_v1 }
0x3d98   :  { %v5921_v16 = vpop.f32.mrb[38].mxu1 }
0x3d99   :  { %v5169_v3 = vadd.f32 %v5921_v16, %v5090_v53  ;;  %v5163_v36 = vpop.f32.mrb[39].mxu1 }
0x3d9a   :  { %v5164_v23 = vadd.f32 %v5163_v36, %v5089_v52 }
0x3d9b   :  { %v5173_v41 = vmax.f32 %v5169_v3, 0.0 }
0x3d9c   :  { %v5172_v55 = vmax.f32 %v5164_v23, 0.0 }
0x3d9e   :  { %5926 = vmatprep.mubr.msk.f32.mxu0 %vm108_vm5, %v5172_v55 }
0x3d9f   :  { %5927 = vmatmul.mubr.msk.f32.vlgmr.msra.gmra.mrb[36].mxu0 %vm108_vm5, %v5173_v41 }
0x3e72   :  { %v5928_v29 = vpop.f32.mrb[36].mxu0 }
0x3e73   :  { %v5259_v18 = vadd.f32 %v5928_v29, %v5177_v6  ;;  %v5253_v4 = vpop.f32.mrb[37].mxu0 }
0x3e74   :  { %v5254_v5 = vadd.f32 %v5253_v4, %v5176_v43 }
0x3e75   :  { %5263 = vst.msk [vmem:[%s7457_s2 + $0x8] sm:$0xff] %vm16_vm1, %v5259_v18 }
0x3e76   :  { %5262 = vst.msk [vmem:[%s7457_s2] sm:$0xff] %vm16_vm1, %v5254_v5 }

</bundles_post_ra>
